<compile_context>
chip_gen: v6e
topology: v6e:2x2x1
jax: 0.10.0
libtpu: 0.0.40
codegen_flags: <defaults>
</compile_context>

<pallas_src>
import jax
import jax.numpy as jnp
from jax.experimental import pallas as pl
from jax.experimental.pallas import tpu as pltpu


LANES = 128                      # padded output-feature width (lane-dense)
_VMEM_LIMIT = 32 * 1024 * 1024   # safe on v5e/v6e (128 MiB) and v7x (64 MiB)

_C1_SAMPLES_CAP = 32             # 32 * 144 = 4608 patch rows / grid step
_C2_SAMPLES_CAP = 128            # 128 * 16 = 2048 patch rows / grid step
_FC_SAMPLES_CAP = 512            # 512 rows / grid step


def _round_up(n, m):
    return -(-n // m) * m


def _batch_tile(npad, cap):
    """Largest multiple of 8 that divides npad, is <= cap, and (for npad>=16)
    leaves at least 2 grid steps so the grid can shard across TensorCores."""
    cap = max(8, min(cap, npad // 2 if npad >= 16 else npad))
    t = (cap // 8) * 8
    while npad % t:
        t -= 8
    return t


# ----------------------------------------------------------------------------
# Pallas kernels
# ----------------------------------------------------------------------------
def _conv_pool_kernel(x_ref, w_ref, b_ref, o_ref):
    """Fused Conv2d(5x5) + bias + Sigmoid + MaxPool2d(2,2).

    x_ref : (R, Kpad)    bf16  one 6x6/stride-2 patch per *pooled* pixel
    w_ref : (Kpad, 512)  bf16  the 4 pool-position weights concatenated on N
    b_ref : (1, 128)     f32
    o_ref : (R, 128)     bf16  sigmoid(max_p(patch @ w_p) + b), lane-dense
    """
    s = jnp.dot(x_ref[...], w_ref[...], preferred_element_type=jnp.float32)
    # max over the four pool positions: free 128-aligned lane slices.
    m = jnp.maximum(jnp.maximum(s[:, 0:128], s[:, 128:256]),
                    jnp.maximum(s[:, 256:384], s[:, 384:512]))
    # max / +bias / sigmoid commute (sigmoid monotone, bias per-channel), so
    # pooling happens on pre-activations; sigmoid runs once per pooled pixel.
    o_ref[...] = jax.nn.sigmoid(m + b_ref[...]).astype(o_ref.dtype)


def conv_pool(patches, w_cat, bias, *, rows_per_step):
    """patches: (M, Kpad) bf16 -> (M, 128) bf16, row-tiled over the grid."""
    M, Kp = patches.shape
    assert M % rows_per_step == 0
    return pl.pallas_call(
        _conv_pool_kernel,
        out_shape=jax.ShapeDtypeStruct((M, LANES), jnp.bfloat16),
        grid=(M // rows_per_step,),
        in_specs=[
            pl.BlockSpec((rows_per_step, Kp), lambda i: (i, 0)),
            pl.BlockSpec((Kp, 4 * LANES), lambda i: (0, 0)),
            pl.BlockSpec((1, LANES), lambda i: (0, 0)),
        ],
        out_specs=pl.BlockSpec((rows_per_step, LANES), lambda i: (i, 0)),
        compiler_params=pltpu.CompilerParams(
            dimension_semantics=("parallel",),
            vmem_limit_bytes=_VMEM_LIMIT),
    )(patches, w_cat, bias)


def _fc_kernel(x_ref, w1_ref, b1_ref, w2_ref, b2_ref, w3_ref, b3_ref, o_ref):
    """Fused fc1 + Sigmoid + fc2 + Sigmoid + fc3; weights resident in VMEM."""
    h = jnp.dot(x_ref[...], w1_ref[...], preferred_element_type=jnp.float32)
    h = jax.nn.sigmoid(h + b1_ref[...])
    h = jnp.dot(h.astype(jnp.bfloat16), w2_ref[...],
                preferred_element_type=jnp.float32)
    h = jax.nn.sigmoid(h + b2_ref[...])
    h = jnp.dot(h.astype(jnp.bfloat16), w3_ref[...],
                preferred_element_type=jnp.float32)
    o_ref[...] = h + b3_ref[...]


def fc_forward(feat, w1, b1, w2, b2, w3, b3, *, row_tile):
    M, K = feat.shape
    assert M % row_tile == 0
    return pl.pallas_call(
        _fc_kernel,
        out_shape=jax.ShapeDtypeStruct((M, LANES), jnp.float32),
        grid=(M // row_tile,),
        in_specs=[
            pl.BlockSpec((row_tile, K), lambda i: (i, 0)),
            pl.BlockSpec((K, LANES), lambda i: (0, 0)),
            pl.BlockSpec((1, LANES), lambda i: (0, 0)),
            pl.BlockSpec((LANES, LANES), lambda i: (0, 0)),
            pl.BlockSpec((1, LANES), lambda i: (0, 0)),
            pl.BlockSpec((LANES, LANES), lambda i: (0, 0)),
            pl.BlockSpec((1, LANES), lambda i: (0, 0)),
        ],
        out_specs=pl.BlockSpec((row_tile, LANES), lambda i: (i, 0)),
        compiler_params=pltpu.CompilerParams(
            dimension_semantics=("parallel",),
            vmem_limit_bytes=_VMEM_LIMIT),
    )(feat, w1, b1, w2, b2, w3, b3)


# ----------------------------------------------------------------------------
# Host glue: 6x6 / stride-2 patch extraction (one patch per pooled pixel),
# built from static strided slices (no gathers), operating on bf16 data.
# ----------------------------------------------------------------------------
def _pool_window_patches(img):
    """img: (N, H, W, C) -> (N, Hp*Wp, 36*C); feature order (u, v, c)."""
    N, H, W, C = img.shape
    Hp, Wp = (H - 6) // 2 + 1, (W - 6) // 2 + 1
    cols = []
    for u in range(6):
        for v in range(6):
            cols.append(img[:, u:u + 2 * Hp - 1:2, v:v + 2 * Wp - 1:2, :])
    p = jnp.stack(cols, axis=3)               # (N, Hp, Wp, 36, C)
    return p.reshape(N, Hp * Wp, 36 * C)


def _pad_patches(p, kpad):
    """(N, P, K) -> (N*P, kpad) bf16, zero-padded K (lane-aligned)."""
    N, P, K = p.shape
    p = jnp.pad(p, ((0, 0), (0, 0), (0, kpad - K)))
    return p.reshape(N * P, kpad).astype(jnp.bfloat16)


# ----------------------------------------------------------------------------
# Parameters: PyTorch-default-style init + one-time kernel-layout preparation
# ----------------------------------------------------------------------------
def init_params(key):
    def uni(key, shape, fan_in):
        bound = 1.0 / jnp.sqrt(jnp.float32(fan_in))
        return jax.random.uniform(key, shape, jnp.float32, -bound, bound)

    ks = jax.random.split(key, 10)
    return {
        "conv1_w": uni(ks[0], (6, 1, 5, 5), 1 * 5 * 5),
        "conv1_b": uni(ks[1], (6,), 1 * 5 * 5),
        "conv2_w": uni(ks[2], (16, 6, 5, 5), 6 * 5 * 5),
        "conv2_b": uni(ks[3], (16,), 6 * 5 * 5),
        "fc1_w": uni(ks[4], (120, 256), 256),   # PyTorch Linear: (out, in)
        "fc1_b": uni(ks[5], (120,), 256),
        "fc2_w": uni(ks[6], (84, 120), 120),
        "fc2_b": uni(ks[7], (84,), 120),
        "fc3_w": uni(ks[8], (10, 84), 84),
        "fc3_b": uni(ks[9], (10,), 84),
    }


def _conv_pool_weight(w, kpad):
    """w: (Cout, Cin, 5, 5) -> (kpad, 512) bf16.

    For each position (i, j) inside the 2x2 pool window, place the 5x5 kernel
    at offset (i, j) inside the 6x6 patch, flatten in (u, v, c) order (matching
    _pool_window_patches), pad K and pad Cout to 128; concatenate the four
    position matrices along N so the kernel needs a single N=512 GEMM."""
    cout, cin = w.shape[0], w.shape[1]
    mats = []
    for i in range(2):
        for j in range(2):
            w6 = jnp.pad(w, ((0, 0), (0, 0), (i, 1 - i), (j, 1 - j)))
            m = w6.transpose(2, 3, 1, 0).reshape(36 * cin, cout)
            m = jnp.pad(m, ((0, kpad - 36 * cin), (0, LANES - cout)))
            mats.append(m)
    return jnp.concatenate(mats, axis=1).astype(jnp.bfloat16)   # (kpad, 512)


def _pad_bias(b):
    return jnp.pad(b, (0, LANES - b.shape[0])).reshape(1, LANES).astype(jnp.float32)


def prepare_params(params):
    """One-time padding / permutation into the lane-dense bf16 kernel layout."""
    # fc1 absorbs PyTorch's (c, h, w) flatten of the (16, 4, 4) feature map;
    # our features are flattened as (h, w, c_valid16) -> K = 256 exactly.
    w_fc1 = params["fc1_w"].reshape(120, 16, 4, 4).transpose(2, 3, 1, 0)
    w_fc1 = w_fc1.reshape(4 * 4 * 16, 120)
    w_fc1 = jnp.pad(w_fc1, ((0, 0), (0, LANES - 120)))
    w_fc2 = jnp.pad(params["fc2_w"].T, ((0, LANES - 120), (0, LANES - 84)))
    w_fc3 = jnp.pad(params["fc3_w"].T, ((0, LANES - 84), (0, LANES - 10)))
    return {
        "c1_w": _conv_pool_weight(params["conv1_w"], kpad=128),   # K 36 -> 128
        "c1_b": _pad_bias(params["conv1_b"]),
        "c2_w": _conv_pool_weight(params["conv2_w"], kpad=256),   # K 216 -> 256
        "c2_b": _pad_bias(params["conv2_b"]),
        "fc1_w": w_fc1.astype(jnp.bfloat16),
        "fc1_b": _pad_bias(params["fc1_b"]),
        "fc2_w": w_fc2.astype(jnp.bfloat16),
        "fc2_b": _pad_bias(params["fc2_b"]),
        "fc3_w": w_fc3.astype(jnp.bfloat16),
        "fc3_b": _pad_bias(params["fc3_b"]),
    }


# ----------------------------------------------------------------------------
# Forward pass (mirrors DigitModel.forward)
# ----------------------------------------------------------------------------
@jax.jit
def digit_model_forward(x, prep):
    """x: (N, 1, 28, 28) f32 -> logits (N, 10) f32."""
    n = x.shape[0]
    npad = _round_up(n, 32) if n >= 32 else _round_up(n, 8)
    x = jnp.pad(x, ((0, npad - n), (0, 0), (0, 0), (0, 0))).astype(jnp.bfloat16)
    img = x.reshape(npad, 28, 28, 1)          # channels-last (C=1: pure reshape)

    tile_c1 = _batch_tile(npad, _C1_SAMPLES_CAP)
    tile_c2 = _batch_tile(npad, _C2_SAMPLES_CAP)
    tile_fc = _batch_tile(npad, _FC_SAMPLES_CAP)

    # conv1 (1->6, 5x5) + Sigmoid + MaxPool(2,2), fused.   28x28 -> 12x12
    p1 = _pad_patches(_pool_window_patches(img), kpad=128)        # (npad*144, 128)
    a1 = conv_pool(p1, prep["c1_w"], prep["c1_b"], rows_per_step=tile_c1 * 144)
    img1 = a1.reshape(npad, 12, 12, LANES)[..., :6]               # valid channels

    # conv2 (6->16, 5x5) + Sigmoid + MaxPool(2,2), fused.   12x12 -> 4x4
    p2 = _pad_patches(_pool_window_patches(img1), kpad=256)       # (npad*16, 256)
    a2 = conv_pool(p2, prep["c2_w"], prep["c2_b"], rows_per_step=tile_c2 * 16)

    # flatten only the 16 valid channels in (h, w, c) order -> K = 256,
    # then run the fused fc1/fc2/fc3 stack.
    feat = a2.reshape(npad, 4, 4, LANES)[..., :16].reshape(npad, 256)
    logits = fc_forward(feat, prep["fc1_w"], prep["fc1_b"],
                        prep["fc2_w"], prep["fc2_b"],
                        prep["fc3_w"], prep["fc3_b"], row_tile=tile_fc)
    return logits[:n, :10]


if __name__ == "__main__":
    key = jax.random.PRNGKey(0)
    k_params, k_x = jax.random.split(key)
    params = init_params(k_params)
    prep = prepare_params(params)

    # Architecture requires 28x28 single-channel input (LeNet / MNIST).
    x = jax.random.normal(k_x, (16, 1, 28, 28), dtype=jnp.float32)

    logits = digit_model_forward(x, prep)
    jax.block_until_ready(logits)
    assert logits.shape == (16, 10), logits.shape
    print("KERNEL_OK")
</pallas_src>

<mosaic_0001>
module attributes {stable_mosaic.version = 11 : i64} {
  func.func @_conv_pool_kernel(%arg0: i32, %arg1: memref<1152x128xbf16, #tpu.memory_space<vmem>>, %arg2: memref<128x512xbf16, #tpu.memory_space<vmem>>, %arg3: memref<1x128xf32, #tpu.memory_space<vmem>>, %arg4: memref<1152x128xbf16, #tpu.memory_space<vmem>>) attributes {dimension_semantics = [#tpu.dimension_semantics<parallel>], iteration_bounds = array<i64: 2>, scalar_prefetch = 0 : i64, scratch_operands = 0 : i64, tpu.core_type = #tpu.core_type<tc>, window_params = [{transform_indices = @transform_0, window_bounds = array<i64: 1152, 128>}, {pipeline_mode = #tpu.pipeline_mode<synchronous>, transform_indices = @transform_1, window_bounds = array<i64: 128, 512>}, {pipeline_mode = #tpu.pipeline_mode<synchronous>, transform_indices = @transform_2, window_bounds = array<i64: 1, 128>}, {transform_indices = @transform_3, window_bounds = array<i64: 1152, 128>}]} {
    %c0 = arith.constant 0 : index
    %c0_0 = arith.constant 0 : index
    %0 = vector.load %arg1[%c0, %c0_0] : memref<1152x128xbf16, #tpu.memory_space<vmem>>, vector<1152x128xbf16>
    %c0_1 = arith.constant 0 : index
    %c0_2 = arith.constant 0 : index
    %1 = vector.load %arg2[%c0_1, %c0_2] : memref<128x512xbf16, #tpu.memory_space<vmem>>, vector<128x512xbf16>
    %cst = arith.constant dense<0.000000e+00> : vector<1152x512xf32>
    %2 = tpu.matmul %0, %1, %cst {dimension_numbers = #tpu.dot_dimension_numbers<[1], [0], [0], [1], [0, 0, 1, 1], [], []>} : vector<1152x128xbf16>, vector<128x512xbf16>, vector<1152x512xf32> -> vector<1152x512xf32>
    %3 = vector.extract_strided_slice %2 {offsets = [0, 0], sizes = [1152, 128], strides = [1, 1]} : vector<1152x512xf32> to vector<1152x128xf32>
    %4 = vector.extract_strided_slice %2 {offsets = [0, 128], sizes = [1152, 128], strides = [1, 1]} : vector<1152x512xf32> to vector<1152x128xf32>
    %5 = arith.maximumf %3, %4 : vector<1152x128xf32>
    %6 = vector.extract_strided_slice %2 {offsets = [0, 256], sizes = [1152, 128], strides = [1, 1]} : vector<1152x512xf32> to vector<1152x128xf32>
    %7 = vector.extract_strided_slice %2 {offsets = [0, 384], sizes = [1152, 128], strides = [1, 1]} : vector<1152x512xf32> to vector<1152x128xf32>
    %8 = arith.maximumf %6, %7 : vector<1152x128xf32>
    %9 = arith.maximumf %5, %8 : vector<1152x128xf32>
    %c0_3 = arith.constant 0 : index
    %c0_4 = arith.constant 0 : index
    %10 = vector.load %arg3[%c0_3, %c0_4] : memref<1x128xf32, #tpu.memory_space<vmem>>, vector<1x128xf32>
    %11 = vector.broadcast %10 : vector<1x128xf32> to vector<1152x128xf32>
    %12 = arith.addf %9, %11 : vector<1152x128xf32>
    %13 = arith.negf %12 : vector<1152x128xf32>
    %14 = math.exp %13 : vector<1152x128xf32>
    %cst_5 = arith.constant 1.000000e+00 : f32
    %15 = vector.broadcast %cst_5 : f32 to vector<1152x128xf32>
    %16 = arith.addf %15, %14 : vector<1152x128xf32>
    %17 = arith.divf %15, %16 : vector<1152x128xf32>
    %18 = arith.truncf %17 : vector<1152x128xf32> to vector<1152x128xbf16>
    %c0_6 = arith.constant 0 : index
    %c0_7 = arith.constant 0 : index
    %19 = vector.load %arg4[%c0_6, %c0_7] : memref<1152x128xbf16, #tpu.memory_space<vmem>>, vector<1152x128xbf16>
    tpu.vector_store %arg4[%c0_6, %c0_7], %18 {strides = array<i32>} : memref<1152x128xbf16, #tpu.memory_space<vmem>>, vector<1152x128xbf16>,
    return
  }
  func.func @transform_0(%arg0: i32) -> (i32, i32) {
    %c0_i32 = arith.constant 0 : i32
    %c0_i32_0 = arith.constant 0 : i32
    return %arg0, %c0_i32 : i32, i32
  }
  func.func @transform_1(%arg0: i32) -> (i32, i32) {
    %c0_i32 = arith.constant 0 : i32
    %c0_i32_0 = arith.constant 0 : i32
    %c0_i32_1 = arith.constant 0 : i32
    return %c0_i32, %c0_i32_0 : i32, i32
  }
  func.func @transform_2(%arg0: i32) -> (i32, i32) {
    %c0_i32 = arith.constant 0 : i32
    %c0_i32_0 = arith.constant 0 : i32
    %c0_i32_1 = arith.constant 0 : i32
    return %c0_i32, %c0_i32_0 : i32, i32
  }
  func.func @transform_3(%arg0: i32) -> (i32, i32) {
    %c0_i32 = arith.constant 0 : i32
    %c0_i32_0 = arith.constant 0 : i32
    return %arg0, %c0_i32 : i32, i32
  }
}

module attributes {stable_mosaic.version = 11 : i64} {
  func.func @_conv_pool_kernel(%arg0: i32, %arg1: memref<128x256xbf16, #tpu.memory_space<vmem>>, %arg2: memref<256x512xbf16, #tpu.memory_space<vmem>>, %arg3: memref<1x128xf32, #tpu.memory_space<vmem>>, %arg4: memref<128x128xbf16, #tpu.memory_space<vmem>>) attributes {dimension_semantics = [#tpu.dimension_semantics<parallel>], iteration_bounds = array<i64: 2>, scalar_prefetch = 0 : i64, scratch_operands = 0 : i64, tpu.core_type = #tpu.core_type<tc>, window_params = [{transform_indices = @transform_0, window_bounds = array<i64: 128, 256>}, {pipeline_mode = #tpu.pipeline_mode<synchronous>, transform_indices = @transform_1, window_bounds = array<i64: 256, 512>}, {pipeline_mode = #tpu.pipeline_mode<synchronous>, transform_indices = @transform_2, window_bounds = array<i64: 1, 128>}, {transform_indices = @transform_3, window_bounds = array<i64: 128, 128>}]} {
    %c0 = arith.constant 0 : index
    %c0_0 = arith.constant 0 : index
    %0 = vector.load %arg1[%c0, %c0_0] : memref<128x256xbf16, #tpu.memory_space<vmem>>, vector<128x256xbf16>
    %c0_1 = arith.constant 0 : index
    %c0_2 = arith.constant 0 : index
    %1 = vector.load %arg2[%c0_1, %c0_2] : memref<256x512xbf16, #tpu.memory_space<vmem>>, vector<256x512xbf16>
    %cst = arith.constant dense<0.000000e+00> : vector<128x512xf32>
    %2 = tpu.matmul %0, %1, %cst {dimension_numbers = #tpu.dot_dimension_numbers<[1], [0], [0], [1], [0, 0, 1, 1], [], []>} : vector<128x256xbf16>, vector<256x512xbf16>, vector<128x512xf32> -> vector<128x512xf32>
    %3 = vector.extract_strided_slice %2 {offsets = [0, 0], sizes = [128, 128], strides = [1, 1]} : vector<128x512xf32> to vector<128x128xf32>
    %4 = vector.extract_strided_slice %2 {offsets = [0, 128], sizes = [128, 128], strides = [1, 1]} : vector<128x512xf32> to vector<128x128xf32>
    %5 = arith.maximumf %3, %4 : vector<128x128xf32>
    %6 = vector.extract_strided_slice %2 {offsets = [0, 256], sizes = [128, 128], strides = [1, 1]} : vector<128x512xf32> to vector<128x128xf32>
    %7 = vector.extract_strided_slice %2 {offsets = [0, 384], sizes = [128, 128], strides = [1, 1]} : vector<128x512xf32> to vector<128x128xf32>
    %8 = arith.maximumf %6, %7 : vector<128x128xf32>
    %9 = arith.maximumf %5, %8 : vector<128x128xf32>
    %c0_3 = arith.constant 0 : index
    %c0_4 = arith.constant 0 : index
    %10 = vector.load %arg3[%c0_3, %c0_4] : memref<1x128xf32, #tpu.memory_space<vmem>>, vector<1x128xf32>
    %11 = vector.broadcast %10 : vector<1x128xf32> to vector<128x128xf32>
    %12 = arith.addf %9, %11 : vector<128x128xf32>
    %13 = arith.negf %12 : vector<128x128xf32>
    %14 = math.exp %13 : vector<128x128xf32>
    %cst_5 = arith.constant 1.000000e+00 : f32
    %15 = vector.broadcast %cst_5 : f32 to vector<128x128xf32>
    %16 = arith.addf %15, %14 : vector<128x128xf32>
    %17 = arith.divf %15, %16 : vector<128x128xf32>
    %18 = arith.truncf %17 : vector<128x128xf32> to vector<128x128xbf16>
    %c0_6 = arith.constant 0 : index
    %c0_7 = arith.constant 0 : index
    %19 = vector.load %arg4[%c0_6, %c0_7] : memref<128x128xbf16, #tpu.memory_space<vmem>>, vector<128x128xbf16>
    tpu.vector_store %arg4[%c0_6, %c0_7], %18 {strides = array<i32>} : memref<128x128xbf16, #tpu.memory_space<vmem>>, vector<128x128xbf16>,
    return
  }
  func.func @transform_0(%arg0: i32) -> (i32, i32) {
    %c0_i32 = arith.constant 0 : i32
    %c0_i32_0 = arith.constant 0 : i32
    return %arg0, %c0_i32 : i32, i32
  }
  func.func @transform_1(%arg0: i32) -> (i32, i32) {
    %c0_i32 = arith.constant 0 : i32
    %c0_i32_0 = arith.constant 0 : i32
    %c0_i32_1 = arith.constant 0 : i32
    return %c0_i32, %c0_i32_0 : i32, i32
  }
  func.func @transform_2(%arg0: i32) -> (i32, i32) {
    %c0_i32 = arith.constant 0 : i32
    %c0_i32_0 = arith.constant 0 : i32
    %c0_i32_1 = arith.constant 0 : i32
    return %c0_i32, %c0_i32_0 : i32, i32
  }
  func.func @transform_3(%arg0: i32) -> (i32, i32) {
    %c0_i32 = arith.constant 0 : i32
    %c0_i32_0 = arith.constant 0 : i32
    return %arg0, %c0_i32 : i32, i32
  }
}

module attributes {stable_mosaic.version = 11 : i64} {
  func.func @_fc_kernel(%arg0: i32, %arg1: memref<8x256xbf16, #tpu.memory_space<vmem>>, %arg2: memref<256x128xbf16, #tpu.memory_space<vmem>>, %arg3: memref<1x128xf32, #tpu.memory_space<vmem>>, %arg4: memref<128x128xbf16, #tpu.memory_space<vmem>>, %arg5: memref<1x128xf32, #tpu.memory_space<vmem>>, %arg6: memref<128x128xbf16, #tpu.memory_space<vmem>>, %arg7: memref<1x128xf32, #tpu.memory_space<vmem>>, %arg8: memref<8x128xf32, #tpu.memory_space<vmem>>) attributes {dimension_semantics = [#tpu.dimension_semantics<parallel>], iteration_bounds = array<i64: 2>, scalar_prefetch = 0 : i64, scratch_operands = 0 : i64, tpu.core_type = #tpu.core_type<tc>, window_params = [{transform_indices = @transform_0, window_bounds = array<i64: 8, 256>}, {pipeline_mode = #tpu.pipeline_mode<synchronous>, transform_indices = @transform_1, window_bounds = array<i64: 256, 128>}, {pipeline_mode = #tpu.pipeline_mode<synchronous>, transform_indices = @transform_2, window_bounds = array<i64: 1, 128>}, {pipeline_mode = #tpu.pipeline_mode<synchronous>, transform_indices = @transform_3, window_bounds = array<i64: 128, 128>}, {pipeline_mode = #tpu.pipeline_mode<synchronous>, transform_indices = @transform_4, window_bounds = array<i64: 1, 128>}, {pipeline_mode = #tpu.pipeline_mode<synchronous>, transform_indices = @transform_5, window_bounds = array<i64: 128, 128>}, {pipeline_mode = #tpu.pipeline_mode<synchronous>, transform_indices = @transform_6, window_bounds = array<i64: 1, 128>}, {transform_indices = @transform_7, window_bounds = array<i64: 8, 128>}]} {
    %c0 = arith.constant 0 : index
    %c0_0 = arith.constant 0 : index
    %0 = vector.load %arg1[%c0, %c0_0] : memref<8x256xbf16, #tpu.memory_space<vmem>>, vector<8x256xbf16>
    %c0_1 = arith.constant 0 : index
    %c0_2 = arith.constant 0 : index
    %1 = vector.load %arg2[%c0_1, %c0_2] : memref<256x128xbf16, #tpu.memory_space<vmem>>, vector<256x128xbf16>
    %cst = arith.constant dense<0.000000e+00> : vector<8x128xf32>
    %2 = tpu.matmul %0, %1, %cst {dimension_numbers = #tpu.dot_dimension_numbers<[1], [0], [0], [1], [0, 0, 1, 1], [], []>} : vector<8x256xbf16>, vector<256x128xbf16>, vector<8x128xf32> -> vector<8x128xf32>
    %c0_3 = arith.constant 0 : index
    %c0_4 = arith.constant 0 : index
    %3 = vector.load %arg3[%c0_3, %c0_4] : memref<1x128xf32, #tpu.memory_space<vmem>>, vector<1x128xf32>
    %4 = vector.broadcast %3 : vector<1x128xf32> to vector<8x128xf32>
    %5 = arith.addf %2, %4 : vector<8x128xf32>
    %6 = arith.negf %5 : vector<8x128xf32>
    %7 = math.exp %6 : vector<8x128xf32>
    %cst_5 = arith.constant 1.000000e+00 : f32
    %8 = vector.broadcast %cst_5 : f32 to vector<8x128xf32>
    %9 = arith.addf %8, %7 : vector<8x128xf32>
    %10 = arith.divf %8, %9 : vector<8x128xf32>
    %11 = arith.truncf %10 : vector<8x128xf32> to vector<8x128xbf16>
    %c0_6 = arith.constant 0 : index
    %c0_7 = arith.constant 0 : index
    %12 = vector.load %arg4[%c0_6, %c0_7] : memref<128x128xbf16, #tpu.memory_space<vmem>>, vector<128x128xbf16>
    %cst_8 = arith.constant dense<0.000000e+00> : vector<8x128xf32>
    %13 = tpu.matmul %11, %12, %cst_8 {dimension_numbers = #tpu.dot_dimension_numbers<[1], [0], [0], [1], [0, 0, 1, 1], [], []>} : vector<8x128xbf16>, vector<128x128xbf16>, vector<8x128xf32> -> vector<8x128xf32>
    %c0_9 = arith.constant 0 : index
    %c0_10 = arith.constant 0 : index
    %14 = vector.load %arg5[%c0_9, %c0_10] : memref<1x128xf32, #tpu.memory_space<vmem>>, vector<1x128xf32>
    %15 = vector.broadcast %14 : vector<1x128xf32> to vector<8x128xf32>
    %16 = arith.addf %13, %15 : vector<8x128xf32>
    %17 = arith.negf %16 : vector<8x128xf32>
    %18 = math.exp %17 : vector<8x128xf32>
    %cst_11 = arith.constant 1.000000e+00 : f32
    %19 = vector.broadcast %cst_11 : f32 to vector<8x128xf32>
    %20 = arith.addf %19, %18 : vector<8x128xf32>
    %21 = arith.divf %19, %20 : vector<8x128xf32>
    %22 = arith.truncf %21 : vector<8x128xf32> to vector<8x128xbf16>
    %c0_12 = arith.constant 0 : index
    %c0_13 = arith.constant 0 : index
    %23 = vector.load %arg6[%c0_12, %c0_13] : memref<128x128xbf16, #tpu.memory_space<vmem>>, vector<128x128xbf16>
    %cst_14 = arith.constant dense<0.000000e+00> : vector<8x128xf32>
    %24 = tpu.matmul %22, %23, %cst_14 {dimension_numbers = #tpu.dot_dimension_numbers<[1], [0], [0], [1], [0, 0, 1, 1], [], []>} : vector<8x128xbf16>, vector<128x128xbf16>, vector<8x128xf32> -> vector<8x128xf32>
    %c0_15 = arith.constant 0 : index
    %c0_16 = arith.constant 0 : index
    %25 = vector.load %arg7[%c0_15, %c0_16] : memref<1x128xf32, #tpu.memory_space<vmem>>, vector<1x128xf32>
    %26 = vector.broadcast %25 : vector<1x128xf32> to vector<8x128xf32>
    %27 = arith.addf %24, %26 : vector<8x128xf32>
    %c0_17 = arith.constant 0 : index
    %c0_18 = arith.constant 0 : index
    %28 = vector.load %arg8[%c0_17, %c0_18] : memref<8x128xf32, #tpu.memory_space<vmem>>, vector<8x128xf32>
    tpu.vector_store %arg8[%c0_17, %c0_18], %27 {strides = array<i32>} : memref<8x128xf32, #tpu.memory_space<vmem>>, vector<8x128xf32>,
    return
  }
  func.func @transform_0(%arg0: i32) -> (i32, i32) {
    %c0_i32 = arith.constant 0 : i32
    %c0_i32_0 = arith.constant 0 : i32
    return %arg0, %c0_i32 : i32, i32
  }
  func.func @transform_1(%arg0: i32) -> (i32, i32) {
    %c0_i32 = arith.constant 0 : i32
    %c0_i32_0 = arith.constant 0 : i32
    %c0_i32_1 = arith.constant 0 : i32
    return %c0_i32, %c0_i32_0 : i32, i32
  }
  func.func @transform_2(%arg0: i32) -> (i32, i32) {
    %c0_i32 = arith.constant 0 : i32
    %c0_i32_0 = arith.constant 0 : i32
    %c0_i32_1 = arith.constant 0 : i32
    return %c0_i32, %c0_i32_0 : i32, i32
  }
  func.func @transform_3(%arg0: i32) -> (i32, i32) {
    %c0_i32 = arith.constant 0 : i32
    %c0_i32_0 = arith.constant 0 : i32
    %c0_i32_1 = arith.constant 0 : i32
    return %c0_i32, %c0_i32_0 : i32, i32
  }
  func.func @transform_4(%arg0: i32) -> (i32, i32) {
    %c0_i32 = arith.constant 0 : i32
    %c0_i32_0 = arith.constant 0 : i32
    %c0_i32_1 = arith.constant 0 : i32
    return %c0_i32, %c0_i32_0 : i32, i32
  }
  func.func @transform_5(%arg0: i32) -> (i32, i32) {
    %c0_i32 = arith.constant 0 : i32
    %c0_i32_0 = arith.constant 0 : i32
    %c0_i32_1 = arith.constant 0 : i32
    return %c0_i32, %c0_i32_0 : i32, i32
  }
  func.func @transform_6(%arg0: i32) -> (i32, i32) {
    %c0_i32 = arith.constant 0 : i32
    %c0_i32_0 = arith.constant 0 : i32
    %c0_i32_1 = arith.constant 0 : i32
    return %c0_i32, %c0_i32_0 : i32, i32
  }
  func.func @transform_7(%arg0: i32) -> (i32, i32) {
    %c0_i32 = arith.constant 0 : i32
    %c0_i32_0 = arith.constant 0 : i32
    return %arg0, %c0_i32 : i32, i32
  }
}

</mosaic_0001>

<bundles_post_ra>
// kernel: digit_model_forward.3
= control target key start
LH: loop header
LB: loop body
LE: loop exit
PB: predicated region body
PF: predicated region fallthrough
CT: control target
= control target key end

     0   :  { %s6387_s12 = smov 0   ;;  %s6968_s0 = inlined_call_operand.vmem [shape: bf16[2304,128], index: 0, kind: input, shape index: {}]   ;;  %s6969_s1 = inlined_call_operand.vmem [shape: bf16[128,512], index: 1, kind: input, shape index: {}]   ;;  %s6970_s2 = inlined_call_operand.vmem [shape: f32[1,128], index: 2, kind: input, shape index: {}]   ;;  %s6971_s3 = inlined_call_operand.vmem [shape: bf16[2304,128], index: 3, kind: output, shape index: {}]  }
   0x1 LB: > { %s4672_s13 = sadd.s32 4294967295, %s6364_s12   ;;  %p4676_p0 = scmp.ge.s32.totalorder %s6364_s12, 1  ;;  %s6364_s12 = sphi %s6387_s12, %s13_s12  }
   0x2   : > { %p138_p1 = scmp.lt.s32.totalorder %s6364_s12, 3 }
   0x4   : > { %p139_p2 = pnand %p4676_p0, %p138_p1 }
   0x5   : > { %s162_s30 = smul.u32 (!%p139_p2), 144, %s4672_s13 }
   0x6   : > { %142 = sbr.rel (%p139_p2) target bundleno = 855 (0x357), region = 32 }
   0x7   : > { %p163_p3 = scmp.lt.s32.totalorder (!%p139_p2), %s162_s30, 287 }
   0xb   : > { %v5658_v0 = vld [vmem:[%s6969_s1 + $0xe4] ss:$16 sps:$4 sm:$0xff]   ;;  %v5660_v1 = vld [vmem:[%s6969_s1 + $0xec] ss:$16 sps:$4 sm:$0xff]   ;;  %v6366_v2 = vmov 0   ;;  %s6973_s30 = smov (!%p163_p3, %s162_s30), 287 }
   0xc   : > { %975 = vmatprep.mubr.bf16.mxu0 %v6366_v2  ;;  %1728 = vmatprep.mubr.bf16.mxu1 %v6366_v2  ;;  %v5662_v3 = vld [vmem:[%s6969_s1 + $0xe0] ss:$16 sps:$4 sm:$0xff]   ;;  %v5663_v4 = vld [vmem:[%s6969_s1 + $0xe8] ss:$16 sps:$4 sm:$0xff]   ;;  %v5664_v5 = vld [vmem:[%s6969_s1 + $0xc4] ss:$16 sps:$4 sm:$0xff]  }
   0xd   : > { %943 = vmatprep.subr.bf16.mxu0 %v5658_v0  ;;  %1696 = vmatprep.subr.bf16.mxu1 %v5660_v1  ;;  %v5666_v6 = vld [vmem:[%s6969_s1 + $0xcc] ss:$16 sps:$4 sm:$0xff]   ;;  %v5668_v7 = vld [vmem:[%s6969_s1 + $0xc0] ss:$16 sps:$4 sm:$0xff]   ;;  %v5669_v8 = vld [vmem:[%s6969_s1 + $0xc8] ss:$16 sps:$4 sm:$0xff]  }
   0xe   : > { %944 = vmatpush1.bf16.msra.mxu0 %v5662_v3  ;;  %1697 = vmatpush1.bf16.msra.mxu1 %v5663_v4  ;;  %v5670_v9 = vld [vmem:[%s6969_s1 + $0xa4] ss:$16 sps:$4 sm:$0xff]   ;;  %v5672_v10 = vld [vmem:[%s6969_s1 + $0xac] ss:$16 sps:$4 sm:$0xff]   ;;  %v5674_v11 = vld [vmem:[%s6969_s1 + $0xa0] ss:$16 sps:$4 sm:$0xff]  }
   0xf   : > { %945 = vmatprep.subr.bf16.mxu0 %v5664_v5  ;;  %1698 = vmatprep.subr.bf16.mxu1 %v5666_v6  ;;  %v5675_v12 = vld [vmem:[%s6969_s1 + $0xa8] ss:$16 sps:$4 sm:$0xff]   ;;  %v5676_v13 = vld [vmem:[%s6969_s1 + $0x84] ss:$16 sps:$4 sm:$0xff]   ;;  %v5678_v14 = vld [vmem:[%s6969_s1 + $0x8c] ss:$16 sps:$4 sm:$0xff]  }
  0x10   : > { %v5680_v15 = vld [vmem:[%s6969_s1 + $0x80] ss:$16 sps:$4 sm:$0xff]   ;;  %v5681_v16 = vld [vmem:[%s6969_s1 + $0x88] ss:$16 sps:$4 sm:$0xff]   ;;  %v5682_v17 = vld [vmem:[%s6969_s1 + $0x64] ss:$16 sps:$4 sm:$0xff]  }
  0x11   : > { %v5684_v18 = vld [vmem:[%s6969_s1 + $0x6c] ss:$16 sps:$4 sm:$0xff]   ;;  %v5686_v19 = vld [vmem:[%s6969_s1 + $0x60] ss:$16 sps:$4 sm:$0xff]   ;;  %v5687_v20 = vld [vmem:[%s6969_s1 + $0x68] ss:$16 sps:$4 sm:$0xff]  }
  0x12   : > { %946 = vmatpush1.bf16.msra.mxu0 %v5668_v7  ;;  %1699 = vmatpush1.bf16.msra.mxu1 %v5669_v8  ;;  %v5688_v21 = vld [vmem:[%s6969_s1 + $0x44] ss:$16 sps:$4 sm:$0xff]   ;;  %v5690_v22 = vld [vmem:[%s6969_s1 + $0x4c] ss:$16 sps:$4 sm:$0xff]   ;;  %s4677_s7 = sshll.u32 %s6973_s30, 2 }
  0x13   : > { %947 = vmatprep.subr.bf16.mxu0 %v5670_v9  ;;  %1700 = vmatprep.subr.bf16.mxu1 %v5672_v10  ;;  %v5692_v23 = vld [vmem:[%s6969_s1 + $0x40] ss:$16 sps:$4 sm:$0xff]   ;;  %v5693_v24 = vld [vmem:[%s6969_s1 + $0x48] ss:$16 sps:$4 sm:$0xff]   ;;  %v5694_v25 = vld [vmem:[%s6969_s1 + $0x24] ss:$16 sps:$4 sm:$0xff]   ;;  %s6480_s17 = scalar_lea.vmem %s6968_s0, %s4677_s7  ;;  %s6613_s11 = scalar_lea.vmem %s6971_s3, %s4677_s7 }
  0x14   : > { %v5696_v26 = vld [vmem:[%s6969_s1 + $0x2c] ss:$16 sps:$4 sm:$0xff]   ;;  %v5698_v27 = vld [vmem:[%s6969_s1 + $0x20] ss:$16 sps:$4 sm:$0xff]   ;;  %v5699_v28 = vld [vmem:[%s6969_s1 + $0x28] ss:$16 sps:$4 sm:$0xff]  }
  0x15   : > { %v5700_v29 = vld [vmem:[%s6969_s1 + $0x4] ss:$16 sps:$4 sm:$0xff]   ;;  %v5702_v30 = vld [vmem:[%s6969_s1 + $0xc] ss:$16 sps:$4 sm:$0xff]   ;;  %v5704_v31 = vld [vmem:[%s6969_s1] ss:$16 sps:$4 sm:$0xff]  }
  0x16   : > { %948 = vmatpush1.bf16.msra.mxu0 %v5674_v11  ;;  %1701 = vmatpush1.bf16.msra.mxu1 %v5675_v12  ;;  %v5705_v32 = vld [vmem:[%s6969_s1 + $0x8] ss:$16 sps:$4 sm:$0xff]   ;;  %v5706_v33 = vld [vmem:[%s6480_s17] sm:$0xff]   ;;  %v5708_v35 = vld [vmem:[%s6480_s17 + $0x10] sm:$0xff]  }
  0x17   : > { %949 = vmatprep.subr.bf16.mxu0 %v5676_v13  ;;  %1702 = vmatprep.subr.bf16.mxu1 %v5678_v14  ;;  %v5707_v34 = vld [vmem:[%s6480_s17 + $0x8] sm:$0xff]   ;;  %v5709_v36 = vld [vmem:[%s6480_s17 + $0x18] sm:$0xff]   ;;  %v5710_v37 = vld [vmem:[%s6480_s17 + $0x20] sm:$0xff]  }
  0x18   : > { %v5711_v38 = vld [vmem:[%s6480_s17 + $0x28] sm:$0xff]   ;;  %v5712_v39 = vld [vmem:[%s6480_s17 + $0x30] sm:$0xff]   ;;  %v5713_v40 = vld [vmem:[%s6480_s17 + $0x38] sm:$0xff]  }
  0x19   : > { %v5714_v41 = vld [vmem:[%s6480_s17 + $0x40] sm:$0xff]   ;;  %v5715_v42 = vld [vmem:[%s6480_s17 + $0x48] sm:$0xff]   ;;  %v5716_v43 = vld [vmem:[%s6480_s17 + $0x50] sm:$0xff]  }
  0x1a   : > { %950 = vmatpush1.bf16.msra.mxu0 %v5680_v15  ;;  %1703 = vmatpush1.bf16.msra.mxu1 %v5681_v16  ;;  %v5717_v44 = vld [vmem:[%s6480_s17 + $0x58] sm:$0xff]   ;;  %v5718_v45 = vld [vmem:[%s6480_s17 + $0x60] sm:$0xff]   ;;  %v5719_v46 = vld [vmem:[%s6480_s17 + $0x68] sm:$0xff]  }
  0x1b   : > { %951 = vmatprep.subr.bf16.mxu0 %v5682_v17  ;;  %1704 = vmatprep.subr.bf16.mxu1 %v5684_v18  ;;  %v5720_v47 = vld [vmem:[%s6480_s17 + $0x70] sm:$0xff]   ;;  %v5721_v48 = vld [vmem:[%s6480_s17 + $0x78] sm:$0xff]   ;;  %v5722_v49 = vld [vmem:[%s6480_s17 + $0x80] sm:$0xff]  }
  0x1c   : > { %v5723_v50 = vld [vmem:[%s6480_s17 + $0x88] sm:$0xff]   ;;  %v5724_v51 = vld [vmem:[%s6480_s17 + $0x90] sm:$0xff]   ;;  %v5725_v52 = vld [vmem:[%s6480_s17 + $0x98] sm:$0xff]  }
  0x1d   : > { %v5726_v53 = vld [vmem:[%s6480_s17 + $0xa0] sm:$0xff]   ;;  %v5727_v54 = vld [vmem:[%s6480_s17 + $0xa8] sm:$0xff]   ;;  %v5728_v55 = vld [vmem:[%s6480_s17 + $0xb0] sm:$0xff]  }
  0x1e   : > { %952 = vmatpush1.bf16.msra.mxu0 %v5686_v19  ;;  %1705 = vmatpush1.bf16.msra.mxu1 %v5687_v20  ;;  %v5729_v56 = vld [vmem:[%s6480_s17 + $0xb8] sm:$0xff]   ;;  %v5730_v57 = vld [vmem:[%s6480_s17 + $0xc0] sm:$0xff]   ;;  %v5731_v4 = vld [vmem:[%s6480_s17 + $0xc8] sm:$0xff]  }
  0x1f   : > { %953 = vmatprep.subr.bf16.mxu0 %v5688_v21  ;;  %1706 = vmatprep.subr.bf16.mxu1 %v5690_v22  ;;  %v6581_v0 = vld [vmem:[%s6970_s2] ss:$0 sm:$0xff]  ;;  %v5732_v22 = vld [vmem:[%s6480_s17 + $0xd0] sm:$0xff]  }
  0x22   : > { %954 = vmatpush1.bf16.msra.mxu0 %v5692_v23  ;;  %1707 = vmatpush1.bf16.msra.mxu1 %v5693_v24 }
  0x23   : > { %955 = vmatprep.subr.bf16.mxu0 %v5694_v25  ;;  %1708 = vmatprep.subr.bf16.mxu1 %v5696_v26 }
  0x26   : > { %956 = vmatpush1.bf16.msra.mxu0 %v5698_v27  ;;  %1709 = vmatpush1.bf16.msra.mxu1 %v5699_v28 }
  0x27   : > { %957 = vmatprep.subr.bf16.mxu0 %v5700_v29  ;;  %1710 = vmatprep.subr.bf16.mxu1 %v5702_v30 }
  0x2a   : > { %958 = vmatpush1.bf16.msra.mxu0 %v5704_v31  ;;  %1711 = vmatpush1.bf16.msra.mxu1 %v5705_v32 }
  0x2d   : > { %976 = vmatmul.mubr.bf16.vlgmr.msra.gmra.mxu0 %v5706_v33  ;;  %1729 = vmatmul.mubr.bf16.vlgmr.msra.gmra.mxu1 %v5706_v33 }
  0x2e   : > { %985 = vmatprep.mubr.bf16.mxu0 %v6366_v2  ;;  %1738 = vmatprep.mubr.bf16.mxu1 %v6366_v2 }
  0x35   : > { %986 = vmatmul.mubr.bf16.gmra.mxu0 %v5707_v34  ;;  %1739 = vmatmul.mubr.bf16.gmra.mxu1 %v5707_v34 }
  0x36   : > { %995 = vmatprep.mubr.bf16.mxu0 %v6366_v2  ;;  %1748 = vmatprep.mubr.bf16.mxu1 %v6366_v2 }
  0x3d   : > { %996 = vmatmul.mubr.bf16.gmra.mxu0 %v5708_v35  ;;  %1749 = vmatmul.mubr.bf16.gmra.mxu1 %v5708_v35 }
  0x3e   : > { %1005 = vmatprep.mubr.bf16.mxu0 %v6366_v2  ;;  %1758 = vmatprep.mubr.bf16.mxu1 %v6366_v2 }
  0x45   : > { %1006 = vmatmul.mubr.bf16.gmra.mxu0 %v5709_v36  ;;  %1759 = vmatmul.mubr.bf16.gmra.mxu1 %v5709_v36 }
  0x46   : > { %1015 = vmatprep.mubr.bf16.mxu0 %v6366_v2  ;;  %1768 = vmatprep.mubr.bf16.mxu1 %v6366_v2 }
  0x4d   : > { %1016 = vmatmul.mubr.bf16.gmra.mxu0 %v5710_v37  ;;  %1769 = vmatmul.mubr.bf16.gmra.mxu1 %v5710_v37 }
  0x4e   : > { %1025 = vmatprep.mubr.bf16.mxu0 %v6366_v2  ;;  %1778 = vmatprep.mubr.bf16.mxu1 %v6366_v2 }
  0x55   : > { %1026 = vmatmul.mubr.bf16.gmra.mxu0 %v5711_v38  ;;  %1779 = vmatmul.mubr.bf16.gmra.mxu1 %v5711_v38 }
  0x56   : > { %1035 = vmatprep.mubr.bf16.mxu0 %v6366_v2  ;;  %1788 = vmatprep.mubr.bf16.mxu1 %v6366_v2 }
  0x5d   : > { %1036 = vmatmul.mubr.bf16.gmra.mxu0 %v5712_v39  ;;  %1789 = vmatmul.mubr.bf16.gmra.mxu1 %v5712_v39 }
  0x5e   : > { %1045 = vmatprep.mubr.bf16.mxu0 %v6366_v2  ;;  %1798 = vmatprep.mubr.bf16.mxu1 %v6366_v2 }
  0x65   : > { %1046 = vmatmul.mubr.bf16.gmra.mxu0 %v5713_v40  ;;  %1799 = vmatmul.mubr.bf16.gmra.mxu1 %v5713_v40 }
  0x66   : > { %1055 = vmatprep.mubr.bf16.mxu0 %v6366_v2  ;;  %1808 = vmatprep.mubr.bf16.mxu1 %v6366_v2 }
  0x6d   : > { %1056 = vmatmul.mubr.bf16.gmra.mxu0 %v5714_v41  ;;  %1809 = vmatmul.mubr.bf16.gmra.mxu1 %v5714_v41  ;;  %v5733_v41 = vld [vmem:[%s6480_s17 + $0xd8] sm:$0xff]  }
  0x6e   : > { %1065 = vmatprep.mubr.bf16.mxu0 %v6366_v2  ;;  %1818 = vmatprep.mubr.bf16.mxu1 %v6366_v2 }
  0x75   : > { %1066 = vmatmul.mubr.bf16.gmra.mxu0 %v5715_v42  ;;  %1819 = vmatmul.mubr.bf16.gmra.mxu1 %v5715_v42 }
  0x76   : > { %1075 = vmatprep.mubr.bf16.mxu0 %v6366_v2  ;;  %1828 = vmatprep.mubr.bf16.mxu1 %v6366_v2 }
  0x7d   : > { %1076 = vmatmul.mubr.bf16.gmra.mxu0 %v5716_v43  ;;  %1829 = vmatmul.mubr.bf16.gmra.mxu1 %v5716_v43 }
  0x7e   : > { %1085 = vmatprep.mubr.bf16.mxu0 %v6366_v2  ;;  %1838 = vmatprep.mubr.bf16.mxu1 %v6366_v2 }
  0x85   : > { %1086 = vmatmul.mubr.bf16.gmra.mxu0 %v5717_v44  ;;  %1839 = vmatmul.mubr.bf16.gmra.mxu1 %v5717_v44 }
  0x86   : > { %1095 = vmatprep.mubr.bf16.mxu0 %v6366_v2  ;;  %1848 = vmatprep.mubr.bf16.mxu1 %v6366_v2 }
  0x8d   : > { %1096 = vmatmul.mubr.bf16.gmra.mxu0 %v5718_v45  ;;  %1849 = vmatmul.mubr.bf16.gmra.mxu1 %v5718_v45 }
  0x8e   : > { %1105 = vmatprep.mubr.bf16.mxu0 %v6366_v2  ;;  %1858 = vmatprep.mubr.bf16.mxu1 %v6366_v2 }
  0x95   : > { %1106 = vmatmul.mubr.bf16.gmra.mxu0 %v5719_v46  ;;  %1859 = vmatmul.mubr.bf16.gmra.mxu1 %v5719_v46 }
  0x96   : > { %1115 = vmatprep.mubr.bf16.mxu0 %v6366_v2  ;;  %1868 = vmatprep.mubr.bf16.mxu1 %v6366_v2 }
  0x9d   : > { %1116 = vmatmul.mubr.bf16.gmra.mxu0 %v5720_v47  ;;  %1869 = vmatmul.mubr.bf16.gmra.mxu1 %v5720_v47 }
  0x9e   : > { %1125 = vmatprep.mubr.bf16.mxu0 %v6366_v2  ;;  %1878 = vmatprep.mubr.bf16.mxu1 %v6366_v2 }
  0xa5   : > { %1126 = vmatmul.mubr.bf16.gmra.mxu0 %v5721_v48  ;;  %1879 = vmatmul.mubr.bf16.gmra.mxu1 %v5721_v48 }
  0xa6   : > { %1135 = vmatprep.mubr.bf16.mxu0 %v6366_v2  ;;  %1888 = vmatprep.mubr.bf16.mxu1 %v6366_v2 }
  0xad   : > { %1136 = vmatmul.mubr.bf16.gmra.mxu0 %v5722_v49  ;;  %1889 = vmatmul.mubr.bf16.gmra.mxu1 %v5722_v49 }
  0xae   : > { %1145 = vmatprep.mubr.bf16.mxu0 %v6366_v2  ;;  %1898 = vmatprep.mubr.bf16.mxu1 %v6366_v2 }
  0xb5   : > { %1146 = vmatmul.mubr.bf16.gmra.mxu0 %v5723_v50  ;;  %1899 = vmatmul.mubr.bf16.gmra.mxu1 %v5723_v50 }
  0xb6   : > { %1155 = vmatprep.mubr.bf16.mxu0 %v6366_v2  ;;  %1908 = vmatprep.mubr.bf16.mxu1 %v6366_v2 }
  0xbd   : > { %1156 = vmatmul.mubr.bf16.gmra.mxu0 %v5724_v51  ;;  %1909 = vmatmul.mubr.bf16.gmra.mxu1 %v5724_v51 }
  0xbe   : > { %1165 = vmatprep.mubr.bf16.mxu0 %v6366_v2  ;;  %1918 = vmatprep.mubr.bf16.mxu1 %v6366_v2 }
  0xc5   : > { %1166 = vmatmul.mubr.bf16.gmra.mxu0 %v5725_v52  ;;  %1919 = vmatmul.mubr.bf16.gmra.mxu1 %v5725_v52 }
  0xc6   : > { %1175 = vmatprep.mubr.bf16.mxu0 %v6366_v2  ;;  %1928 = vmatprep.mubr.bf16.mxu1 %v6366_v2 }
  0xcd   : > { %1176 = vmatmul.mubr.bf16.gmra.mxu0 %v5726_v53  ;;  %1929 = vmatmul.mubr.bf16.gmra.mxu1 %v5726_v53 }
  0xce   : > { %1185 = vmatprep.mubr.bf16.mxu0 %v6366_v2  ;;  %1938 = vmatprep.mubr.bf16.mxu1 %v6366_v2 }
  0xd5   : > { %1186 = vmatmul.mubr.bf16.gmra.mxu0 %v5727_v54  ;;  %1939 = vmatmul.mubr.bf16.gmra.mxu1 %v5727_v54 }
  0xd6   : > { %1195 = vmatprep.mubr.bf16.mxu0 %v6366_v2  ;;  %1948 = vmatprep.mubr.bf16.mxu1 %v6366_v2 }
  0xdd   : > { %1196 = vmatmul.mubr.bf16.gmra.mxu0 %v5728_v55  ;;  %1949 = vmatmul.mubr.bf16.gmra.mxu1 %v5728_v55 }
  0xde   : > { %1205 = vmatprep.mubr.bf16.mxu0 %v6366_v2  ;;  %1958 = vmatprep.mubr.bf16.mxu1 %v6366_v2 }
  0xe5   : > { %1206 = vmatmul.mubr.bf16.gmra.mxu0 %v5729_v56  ;;  %1959 = vmatmul.mubr.bf16.gmra.mxu1 %v5729_v56 }
  0xe6   : > { %1215 = vmatprep.mubr.bf16.mxu0 %v6366_v2  ;;  %1968 = vmatprep.mubr.bf16.mxu1 %v6366_v2 }
  0xed   : > { %v977_v58 = vpop.f32.mrf.mxu0  ;;  %1216 = vmatmul.mubr.bf16.gmra.mxu0 %v5730_v57  ;;  %v1730_v59 = vpop.f32.mrf.mxu1  ;;  %1969 = vmatmul.mubr.bf16.gmra.mxu1 %v5730_v57 }
  0xee   : > { %1225 = vmatprep.mubr.bf16.mxu0 %v6366_v2  ;;  %1978 = vmatprep.mubr.bf16.mxu1 %v6366_v2 }
  0xef   : > { %v979_v60 = vpop.f32.mrf.mxu0  ;;  %v1732_v61 = vpop.f32.mrf.mxu1 }
  0xf0   : > { %v2449_v62 = vmax.f32 %v977_v58, %v979_v60  ;;  %v2593_v63 = vmax.f32 %v1730_v59, %v1732_v61 }
  0xf1   : > { %v981_v1 = vpop.f32.mrf.mxu0  ;;  %v1734_v3 = vpop.f32.mrf.mxu1 }
  0xf2   : > { %v2737_v5 = vmax.f32 %v2449_v62, %v2593_v63  ;;  %v5734_v63 = vld [vmem:[%s6480_s17 + $0xe0] sm:$0xff]  }
  0xf3   : > { %v983_v6 = vpop.f32.mrf.mxu0  ;;  %v1736_v7 = vpop.f32.mrf.mxu1 }
  0xf4   : > { %v2888_v8 = vadd.f32 %v6581_v0, %v2737_v5  ;;  %v2450_v9 = vmax.f32 %v981_v1, %v983_v6  ;;  %v2594_v10 = vmax.f32 %v1734_v3, %v1736_v7 }
  0xf5   : > { %v987_v11 = vpop.f32.mrf.mxu0  ;;  %1226 = vmatmul.mubr.bf16.gmra.mxu0 %v5731_v4  ;;  %v1740_v12 = vpop.f32.mrf.mxu1  ;;  %1979 = vmatmul.mubr.bf16.gmra.mxu1 %v5731_v4 }
  0xf6   : > { %v4784_v13 = vmul.f32 -1.442695, %v2888_v8  ;;  %v2738_v14 = vmax.f32 %v2450_v9, %v2594_v10  ;;  %1235 = vmatprep.mubr.bf16.mxu0 %v6366_v2  ;;  %1988 = vmatprep.mubr.bf16.mxu1 %v6366_v2 }
  0xf7   : > { %v989_v15 = vpop.f32.mrf.mxu0  ;;  %v1742_v16 = vpop.f32.mrf.mxu1 }
  0xf8   : > { %5778 = vpow2.f32 %v4784_v13  ;;  %v2889_v17 = vadd.f32 %v6581_v0, %v2738_v14  ;;  %v2451_v18 = vmax.f32 %v987_v11, %v989_v15  ;;  %v2595_v19 = vmax.f32 %v1740_v12, %v1742_v16 }
  0xf9   : > { %v991_v20 = vpop.f32.mrf.mxu0  ;;  %v1744_v21 = vpop.f32.mrf.mxu1 }
  0xfa   : > { %v4785_v23 = vmul.f32 -1.442695, %v2889_v17  ;;  %v2739_v24 = vmax.f32 %v2451_v18, %v2595_v19 }
  0xfb   : > { %v993_v25 = vpop.f32.mrf.mxu0  ;;  %v1746_v26 = vpop.f32.mrf.mxu1 }
  0xfc   : > { %5780 = vpow2.f32 %v4785_v23  ;;  %v2890_v27 = vadd.f32 %v6581_v0, %v2739_v24  ;;  %v2452_v28 = vmax.f32 %v991_v20, %v993_v25  ;;  %v2596_v29 = vmax.f32 %v1744_v21, %v1746_v26  ;;  %v5735_v24 = vld [vmem:[%s6480_s17 + $0xe8] sm:$0xff]  }
  0xfd   : > { %v997_v30 = vpop.f32.mrf.mxu0  ;;  %1236 = vmatmul.mubr.bf16.gmra.mxu0 %v5732_v22  ;;  %v1750_v31 = vpop.f32.mrf.mxu1  ;;  %1989 = vmatmul.mubr.bf16.gmra.mxu1 %v5732_v22 }
  0xfe   : > { %v4786_v32 = vmul.f32 -1.442695, %v2890_v27  ;;  %v2740_v33 = vmax.f32 %v2452_v28, %v2596_v29  ;;  %1245 = vmatprep.mubr.bf16.mxu0 %v6366_v2  ;;  %1998 = vmatprep.mubr.bf16.mxu1 %v6366_v2 }
  0xff   : > { %v999_v34 = vpop.f32.mrf.mxu0  ;;  %v1752_v35 = vpop.f32.mrf.mxu1 }
 0x100   : > { %5782 = vpow2.f32 %v4786_v32  ;;  %v2891_v36 = vadd.f32 %v6581_v0, %v2740_v33  ;;  %v2453_v37 = vmax.f32 %v997_v30, %v999_v34  ;;  %v2597_v38 = vmax.f32 %v1750_v31, %v1752_v35 }
 0x101   : > { %v1001_v39 = vpop.f32.mrf.mxu0  ;;  %v1754_v40 = vpop.f32.mrf.mxu1 }
 0x102   : > { %v4787_v42 = vmul.f32 -1.442695, %v2891_v36  ;;  %v2741_v43 = vmax.f32 %v2453_v37, %v2597_v38 }
 0x103   : > { %v1003_v44 = vpop.f32.mrf.mxu0  ;;  %v1756_v45 = vpop.f32.mrf.mxu1 }
 0x104   : > { %5784 = vpow2.f32 %v4787_v42  ;;  %v2892_v46 = vadd.f32 %v6581_v0, %v2741_v43  ;;  %v2454_v47 = vmax.f32 %v1001_v39, %v1003_v44  ;;  %v2598_v48 = vmax.f32 %v1754_v40, %v1756_v45 }
 0x105   : > { %v5779_v49 = vpop.eup %5778  ;;  %v1007_v50 = vpop.f32.mrf.mxu0  ;;  %1246 = vmatmul.mubr.bf16.gmra.mxu0 %v5733_v41  ;;  %1999 = vmatmul.mubr.bf16.gmra.mxu1 %v5733_v41 }
 0x106   : > { %v1760_v51 = vpop.f32.mrf.mxu1  ;;  %v4788_v52 = vmul.f32 -1.442695, %v2892_v46  ;;  %v2742_v53 = vmax.f32 %v2454_v47, %v2598_v48  ;;  %1255 = vmatprep.mubr.bf16.mxu0 %v6366_v2  ;;  %2008 = vmatprep.mubr.bf16.mxu1 %v6366_v2  ;;  %v3464_v54 = vadd.f32 1.0, %v5779_v49  ;;  %v5736_v48 = vld [vmem:[%s6480_s17 + $0xf0] sm:$0xff]  }
 0x107   : > { %v1009_v55 = vpop.f32.mrf.mxu0 }
 0x108   : > { %v1762_v56 = vpop.f32.mrf.mxu1  ;;  %v2893_v57 = vadd.f32 %v6581_v0, %v2742_v53  ;;  %v2455_v58 = vmax.f32 %v1007_v50, %v1009_v55  ;;  %5786 = vpow2.f32 %v4788_v52 }
 0x109   : > { %v2599_v59 = vmax.f32 %v1760_v51, %v1762_v56  ;;  %v5781_v60 = vpop.eup %5780  ;;  %v1011_v61 = vpop.f32.mrf.mxu0  ;;  %5788 = vrcp.f32 %v3464_v54 }
 0x10a   : > { %v1764_v62 = vpop.f32.mrf.mxu1  ;;  %v3465_v1 = vadd.f32 1.0, %v5781_v60  ;;  %v4789_v3 = vmul.f32 -1.442695, %v2893_v57 }
 0x10b   : > { %v2743_v4 = vmax.f32 %v2455_v58, %v2599_v59  ;;  %v1013_v5 = vpop.f32.mrf.mxu0 }
 0x10c   : > { %v1766_v6 = vpop.f32.mrf.mxu1  ;;  %5790 = vrcp.f32 %v3465_v1  ;;  %v2456_v8 = vmax.f32 %v1011_v61, %v1013_v5 }
 0x10d   : > { %v2894_v7 = vadd.f32 %v6581_v0, %v2743_v4  ;;  %v2600_v9 = vmax.f32 %v1764_v62, %v1766_v6  ;;  %v5783_v10 = vpop.eup %5782  ;;  %5792 = vpow2.f32 %v4789_v3  ;;  %v1017_v11 = vpop.f32.mrf.mxu0  ;;  %1256 = vmatmul.mubr.bf16.gmra.mxu0 %v5734_v63  ;;  %2009 = vmatmul.mubr.bf16.gmra.mxu1 %v5734_v63 }
 0x10e   : > { %v1770_v12 = vpop.f32.mrf.mxu1  ;;  %1265 = vmatprep.mubr.bf16.mxu0 %v6366_v2  ;;  %2018 = vmatprep.mubr.bf16.mxu1 %v6366_v2  ;;  %v3466_v15 = vadd.f32 1.0, %v5783_v10 }
 0x10f   : > { %v4790_v13 = vmul.f32 -1.442695, %v2894_v7  ;;  %v2744_v14 = vmax.f32 %v2456_v8, %v2600_v9  ;;  %v1019_v16 = vpop.f32.mrf.mxu0 }
 0x110   : > { %v1772_v17 = vpop.f32.mrf.mxu1  ;;  %v2457_v19 = vmax.f32 %v1017_v11, %v1019_v16 }
 0x111   : > { %v2895_v18 = vadd.f32 %v6581_v0, %v2744_v14  ;;  %v2601_v20 = vmax.f32 %v1770_v12, %v1772_v17  ;;  %v5785_v21 = vpop.eup %5784  ;;  %5794 = vpow2.f32 %v4790_v13  ;;  %v1021_v22 = vpop.f32.mrf.mxu0  ;;  %v5737_v12 = vld [vmem:[%s6480_s17 + $0xf8] sm:$0xff]  }
 0x112   : > { %v1774_v23 = vpop.f32.mrf.mxu1  ;;  %v3467_v25 = vadd.f32 1.0, %v5785_v21  ;;  %5796 = vrcp.f32 %v3466_v15 }
 0x113   : > { %v4791_v26 = vmul.f32 -1.442695, %v2895_v18  ;;  %v2745_v27 = vmax.f32 %v2457_v19, %v2601_v20  ;;  %v1023_v28 = vpop.f32.mrf.mxu0 }
 0x114   : > { %v1776_v29 = vpop.f32.mrf.mxu1  ;;  %5798 = vrcp.f32 %v3467_v25  ;;  %v2458_v31 = vmax.f32 %v1021_v22, %v1023_v28 }
 0x115   : > { %v2896_v30 = vadd.f32 %v6581_v0, %v2745_v27  ;;  %v2602_v32 = vmax.f32 %v1774_v23, %v1776_v29  ;;  %5800 = vpow2.f32 %v4791_v26  ;;  %v1027_v33 = vpop.f32.mrf.mxu0  ;;  %1266 = vmatmul.mubr.bf16.gmra.mxu0 %v5735_v24  ;;  %2019 = vmatmul.mubr.bf16.gmra.mxu1 %v5735_v24  ;;  %v5787_v35 = vpop.eup %5786 }
 0x116   : > { %v1780_v34 = vpop.f32.mrf.mxu1  ;;  %1275 = vmatprep.mubr.bf16.mxu0 %v6366_v2  ;;  %2028 = vmatprep.mubr.bf16.mxu1 %v6366_v2  ;;  %v3468_v38 = vadd.f32 1.0, %v5787_v35  ;;  %v5789_v41 = vpop.eup %5788 }
 0x117   : > { %v4792_v36 = vmul.f32 -1.442695, %v2896_v30  ;;  %v2746_v37 = vmax.f32 %v2458_v31, %v2602_v32  ;;  %v1029_v39 = vpop.f32.mrf.mxu0 }
 0x118   : > { %v1782_v40 = vpop.f32.mrf.mxu1  ;;  %v2459_v43 = vmax.f32 %v1027_v33, %v1029_v39 }
 0x119   : > { %5802 = vpow2.f32 %v4792_v36  ;;  %v2897_v42 = vadd.f32 %v6581_v0, %v2746_v37  ;;  %v2603_v44 = vmax.f32 %v1780_v34, %v1782_v40  ;;  %v5791_v45 = vpop.eup %5790  ;;  %v1031_v46 = vpop.f32.mrf.mxu0 }
 0x11a   : > { %v1784_v47 = vpop.f32.mrf.mxu1  ;;  %v5793_v49 = vpop.eup %5792  ;;  %v5221_v50 = vpack.c.bf16 %v5791_v45, %v5789_v41  ;;  %5804 = vrcp.f32 %v3468_v38  ;;  %v5738_v38 = vld [vmem:[%s6480_s17 + $0x100] sm:$0xff]  }
 0x11b   : > { %v4793_v51 = vmul.f32 -1.442695, %v2897_v42  ;;  %v2747_v52 = vmax.f32 %v2459_v43, %v2603_v44  ;;  %v3469_v53 = vadd.f32 1.0, %v5793_v49  ;;  %v1033_v54 = vpop.f32.mrf.mxu0 }
 0x11c   : > { %v1786_v55 = vpop.f32.mrf.mxu1  ;;  %5222 = vst [vmem:[%s6613_s11] sm:$0xff] %v5221_v50   ;;  %v2460_v57 = vmax.f32 %v1031_v46, %v1033_v54 }
 0x11d   : > { %5806 = vpow2.f32 %v4793_v51  ;;  %v2898_v56 = vadd.f32 %v6581_v0, %v2747_v52  ;;  %v2604_v58 = vmax.f32 %v1784_v47, %v1786_v55  ;;  %v1037_v59 = vpop.f32.mrf.mxu0  ;;  %1276 = vmatmul.mubr.bf16.gmra.mxu0 %v5736_v48  ;;  %2029 = vmatmul.mubr.bf16.gmra.mxu1 %v5736_v48 }
 0x11e   : > { %5808 = vrcp.f32 %v3469_v53  ;;  %v1790_v60 = vpop.f32.mrf.mxu1  ;;  %v5795_v61 = vpop.eup %5794  ;;  %1285 = vmatprep.mubr.bf16.mxu0 %v6366_v2  ;;  %2038 = vmatprep.mubr.bf16.mxu1 %v6366_v2 }
 0x11f   : > { %v4794_v62 = vmul.f32 -1.442695, %v2898_v56  ;;  %v2748_v63 = vmax.f32 %v2460_v57, %v2604_v58  ;;  %v3470_v1 = vadd.f32 1.0, %v5795_v61  ;;  %v1039_v3 = vpop.f32.mrf.mxu0  ;;  %v5797_v5 = vpop.eup %5796 }
 0x120   : > { %v1792_v4 = vpop.f32.mrf.mxu1  ;;  %v2461_v7 = vmax.f32 %v1037_v59, %v1039_v3 }
 0x121   : > { %5810 = vpow2.f32 %v4794_v62  ;;  %v2899_v6 = vadd.f32 %v6581_v0, %v2748_v63  ;;  %v2605_v8 = vmax.f32 %v1790_v60, %v1792_v4  ;;  %v5799_v9 = vpop.eup %5798  ;;  %v1041_v10 = vpop.f32.mrf.mxu0 }
 0x122   : > { %v1794_v11 = vpop.f32.mrf.mxu1  ;;  %v5801_v13 = vpop.eup %5800  ;;  %v5226_v14 = vpack.c.bf16 %v5799_v9, %v5797_v5  ;;  %5812 = vrcp.f32 %v3470_v1  ;;  %v5739_v1 = vld [vmem:[%s6480_s17 + $0x108] sm:$0xff]  }
 0x123   : > { %v4795_v15 = vmul.f32 -1.442695, %v2899_v6  ;;  %v2749_v16 = vmax.f32 %v2461_v7, %v2605_v8  ;;  %v3471_v17 = vadd.f32 1.0, %v5801_v13  ;;  %v1043_v18 = vpop.f32.mrf.mxu0 }
 0x124   : > { %v1796_v19 = vpop.f32.mrf.mxu1  ;;  %5578 = vst [vmem:[%s6613_s11 + $0x8] sm:$0xff] %v5226_v14   ;;  %v2462_v21 = vmax.f32 %v1041_v10, %v1043_v18 }
 0x125   : > { %5814 = vpow2.f32 %v4795_v15  ;;  %v2900_v20 = vadd.f32 %v6581_v0, %v2749_v16  ;;  %v2606_v22 = vmax.f32 %v1794_v11, %v1796_v19  ;;  %v1047_v24 = vpop.f32.mrf.mxu0  ;;  %1286 = vmatmul.mubr.bf16.gmra.mxu0 %v5737_v12  ;;  %2039 = vmatmul.mubr.bf16.gmra.mxu1 %v5737_v12 }
 0x126   : > { %v5803_v23 = vpop.eup %5802  ;;  %5816 = vrcp.f32 %v3471_v17  ;;  %v1800_v25 = vpop.f32.mrf.mxu1  ;;  %1295 = vmatprep.mubr.bf16.mxu0 %v6366_v2  ;;  %2048 = vmatprep.mubr.bf16.mxu1 %v6366_v2 }
 0x127   : > { %v4796_v26 = vmul.f32 -1.442695, %v2900_v20  ;;  %v2750_v27 = vmax.f32 %v2462_v21, %v2606_v22  ;;  %v3472_v28 = vadd.f32 1.0, %v5803_v23  ;;  %v1049_v29 = vpop.f32.mrf.mxu0  ;;  %v5805_v31 = vpop.eup %5804 }
 0x128   : > { %v1802_v30 = vpop.f32.mrf.mxu1  ;;  %v2463_v33 = vmax.f32 %v1047_v24, %v1049_v29 }
 0x129   : > { %v2901_v32 = vadd.f32 %v6581_v0, %v2750_v27  ;;  %v2607_v34 = vmax.f32 %v1800_v25, %v1802_v30  ;;  %5818 = vpow2.f32 %v4796_v26  ;;  %v1051_v36 = vpop.f32.mrf.mxu0 }
 0x12a   : > { %v5807_v35 = vpop.eup %5806  ;;  %v1804_v37 = vpop.f32.mrf.mxu1  ;;  %5820 = vrcp.f32 %v3472_v28  ;;  %v5740_v28 = vld [vmem:[%s6480_s17 + $0x110] sm:$0xff]  }
 0x12b   : > { %v5809_v39 = vpop.eup %5808  ;;  %v3473_v40 = vadd.f32 1.0, %v5807_v35  ;;  %v4797_v41 = vmul.f32 -1.442695, %v2901_v32  ;;  %v2751_v42 = vmax.f32 %v2463_v33, %v2607_v34  ;;  %v1053_v44 = vpop.f32.mrf.mxu0 }
 0x12c   : > { %v5231_v43 = vpack.c.bf16 %v5809_v39, %v5805_v31  ;;  %v1806_v45 = vpop.f32.mrf.mxu1  ;;  %v2464_v47 = vmax.f32 %v1051_v36, %v1053_v44 }
 0x12d   : > { %5822 = vrcp.f32 %v3473_v40  ;;  %v2902_v46 = vadd.f32 %v6581_v0, %v2751_v42  ;;  %v2608_v48 = vmax.f32 %v1804_v37, %v1806_v45  ;;  %v1057_v50 = vpop.f32.mrf.mxu0  ;;  %1296 = vmatmul.mubr.bf16.gmra.mxu0 %v5738_v38  ;;  %2049 = vmatmul.mubr.bf16.gmra.mxu1 %v5738_v38 }
 0x12e   : > { %v5811_v49 = vpop.eup %5810  ;;  %5579 = vst [vmem:[%s6613_s11 + $0x10] sm:$0xff] %v5231_v43   ;;  %5824 = vpow2.f32 %v4797_v41  ;;  %v1810_v51 = vpop.f32.mrf.mxu1  ;;  %1305 = vmatprep.mubr.bf16.mxu0 %v6366_v2  ;;  %2058 = vmatprep.mubr.bf16.mxu1 %v6366_v2 }
 0x12f   : > { %v4798_v52 = vmul.f32 -1.442695, %v2902_v46  ;;  %v2752_v53 = vmax.f32 %v2464_v47, %v2608_v48  ;;  %v3474_v54 = vadd.f32 1.0, %v5811_v49  ;;  %v1059_v55 = vpop.f32.mrf.mxu0  ;;  %v5813_v57 = vpop.eup %5812 }
 0x130   : > { %v1812_v56 = vpop.f32.mrf.mxu1  ;;  %v2465_v59 = vmax.f32 %v1057_v50, %v1059_v55 }
 0x131   : > { %v2903_v58 = vadd.f32 %v6581_v0, %v2752_v53  ;;  %v2609_v60 = vmax.f32 %v1810_v51, %v1812_v56  ;;  %5826 = vpow2.f32 %v4798_v52  ;;  %v1061_v62 = vpop.f32.mrf.mxu0 }
 0x132   : > { %v5815_v61 = vpop.eup %5814  ;;  %v1814_v63 = vpop.f32.mrf.mxu1  ;;  %5828 = vrcp.f32 %v3474_v54  ;;  %v5741_v54 = vld [vmem:[%s6480_s17 + $0x118] sm:$0xff]  }
 0x133   : > { %v5817_v3 = vpop.eup %5816  ;;  %v3475_v4 = vadd.f32 1.0, %v5815_v61  ;;  %v4799_v5 = vmul.f32 -1.442695, %v2903_v58  ;;  %v2753_v6 = vmax.f32 %v2465_v59, %v2609_v60  ;;  %v1063_v8 = vpop.f32.mrf.mxu0 }
 0x134   : > { %v5236_v7 = vpack.c.bf16 %v5817_v3, %v5813_v57  ;;  %v1816_v9 = vpop.f32.mrf.mxu1  ;;  %v2466_v11 = vmax.f32 %v1061_v62, %v1063_v8 }
 0x135   : > { %5830 = vrcp.f32 %v3475_v4  ;;  %v2904_v10 = vadd.f32 %v6581_v0, %v2753_v6  ;;  %v2610_v12 = vmax.f32 %v1814_v63, %v1816_v9  ;;  %v1067_v13 = vpop.f32.mrf.mxu0  ;;  %1306 = vmatmul.mubr.bf16.gmra.mxu0 %v5739_v1  ;;  %2059 = vmatmul.mubr.bf16.gmra.mxu1 %v5739_v1 }
 0x136   : > { %5580 = vst [vmem:[%s6613_s11 + $0x18] sm:$0xff] %v5236_v7   ;;  %5832 = vpow2.f32 %v4799_v5  ;;  %v1820_v14 = vpop.f32.mrf.mxu1  ;;  %v5819_v15 = vpop.eup %5818  ;;  %1315 = vmatprep.mubr.bf16.mxu0 %v6366_v2  ;;  %2068 = vmatprep.mubr.bf16.mxu1 %v6366_v2 }
 0x137   : > { %v4800_v16 = vmul.f32 -1.442695, %v2904_v10  ;;  %v2754_v17 = vmax.f32 %v2466_v11, %v2610_v12  ;;  %v3476_v18 = vadd.f32 1.0, %v5819_v15  ;;  %v1069_v19 = vpop.f32.mrf.mxu0  ;;  %v5821_v21 = vpop.eup %5820 }
 0x138   : > { %v1822_v20 = vpop.f32.mrf.mxu1  ;;  %v2467_v23 = vmax.f32 %v1067_v13, %v1069_v19 }
 0x139   : > { %5834 = vpow2.f32 %v4800_v16  ;;  %v2905_v22 = vadd.f32 %v6581_v0, %v2754_v17  ;;  %v2611_v24 = vmax.f32 %v1820_v14, %v1822_v20  ;;  %v1071_v26 = vpop.f32.mrf.mxu0 }
 0x13a   : > { %v5823_v25 = vpop.eup %5822  ;;  %v1824_v27 = vpop.f32.mrf.mxu1  ;;  %5836 = vrcp.f32 %v3476_v18  ;;  %v5742_v18 = vld [vmem:[%s6480_s17 + $0x120] sm:$0xff]  }
 0x13b   : > { %v5825_v29 = vpop.eup %5824  ;;  %v5241_v30 = vpack.c.bf16 %v5823_v25, %v5821_v21  ;;  %v4801_v31 = vmul.f32 -1.442695, %v2905_v22  ;;  %v2755_v32 = vmax.f32 %v2467_v23, %v2611_v24  ;;  %v1073_v34 = vpop.f32.mrf.mxu0 }
 0x13c   : > { %v3477_v33 = vadd.f32 1.0, %v5825_v29  ;;  %v1826_v35 = vpop.f32.mrf.mxu1  ;;  %v2468_v37 = vmax.f32 %v1071_v26, %v1073_v34 }
 0x13d   : > { %5581 = vst [vmem:[%s6613_s11 + $0x20] sm:$0xff] %v5241_v30   ;;  %5838 = vpow2.f32 %v4801_v31  ;;  %v2906_v36 = vadd.f32 %v6581_v0, %v2755_v32  ;;  %v2612_v38 = vmax.f32 %v1824_v27, %v1826_v35  ;;  %v1077_v39 = vpop.f32.mrf.mxu0  ;;  %1316 = vmatmul.mubr.bf16.gmra.mxu0 %v5740_v28  ;;  %2069 = vmatmul.mubr.bf16.gmra.mxu1 %v5740_v28 }
 0x13e   : > { %5840 = vrcp.f32 %v3477_v33  ;;  %v1830_v40 = vpop.f32.mrf.mxu1  ;;  %v5827_v41 = vpop.eup %5826  ;;  %1325 = vmatprep.mubr.bf16.mxu0 %v6366_v2  ;;  %2078 = vmatprep.mubr.bf16.mxu1 %v6366_v2 }
 0x13f   : > { %v4802_v42 = vmul.f32 -1.442695, %v2906_v36  ;;  %v2756_v43 = vmax.f32 %v2468_v37, %v2612_v38  ;;  %v3478_v44 = vadd.f32 1.0, %v5827_v41  ;;  %v1079_v45 = vpop.f32.mrf.mxu0  ;;  %v5829_v47 = vpop.eup %5828 }
 0x140   : > { %v1832_v46 = vpop.f32.mrf.mxu1  ;;  %v2469_v49 = vmax.f32 %v1077_v39, %v1079_v45 }
 0x141   : > { %5842 = vpow2.f32 %v4802_v42  ;;  %v2907_v48 = vadd.f32 %v6581_v0, %v2756_v43  ;;  %v2613_v50 = vmax.f32 %v1830_v40, %v1832_v46  ;;  %v1081_v52 = vpop.f32.mrf.mxu0 }
 0x142   : > { %v5831_v51 = vpop.eup %5830  ;;  %v1834_v53 = vpop.f32.mrf.mxu1  ;;  %5844 = vrcp.f32 %v3478_v44  ;;  %v5743_v44 = vld [vmem:[%s6480_s17 + $0x128] sm:$0xff]  }
 0x143   : > { %v5833_v55 = vpop.eup %5832  ;;  %v5246_v56 = vpack.c.bf16 %v5831_v51, %v5829_v47  ;;  %v4803_v57 = vmul.f32 -1.442695, %v2907_v48  ;;  %v2757_v58 = vmax.f32 %v2469_v49, %v2613_v50  ;;  %v1083_v60 = vpop.f32.mrf.mxu0 }
 0x144   : > { %v3479_v59 = vadd.f32 1.0, %v5833_v55  ;;  %v1836_v61 = vpop.f32.mrf.mxu1  ;;  %v2470_v63 = vmax.f32 %v1081_v52, %v1083_v60 }
 0x145   : > { %5582 = vst [vmem:[%s6613_s11 + $0x28] sm:$0xff] %v5246_v56   ;;  %5846 = vpow2.f32 %v4803_v57  ;;  %v2908_v62 = vadd.f32 %v6581_v0, %v2757_v58  ;;  %v2614_v1 = vmax.f32 %v1834_v53, %v1836_v61  ;;  %v1087_v4 = vpop.f32.mrf.mxu0  ;;  %1326 = vmatmul.mubr.bf16.gmra.mxu0 %v5741_v54  ;;  %2079 = vmatmul.mubr.bf16.gmra.mxu1 %v5741_v54 }
 0x146   : > { %v5835_v3 = vpop.eup %5834  ;;  %5848 = vrcp.f32 %v3479_v59  ;;  %v1840_v5 = vpop.f32.mrf.mxu1  ;;  %1335 = vmatprep.mubr.bf16.mxu0 %v6366_v2  ;;  %2088 = vmatprep.mubr.bf16.mxu1 %v6366_v2 }
 0x147   : > { %v4804_v6 = vmul.f32 -1.442695, %v2908_v62  ;;  %v2758_v7 = vmax.f32 %v2470_v63, %v2614_v1  ;;  %v3480_v8 = vadd.f32 1.0, %v5835_v3  ;;  %v1089_v9 = vpop.f32.mrf.mxu0  ;;  %v5837_v11 = vpop.eup %5836 }
 0x148   : > { %v1842_v10 = vpop.f32.mrf.mxu1  ;;  %v2471_v13 = vmax.f32 %v1087_v4, %v1089_v9 }
 0x149   : > { %v2909_v12 = vadd.f32 %v6581_v0, %v2758_v7  ;;  %v2615_v14 = vmax.f32 %v1840_v5, %v1842_v10  ;;  %5850 = vpow2.f32 %v4804_v6  ;;  %v1091_v16 = vpop.f32.mrf.mxu0 }
 0x14a   : > { %v5839_v15 = vpop.eup %5838  ;;  %v1844_v17 = vpop.f32.mrf.mxu1  ;;  %5852 = vrcp.f32 %v3480_v8  ;;  %v5744_v8 = vld [vmem:[%s6480_s17 + $0x130] sm:$0xff]  }
 0x14b   : > { %v5841_v19 = vpop.eup %5840  ;;  %v3481_v20 = vadd.f32 1.0, %v5839_v15  ;;  %v4805_v21 = vmul.f32 -1.442695, %v2909_v12  ;;  %v2759_v22 = vmax.f32 %v2471_v13, %v2615_v14  ;;  %v1093_v24 = vpop.f32.mrf.mxu0 }
 0x14c   : > { %v5251_v23 = vpack.c.bf16 %v5841_v19, %v5837_v11  ;;  %v1846_v25 = vpop.f32.mrf.mxu1  ;;  %v2472_v27 = vmax.f32 %v1091_v16, %v1093_v24 }
 0x14d   : > { %5854 = vrcp.f32 %v3481_v20  ;;  %v2910_v26 = vadd.f32 %v6581_v0, %v2759_v22  ;;  %v2616_v28 = vmax.f32 %v1844_v17, %v1846_v25  ;;  %v1097_v30 = vpop.f32.mrf.mxu0  ;;  %1336 = vmatmul.mubr.bf16.gmra.mxu0 %v5742_v18  ;;  %2089 = vmatmul.mubr.bf16.gmra.mxu1 %v5742_v18 }
 0x14e   : > { %v5843_v29 = vpop.eup %5842  ;;  %5583 = vst [vmem:[%s6613_s11 + $0x30] sm:$0xff] %v5251_v23   ;;  %5856 = vpow2.f32 %v4805_v21  ;;  %v1850_v31 = vpop.f32.mrf.mxu1  ;;  %1345 = vmatprep.mubr.bf16.mxu0 %v6366_v2  ;;  %2098 = vmatprep.mubr.bf16.mxu1 %v6366_v2 }
 0x14f   : > { %v4806_v32 = vmul.f32 -1.442695, %v2910_v26  ;;  %v2760_v33 = vmax.f32 %v2472_v27, %v2616_v28  ;;  %v3482_v34 = vadd.f32 1.0, %v5843_v29  ;;  %v1099_v35 = vpop.f32.mrf.mxu0  ;;  %v5845_v37 = vpop.eup %5844 }
 0x150   : > { %v1852_v36 = vpop.f32.mrf.mxu1  ;;  %v2473_v39 = vmax.f32 %v1097_v30, %v1099_v35 }
 0x151   : > { %v2911_v38 = vadd.f32 %v6581_v0, %v2760_v33  ;;  %v2617_v40 = vmax.f32 %v1850_v31, %v1852_v36  ;;  %5858 = vpow2.f32 %v4806_v32  ;;  %v1101_v42 = vpop.f32.mrf.mxu0 }
 0x152   : > { %v5847_v41 = vpop.eup %5846  ;;  %v1854_v43 = vpop.f32.mrf.mxu1  ;;  %5860 = vrcp.f32 %v3482_v34  ;;  %v5745_v34 = vld [vmem:[%s6480_s17 + $0x138] sm:$0xff]  }
 0x153   : > { %v5849_v45 = vpop.eup %5848  ;;  %v3483_v46 = vadd.f32 1.0, %v5847_v41  ;;  %v4807_v47 = vmul.f32 -1.442695, %v2911_v38  ;;  %v2761_v48 = vmax.f32 %v2473_v39, %v2617_v40  ;;  %v1103_v50 = vpop.f32.mrf.mxu0 }
 0x154   : > { %v5256_v49 = vpack.c.bf16 %v5849_v45, %v5845_v37  ;;  %v1856_v51 = vpop.f32.mrf.mxu1  ;;  %v2474_v53 = vmax.f32 %v1101_v42, %v1103_v50 }
 0x155   : > { %5862 = vrcp.f32 %v3483_v46  ;;  %v2912_v52 = vadd.f32 %v6581_v0, %v2761_v48  ;;  %v2618_v54 = vmax.f32 %v1854_v43, %v1856_v51  ;;  %v1107_v55 = vpop.f32.mrf.mxu0  ;;  %1346 = vmatmul.mubr.bf16.gmra.mxu0 %v5743_v44  ;;  %2099 = vmatmul.mubr.bf16.gmra.mxu1 %v5743_v44 }
 0x156   : > { %5584 = vst [vmem:[%s6613_s11 + $0x38] sm:$0xff] %v5256_v49   ;;  %5864 = vpow2.f32 %v4807_v47  ;;  %v1860_v56 = vpop.f32.mrf.mxu1  ;;  %v5851_v57 = vpop.eup %5850  ;;  %1355 = vmatprep.mubr.bf16.mxu0 %v6366_v2  ;;  %2108 = vmatprep.mubr.bf16.mxu1 %v6366_v2 }
 0x157   : > { %v4808_v58 = vmul.f32 -1.442695, %v2912_v52  ;;  %v2762_v59 = vmax.f32 %v2474_v53, %v2618_v54  ;;  %v3484_v60 = vadd.f32 1.0, %v5851_v57  ;;  %v1109_v61 = vpop.f32.mrf.mxu0  ;;  %v5853_v63 = vpop.eup %5852 }
 0x158   : > { %v1862_v62 = vpop.f32.mrf.mxu1  ;;  %v2475_v3 = vmax.f32 %v1107_v55, %v1109_v61 }
 0x159   : > { %5866 = vpow2.f32 %v4808_v58  ;;  %v2913_v1 = vadd.f32 %v6581_v0, %v2762_v59  ;;  %v2619_v4 = vmax.f32 %v1860_v56, %v1862_v62  ;;  %v1111_v6 = vpop.f32.mrf.mxu0 }
 0x15a   : > { %v5855_v5 = vpop.eup %5854  ;;  %v1864_v7 = vpop.f32.mrf.mxu1  ;;  %5868 = vrcp.f32 %v3484_v60  ;;  %v5746_v60 = vld [vmem:[%s6480_s17 + $0x140] sm:$0xff]  }
 0x15b   : > { %v5857_v9 = vpop.eup %5856  ;;  %v5261_v10 = vpack.c.bf16 %v5855_v5, %v5853_v63  ;;  %v4809_v11 = vmul.f32 -1.442695, %v2913_v1  ;;  %v2763_v12 = vmax.f32 %v2475_v3, %v2619_v4  ;;  %v1113_v14 = vpop.f32.mrf.mxu0 }
 0x15c   : > { %v3485_v13 = vadd.f32 1.0, %v5857_v9  ;;  %v1866_v15 = vpop.f32.mrf.mxu1  ;;  %v2476_v17 = vmax.f32 %v1111_v6, %v1113_v14 }
 0x15d   : > { %5585 = vst [vmem:[%s6613_s11 + $0x40] sm:$0xff] %v5261_v10   ;;  %5870 = vpow2.f32 %v4809_v11  ;;  %v2914_v16 = vadd.f32 %v6581_v0, %v2763_v12  ;;  %v2620_v18 = vmax.f32 %v1864_v7, %v1866_v15  ;;  %v1117_v19 = vpop.f32.mrf.mxu0  ;;  %1356 = vmatmul.mubr.bf16.gmra.mxu0 %v5744_v8  ;;  %2109 = vmatmul.mubr.bf16.gmra.mxu1 %v5744_v8 }
 0x15e   : > { %5872 = vrcp.f32 %v3485_v13  ;;  %v1870_v20 = vpop.f32.mrf.mxu1  ;;  %v5859_v21 = vpop.eup %5858  ;;  %1365 = vmatprep.mubr.bf16.mxu0 %v6366_v2  ;;  %2118 = vmatprep.mubr.bf16.mxu1 %v6366_v2 }
 0x15f   : > { %v4810_v22 = vmul.f32 -1.442695, %v2914_v16  ;;  %v2764_v23 = vmax.f32 %v2476_v17, %v2620_v18  ;;  %v3486_v24 = vadd.f32 1.0, %v5859_v21  ;;  %v1119_v25 = vpop.f32.mrf.mxu0  ;;  %v5861_v27 = vpop.eup %5860  ;;  %v6683_v17 = vld [vmem:[%s6970_s2] ss:$0 sm:$0xff] }
 0x160   : > { %v1872_v26 = vpop.f32.mrf.mxu1  ;;  %v2477_v29 = vmax.f32 %v1117_v19, %v1119_v25 }
 0x161   : > { %5874 = vpow2.f32 %v4810_v22  ;;  %v2915_v28 = vadd.f32 %v6581_v0, %v2764_v23  ;;  %v2621_v30 = vmax.f32 %v1870_v20, %v1872_v26  ;;  %v1121_v32 = vpop.f32.mrf.mxu0 }
 0x162   : > { %v5863_v31 = vpop.eup %5862  ;;  %v1874_v33 = vpop.f32.mrf.mxu1  ;;  %5876 = vrcp.f32 %v3486_v24  ;;  %v5747_v24 = vld [vmem:[%s6480_s17 + $0x148] sm:$0xff]  }
 0x163   : > { %v5865_v35 = vpop.eup %5864  ;;  %v5266_v36 = vpack.c.bf16 %v5863_v31, %v5861_v27  ;;  %v4811_v37 = vmul.f32 -1.442695, %v2915_v28  ;;  %v2765_v38 = vmax.f32 %v2477_v29, %v2621_v30  ;;  %v1123_v40 = vpop.f32.mrf.mxu0 }
 0x164   : > { %v3487_v39 = vadd.f32 1.0, %v5865_v35  ;;  %v1876_v41 = vpop.f32.mrf.mxu1  ;;  %v2478_v43 = vmax.f32 %v1121_v32, %v1123_v40 }
 0x165   : > { %5586 = vst [vmem:[%s6613_s11 + $0x48] sm:$0xff] %v5266_v36   ;;  %5878 = vpow2.f32 %v4811_v37  ;;  %v2916_v42 = vadd.f32 %v6581_v0, %v2765_v38  ;;  %v2622_v44 = vmax.f32 %v1874_v33, %v1876_v41  ;;  %v1127_v46 = vpop.f32.mrf.mxu0  ;;  %1366 = vmatmul.mubr.bf16.gmra.mxu0 %v5745_v34  ;;  %2119 = vmatmul.mubr.bf16.gmra.mxu1 %v5745_v34 }
 0x166   : > { %v5867_v45 = vpop.eup %5866  ;;  %5880 = vrcp.f32 %v3487_v39  ;;  %v1880_v47 = vpop.f32.mrf.mxu1  ;;  %1375 = vmatprep.mubr.bf16.mxu0 %v6366_v2  ;;  %2128 = vmatprep.mubr.bf16.mxu1 %v6366_v2 }
 0x167   : > { %v4812_v48 = vmul.f32 -1.442695, %v2916_v42  ;;  %v2766_v49 = vmax.f32 %v2478_v43, %v2622_v44  ;;  %v3488_v50 = vadd.f32 1.0, %v5867_v45  ;;  %v1129_v51 = vpop.f32.mrf.mxu0  ;;  %v5869_v53 = vpop.eup %5868 }
 0x168   : > { %v1882_v52 = vpop.f32.mrf.mxu1  ;;  %v2479_v55 = vmax.f32 %v1127_v46, %v1129_v51 }
 0x169   : > { %v2917_v54 = vadd.f32 %v6581_v0, %v2766_v49  ;;  %v2623_v56 = vmax.f32 %v1880_v47, %v1882_v52  ;;  %5882 = vpow2.f32 %v4812_v48  ;;  %v1131_v58 = vpop.f32.mrf.mxu0 }
 0x16a   : > { %v5871_v57 = vpop.eup %5870  ;;  %v1884_v59 = vpop.f32.mrf.mxu1  ;;  %5884 = vrcp.f32 %v3488_v50  ;;  %v5748_v50 = vld [vmem:[%s6480_s17 + $0x150] sm:$0xff]  }
 0x16b   : > { %v5873_v61 = vpop.eup %5872  ;;  %v3489_v62 = vadd.f32 1.0, %v5871_v57  ;;  %v4813_v63 = vmul.f32 -1.442695, %v2917_v54  ;;  %v2767_v1 = vmax.f32 %v2479_v55, %v2623_v56  ;;  %v1133_v4 = vpop.f32.mrf.mxu0 }
 0x16c   : > { %v5271_v3 = vpack.c.bf16 %v5873_v61, %v5869_v53  ;;  %v1886_v5 = vpop.f32.mrf.mxu1  ;;  %v2480_v7 = vmax.f32 %v1131_v58, %v1133_v4 }
 0x16d   : > { %5886 = vrcp.f32 %v3489_v62  ;;  %v2918_v6 = vadd.f32 %v6581_v0, %v2767_v1  ;;  %v2624_v8 = vmax.f32 %v1884_v59, %v1886_v5  ;;  %v1137_v10 = vpop.f32.mrf.mxu0  ;;  %1376 = vmatmul.mubr.bf16.gmra.mxu0 %v5746_v60  ;;  %2129 = vmatmul.mubr.bf16.gmra.mxu1 %v5746_v60 }
 0x16e   : > { %v5875_v9 = vpop.eup %5874  ;;  %5587 = vst [vmem:[%s6613_s11 + $0x50] sm:$0xff] %v5271_v3   ;;  %5888 = vpow2.f32 %v4813_v63  ;;  %v1890_v11 = vpop.f32.mrf.mxu1  ;;  %1385 = vmatprep.mubr.bf16.mxu0 %v6366_v2  ;;  %2138 = vmatprep.mubr.bf16.mxu1 %v6366_v2 }
 0x16f   : > { %v4814_v12 = vmul.f32 -1.442695, %v2918_v6  ;;  %v2768_v13 = vmax.f32 %v2480_v7, %v2624_v8  ;;  %v3490_v14 = vadd.f32 1.0, %v5875_v9  ;;  %v1139_v15 = vpop.f32.mrf.mxu0  ;;  %v5877_v0 = vpop.eup %5876 }
 0x170   : > { %v1892_v16 = vpop.f32.mrf.mxu1  ;;  %v2481_v19 = vmax.f32 %v1137_v10, %v1139_v15 }
 0x171   : > { %v2919_v18 = vadd.f32 %v6683_v17, %v2768_v13  ;;  %v2625_v20 = vmax.f32 %v1890_v11, %v1892_v16  ;;  %5890 = vpow2.f32 %v4814_v12  ;;  %v1141_v22 = vpop.f32.mrf.mxu0 }
 0x172   : > { %v5879_v21 = vpop.eup %5878  ;;  %v1894_v23 = vpop.f32.mrf.mxu1  ;;  %5892 = vrcp.f32 %v3490_v14  ;;  %v5749_v14 = vld [vmem:[%s6480_s17 + $0x158] sm:$0xff]  }
 0x173   : > { %v5881_v25 = vpop.eup %5880  ;;  %v3491_v26 = vadd.f32 1.0, %v5879_v21  ;;  %v4815_v27 = vmul.f32 -1.442695, %v2919_v18  ;;  %v2769_v28 = vmax.f32 %v2481_v19, %v2625_v20  ;;  %v1143_v30 = vpop.f32.mrf.mxu0 }
 0x174   : > { %v5276_v29 = vpack.c.bf16 %v5881_v25, %v5877_v0  ;;  %v1896_v31 = vpop.f32.mrf.mxu1  ;;  %v2482_v33 = vmax.f32 %v1141_v22, %v1143_v30 }
 0x175   : > { %5894 = vrcp.f32 %v3491_v26  ;;  %v2920_v32 = vadd.f32 %v6683_v17, %v2769_v28  ;;  %v2626_v34 = vmax.f32 %v1894_v23, %v1896_v31  ;;  %v1147_v35 = vpop.f32.mrf.mxu0  ;;  %1386 = vmatmul.mubr.bf16.gmra.mxu0 %v5747_v24  ;;  %2139 = vmatmul.mubr.bf16.gmra.mxu1 %v5747_v24 }
 0x176   : > { %5588 = vst [vmem:[%s6613_s11 + $0x58] sm:$0xff] %v5276_v29   ;;  %5896 = vpow2.f32 %v4815_v27  ;;  %v1900_v36 = vpop.f32.mrf.mxu1  ;;  %v5883_v37 = vpop.eup %5882  ;;  %1395 = vmatprep.mubr.bf16.mxu0 %v6366_v2  ;;  %2148 = vmatprep.mubr.bf16.mxu1 %v6366_v2 }
 0x177   : > { %v4816_v38 = vmul.f32 -1.442695, %v2920_v32  ;;  %v2770_v39 = vmax.f32 %v2482_v33, %v2626_v34  ;;  %v3492_v40 = vadd.f32 1.0, %v5883_v37  ;;  %v1149_v41 = vpop.f32.mrf.mxu0  ;;  %v5885_v43 = vpop.eup %5884 }
 0x178   : > { %v1902_v42 = vpop.f32.mrf.mxu1  ;;  %v2483_v45 = vmax.f32 %v1147_v35, %v1149_v41 }
 0x179   : > { %5898 = vpow2.f32 %v4816_v38  ;;  %v2921_v44 = vadd.f32 %v6683_v17, %v2770_v39  ;;  %v2627_v46 = vmax.f32 %v1900_v36, %v1902_v42  ;;  %v1151_v48 = vpop.f32.mrf.mxu0 }
 0x17a   : > { %v5887_v47 = vpop.eup %5886  ;;  %v1904_v49 = vpop.f32.mrf.mxu1  ;;  %5900 = vrcp.f32 %v3492_v40  ;;  %v5750_v40 = vld [vmem:[%s6480_s17 + $0x160] sm:$0xff]  }
 0x17b   : > { %v5889_v51 = vpop.eup %5888  ;;  %v5281_v52 = vpack.c.bf16 %v5887_v47, %v5885_v43  ;;  %v4817_v53 = vmul.f32 -1.442695, %v2921_v44  ;;  %v2771_v54 = vmax.f32 %v2483_v45, %v2627_v46  ;;  %v1153_v56 = vpop.f32.mrf.mxu0 }
 0x17c   : > { %v3493_v55 = vadd.f32 1.0, %v5889_v51  ;;  %v1906_v57 = vpop.f32.mrf.mxu1  ;;  %v2484_v59 = vmax.f32 %v1151_v48, %v1153_v56 }
 0x17d   : > { %5589 = vst [vmem:[%s6613_s11 + $0x60] sm:$0xff] %v5281_v52   ;;  %5902 = vpow2.f32 %v4817_v53  ;;  %v2922_v58 = vadd.f32 %v6683_v17, %v2771_v54  ;;  %v2628_v60 = vmax.f32 %v1904_v49, %v1906_v57  ;;  %v1157_v61 = vpop.f32.mrf.mxu0  ;;  %1396 = vmatmul.mubr.bf16.gmra.mxu0 %v5748_v50  ;;  %2149 = vmatmul.mubr.bf16.gmra.mxu1 %v5748_v50 }
 0x17e   : > { %5904 = vrcp.f32 %v3493_v55  ;;  %v1910_v62 = vpop.f32.mrf.mxu1  ;;  %v5891_v63 = vpop.eup %5890  ;;  %1405 = vmatprep.mubr.bf16.mxu0 %v6366_v2  ;;  %2158 = vmatprep.mubr.bf16.mxu1 %v6366_v2 }
 0x17f   : > { %v4818_v1 = vmul.f32 -1.442695, %v2922_v58  ;;  %v2772_v3 = vmax.f32 %v2484_v59, %v2628_v60  ;;  %v3494_v4 = vadd.f32 1.0, %v5891_v63  ;;  %v1159_v5 = vpop.f32.mrf.mxu0  ;;  %v5893_v7 = vpop.eup %5892 }
 0x180   : > { %v1912_v6 = vpop.f32.mrf.mxu1  ;;  %v2485_v9 = vmax.f32 %v1157_v61, %v1159_v5 }
 0x181   : > { %5906 = vpow2.f32 %v4818_v1  ;;  %v2923_v8 = vadd.f32 %v6683_v17, %v2772_v3  ;;  %v2629_v10 = vmax.f32 %v1910_v62, %v1912_v6  ;;  %v1161_v12 = vpop.f32.mrf.mxu0 }
 0x182   : > { %v5895_v11 = vpop.eup %5894  ;;  %v1914_v13 = vpop.f32.mrf.mxu1  ;;  %5908 = vrcp.f32 %v3494_v4  ;;  %v5751_v4 = vld [vmem:[%s6480_s17 + $0x168] sm:$0xff]  }
 0x183   : > { %v5897_v15 = vpop.eup %5896  ;;  %v5286_v16 = vpack.c.bf16 %v5895_v11, %v5893_v7  ;;  %v4819_v0 = vmul.f32 -1.442695, %v2923_v8  ;;  %v2773_v18 = vmax.f32 %v2485_v9, %v2629_v10  ;;  %v1163_v20 = vpop.f32.mrf.mxu0 }
 0x184   : > { %v3495_v19 = vadd.f32 1.0, %v5897_v15  ;;  %v1916_v21 = vpop.f32.mrf.mxu1  ;;  %v2486_v23 = vmax.f32 %v1161_v12, %v1163_v20 }
 0x185   : > { %5590 = vst [vmem:[%s6613_s11 + $0x68] sm:$0xff] %v5286_v16   ;;  %5910 = vpow2.f32 %v4819_v0  ;;  %v2924_v22 = vadd.f32 %v6683_v17, %v2773_v18  ;;  %v2630_v24 = vmax.f32 %v1914_v13, %v1916_v21  ;;  %v1167_v26 = vpop.f32.mrf.mxu0  ;;  %1406 = vmatmul.mubr.bf16.gmra.mxu0 %v5749_v14  ;;  %2159 = vmatmul.mubr.bf16.gmra.mxu1 %v5749_v14 }
 0x186   : > { %v5899_v25 = vpop.eup %5898  ;;  %5912 = vrcp.f32 %v3495_v19  ;;  %v1920_v27 = vpop.f32.mrf.mxu1  ;;  %1415 = vmatprep.mubr.bf16.mxu0 %v6366_v2  ;;  %2168 = vmatprep.mubr.bf16.mxu1 %v6366_v2 }
 0x187   : > { %v4820_v28 = vmul.f32 -1.442695, %v2924_v22  ;;  %v2774_v29 = vmax.f32 %v2486_v23, %v2630_v24  ;;  %v3496_v30 = vadd.f32 1.0, %v5899_v25  ;;  %v1169_v31 = vpop.f32.mrf.mxu0  ;;  %v5901_v33 = vpop.eup %5900 }
 0x188   : > { %v1922_v32 = vpop.f32.mrf.mxu1  ;;  %v2487_v35 = vmax.f32 %v1167_v26, %v1169_v31 }
 0x189   : > { %v2925_v34 = vadd.f32 %v6683_v17, %v2774_v29  ;;  %v2631_v36 = vmax.f32 %v1920_v27, %v1922_v32  ;;  %5914 = vpow2.f32 %v4820_v28  ;;  %v1171_v38 = vpop.f32.mrf.mxu0 }
 0x18a   : > { %v5903_v37 = vpop.eup %5902  ;;  %v1924_v39 = vpop.f32.mrf.mxu1  ;;  %5916 = vrcp.f32 %v3496_v30  ;;  %v5752_v30 = vld [vmem:[%s6480_s17 + $0x170] sm:$0xff]  }
 0x18b   : > { %v5905_v41 = vpop.eup %5904  ;;  %v3497_v42 = vadd.f32 1.0, %v5903_v37  ;;  %v4821_v43 = vmul.f32 -1.442695, %v2925_v34  ;;  %v2775_v44 = vmax.f32 %v2487_v35, %v2631_v36  ;;  %v1173_v46 = vpop.f32.mrf.mxu0 }
 0x18c   : > { %v5291_v45 = vpack.c.bf16 %v5905_v41, %v5901_v33  ;;  %v1926_v47 = vpop.f32.mrf.mxu1  ;;  %v2488_v49 = vmax.f32 %v1171_v38, %v1173_v46 }
 0x18d   : > { %5918 = vrcp.f32 %v3497_v42  ;;  %v2926_v48 = vadd.f32 %v6683_v17, %v2775_v44  ;;  %v2632_v50 = vmax.f32 %v1924_v39, %v1926_v47  ;;  %v1177_v52 = vpop.f32.mrf.mxu0  ;;  %1416 = vmatmul.mubr.bf16.gmra.mxu0 %v5750_v40  ;;  %2169 = vmatmul.mubr.bf16.gmra.mxu1 %v5750_v40 }
 0x18e   : > { %v5907_v51 = vpop.eup %5906  ;;  %5591 = vst [vmem:[%s6613_s11 + $0x70] sm:$0xff] %v5291_v45   ;;  %5920 = vpow2.f32 %v4821_v43  ;;  %v1930_v53 = vpop.f32.mrf.mxu1  ;;  %1425 = vmatprep.mubr.bf16.mxu0 %v6366_v2  ;;  %2178 = vmatprep.mubr.bf16.mxu1 %v6366_v2 }
 0x18f   : > { %v4822_v54 = vmul.f32 -1.442695, %v2926_v48  ;;  %v2776_v55 = vmax.f32 %v2488_v49, %v2632_v50  ;;  %v3498_v56 = vadd.f32 1.0, %v5907_v51  ;;  %v1179_v57 = vpop.f32.mrf.mxu0  ;;  %v5909_v59 = vpop.eup %5908 }
 0x190   : > { %v1932_v58 = vpop.f32.mrf.mxu1  ;;  %v2489_v61 = vmax.f32 %v1177_v52, %v1179_v57 }
 0x191   : > { %v2927_v60 = vadd.f32 %v6683_v17, %v2776_v55  ;;  %v2633_v62 = vmax.f32 %v1930_v53, %v1932_v58  ;;  %5922 = vpow2.f32 %v4822_v54  ;;  %v1181_v1 = vpop.f32.mrf.mxu0 }
 0x192   : > { %v5911_v63 = vpop.eup %5910  ;;  %v1934_v3 = vpop.f32.mrf.mxu1  ;;  %5924 = vrcp.f32 %v3498_v56  ;;  %v5753_v56 = vld [vmem:[%s6480_s17 + $0x178] sm:$0xff]  }
 0x193   : > { %v5913_v5 = vpop.eup %5912  ;;  %v3499_v6 = vadd.f32 1.0, %v5911_v63  ;;  %v4823_v7 = vmul.f32 -1.442695, %v2927_v60  ;;  %v2777_v8 = vmax.f32 %v2489_v61, %v2633_v62  ;;  %v1183_v10 = vpop.f32.mrf.mxu0 }
 0x194   : > { %v5296_v9 = vpack.c.bf16 %v5913_v5, %v5909_v59  ;;  %v1936_v11 = vpop.f32.mrf.mxu1  ;;  %v2490_v13 = vmax.f32 %v1181_v1, %v1183_v10 }
 0x195   : > { %5926 = vrcp.f32 %v3499_v6  ;;  %v2928_v12 = vadd.f32 %v6683_v17, %v2777_v8  ;;  %v2634_v14 = vmax.f32 %v1934_v3, %v1936_v11  ;;  %v1187_v15 = vpop.f32.mrf.mxu0  ;;  %1426 = vmatmul.mubr.bf16.gmra.mxu0 %v5751_v4  ;;  %2179 = vmatmul.mubr.bf16.gmra.mxu1 %v5751_v4 }
 0x196   : > { %5592 = vst [vmem:[%s6613_s11 + $0x78] sm:$0xff] %v5296_v9   ;;  %5928 = vpow2.f32 %v4823_v7  ;;  %v1940_v16 = vpop.f32.mrf.mxu1  ;;  %v5915_v0 = vpop.eup %5914  ;;  %1435 = vmatprep.mubr.bf16.mxu0 %v6366_v2  ;;  %2188 = vmatprep.mubr.bf16.mxu1 %v6366_v2 }
 0x197   : > { %v4824_v18 = vmul.f32 -1.442695, %v2928_v12  ;;  %v2778_v19 = vmax.f32 %v2490_v13, %v2634_v14  ;;  %v3500_v20 = vadd.f32 1.0, %v5915_v0  ;;  %v1189_v21 = vpop.f32.mrf.mxu0  ;;  %v5917_v23 = vpop.eup %5916 }
 0x198   : > { %v1942_v22 = vpop.f32.mrf.mxu1  ;;  %v2491_v25 = vmax.f32 %v1187_v15, %v1189_v21 }
 0x199   : > { %5930 = vpow2.f32 %v4824_v18  ;;  %v2929_v24 = vadd.f32 %v6683_v17, %v2778_v19  ;;  %v2635_v26 = vmax.f32 %v1940_v16, %v1942_v22  ;;  %v1191_v28 = vpop.f32.mrf.mxu0 }
 0x19a   : > { %v5919_v27 = vpop.eup %5918  ;;  %v1944_v29 = vpop.f32.mrf.mxu1  ;;  %5932 = vrcp.f32 %v3500_v20  ;;  %v5754_v20 = vld [vmem:[%s6480_s17 + $0x180] sm:$0xff]  }
 0x19b   : > { %v5921_v31 = vpop.eup %5920  ;;  %v5301_v32 = vpack.c.bf16 %v5919_v27, %v5917_v23  ;;  %v4825_v33 = vmul.f32 -1.442695, %v2929_v24  ;;  %v2779_v34 = vmax.f32 %v2491_v25, %v2635_v26  ;;  %v1193_v36 = vpop.f32.mrf.mxu0 }
 0x19c   : > { %v3501_v35 = vadd.f32 1.0, %v5921_v31  ;;  %v1946_v37 = vpop.f32.mrf.mxu1  ;;  %v2492_v39 = vmax.f32 %v1191_v28, %v1193_v36 }
 0x19d   : > { %5593 = vst [vmem:[%s6613_s11 + $0x80] sm:$0xff] %v5301_v32   ;;  %5934 = vpow2.f32 %v4825_v33  ;;  %v2930_v38 = vadd.f32 %v6683_v17, %v2779_v34  ;;  %v2636_v40 = vmax.f32 %v1944_v29, %v1946_v37  ;;  %v1197_v41 = vpop.f32.mrf.mxu0  ;;  %1436 = vmatmul.mubr.bf16.gmra.mxu0 %v5752_v30  ;;  %2189 = vmatmul.mubr.bf16.gmra.mxu1 %v5752_v30 }
 0x19e   : > { %5936 = vrcp.f32 %v3501_v35  ;;  %v1950_v42 = vpop.f32.mrf.mxu1  ;;  %v5923_v43 = vpop.eup %5922  ;;  %1445 = vmatprep.mubr.bf16.mxu0 %v6366_v2  ;;  %2198 = vmatprep.mubr.bf16.mxu1 %v6366_v2 }
 0x19f   : > { %v4826_v44 = vmul.f32 -1.442695, %v2930_v38  ;;  %v2780_v45 = vmax.f32 %v2492_v39, %v2636_v40  ;;  %v3502_v46 = vadd.f32 1.0, %v5923_v43  ;;  %v1199_v47 = vpop.f32.mrf.mxu0  ;;  %v5925_v49 = vpop.eup %5924 }
 0x1a0   : > { %v1952_v48 = vpop.f32.mrf.mxu1  ;;  %v2493_v51 = vmax.f32 %v1197_v41, %v1199_v47 }
 0x1a1   : > { %5938 = vpow2.f32 %v4826_v44  ;;  %v2931_v50 = vadd.f32 %v6683_v17, %v2780_v45  ;;  %v2637_v52 = vmax.f32 %v1950_v42, %v1952_v48  ;;  %v1201_v54 = vpop.f32.mrf.mxu0 }
 0x1a2   : > { %v5927_v53 = vpop.eup %5926  ;;  %v1954_v55 = vpop.f32.mrf.mxu1  ;;  %5940 = vrcp.f32 %v3502_v46  ;;  %v5755_v46 = vld [vmem:[%s6480_s17 + $0x188] sm:$0xff]  }
 0x1a3   : > { %v5929_v57 = vpop.eup %5928  ;;  %v5306_v58 = vpack.c.bf16 %v5927_v53, %v5925_v49  ;;  %v4827_v59 = vmul.f32 -1.442695, %v2931_v50  ;;  %v2781_v60 = vmax.f32 %v2493_v51, %v2637_v52  ;;  %v1203_v62 = vpop.f32.mrf.mxu0 }
 0x1a4   : > { %v3503_v61 = vadd.f32 1.0, %v5929_v57  ;;  %v1956_v63 = vpop.f32.mrf.mxu1  ;;  %v2494_v3 = vmax.f32 %v1201_v54, %v1203_v62 }
 0x1a5   : > { %5594 = vst [vmem:[%s6613_s11 + $0x88] sm:$0xff] %v5306_v58   ;;  %5942 = vpow2.f32 %v4827_v59  ;;  %v2932_v1 = vadd.f32 %v6683_v17, %v2781_v60  ;;  %v2638_v4 = vmax.f32 %v1954_v55, %v1956_v63  ;;  %v1207_v6 = vpop.f32.mrf.mxu0  ;;  %1446 = vmatmul.mubr.bf16.gmra.mxu0 %v5753_v56  ;;  %2199 = vmatmul.mubr.bf16.gmra.mxu1 %v5753_v56 }
 0x1a6   : > { %v5931_v5 = vpop.eup %5930  ;;  %5944 = vrcp.f32 %v3503_v61  ;;  %v1960_v7 = vpop.f32.mrf.mxu1  ;;  %1455 = vmatprep.mubr.bf16.mxu0 %v6366_v2  ;;  %2208 = vmatprep.mubr.bf16.mxu1 %v6366_v2 }
 0x1a7   : > { %v4828_v8 = vmul.f32 -1.442695, %v2932_v1  ;;  %v2782_v9 = vmax.f32 %v2494_v3, %v2638_v4  ;;  %v3504_v10 = vadd.f32 1.0, %v5931_v5  ;;  %v1209_v11 = vpop.f32.mrf.mxu0  ;;  %v5933_v13 = vpop.eup %5932 }
 0x1a8   : > { %v1962_v12 = vpop.f32.mrf.mxu1  ;;  %v2495_v15 = vmax.f32 %v1207_v6, %v1209_v11 }
 0x1a9   : > { %v2933_v14 = vadd.f32 %v6683_v17, %v2782_v9  ;;  %v2639_v16 = vmax.f32 %v1960_v7, %v1962_v12  ;;  %5946 = vpow2.f32 %v4828_v8  ;;  %v1211_v18 = vpop.f32.mrf.mxu0 }
 0x1aa   : > { %v5935_v0 = vpop.eup %5934  ;;  %v1964_v19 = vpop.f32.mrf.mxu1  ;;  %5948 = vrcp.f32 %v3504_v10  ;;  %v5756_v10 = vld [vmem:[%s6480_s17 + $0x190] sm:$0xff]  }
 0x1ab   : > { %v5937_v21 = vpop.eup %5936  ;;  %v3505_v22 = vadd.f32 1.0, %v5935_v0  ;;  %v4829_v23 = vmul.f32 -1.442695, %v2933_v14  ;;  %v2783_v24 = vmax.f32 %v2495_v15, %v2639_v16  ;;  %v1213_v26 = vpop.f32.mrf.mxu0 }
 0x1ac   : > { %v5311_v25 = vpack.c.bf16 %v5937_v21, %v5933_v13  ;;  %v1966_v27 = vpop.f32.mrf.mxu1  ;;  %v2496_v29 = vmax.f32 %v1211_v18, %v1213_v26 }
 0x1ad   : > { %5950 = vrcp.f32 %v3505_v22  ;;  %v2934_v28 = vadd.f32 %v6683_v17, %v2783_v24  ;;  %v2640_v30 = vmax.f32 %v1964_v19, %v1966_v27  ;;  %v1217_v32 = vpop.f32.mrf.mxu0  ;;  %1456 = vmatmul.mubr.bf16.gmra.mxu0 %v5754_v20  ;;  %2209 = vmatmul.mubr.bf16.gmra.mxu1 %v5754_v20 }
 0x1ae   : > { %v5939_v31 = vpop.eup %5938  ;;  %5595 = vst [vmem:[%s6613_s11 + $0x90] sm:$0xff] %v5311_v25   ;;  %5952 = vpow2.f32 %v4829_v23  ;;  %v1970_v33 = vpop.f32.mrf.mxu1  ;;  %1465 = vmatprep.mubr.bf16.mxu0 %v6366_v2  ;;  %2218 = vmatprep.mubr.bf16.mxu1 %v6366_v2 }
 0x1af   : > { %v4830_v34 = vmul.f32 -1.442695, %v2934_v28  ;;  %v2784_v35 = vmax.f32 %v2496_v29, %v2640_v30  ;;  %v3506_v36 = vadd.f32 1.0, %v5939_v31  ;;  %v1219_v37 = vpop.f32.mrf.mxu0  ;;  %v5941_v39 = vpop.eup %5940 }
 0x1b0   : > { %v1972_v38 = vpop.f32.mrf.mxu1  ;;  %v2497_v41 = vmax.f32 %v1217_v32, %v1219_v37 }
 0x1b1   : > { %v2935_v40 = vadd.f32 %v6683_v17, %v2784_v35  ;;  %v2641_v42 = vmax.f32 %v1970_v33, %v1972_v38  ;;  %5954 = vpow2.f32 %v4830_v34  ;;  %v1221_v44 = vpop.f32.mrf.mxu0 }
 0x1b2   : > { %v5943_v43 = vpop.eup %5942  ;;  %v1974_v45 = vpop.f32.mrf.mxu1  ;;  %5956 = vrcp.f32 %v3506_v36  ;;  %v5757_v36 = vld [vmem:[%s6480_s17 + $0x198] sm:$0xff]  }
 0x1b3   : > { %v5945_v47 = vpop.eup %5944  ;;  %v3507_v48 = vadd.f32 1.0, %v5943_v43  ;;  %v4831_v49 = vmul.f32 -1.442695, %v2935_v40  ;;  %v2785_v50 = vmax.f32 %v2497_v41, %v2641_v42  ;;  %v1223_v52 = vpop.f32.mrf.mxu0 }
 0x1b4   : > { %v5316_v51 = vpack.c.bf16 %v5945_v47, %v5941_v39  ;;  %v1976_v53 = vpop.f32.mrf.mxu1  ;;  %v2498_v55 = vmax.f32 %v1221_v44, %v1223_v52 }
 0x1b5   : > { %5958 = vrcp.f32 %v3507_v48  ;;  %v2936_v54 = vadd.f32 %v6683_v17, %v2785_v50  ;;  %v2642_v56 = vmax.f32 %v1974_v45, %v1976_v53  ;;  %v1227_v57 = vpop.f32.mrf.mxu0  ;;  %1466 = vmatmul.mubr.bf16.gmra.mxu0 %v5755_v46  ;;  %2219 = vmatmul.mubr.bf16.gmra.mxu1 %v5755_v46 }
 0x1b6   : > { %5596 = vst [vmem:[%s6613_s11 + $0x98] sm:$0xff] %v5316_v51   ;;  %5960 = vpow2.f32 %v4831_v49  ;;  %v1980_v58 = vpop.f32.mrf.mxu1  ;;  %v5947_v59 = vpop.eup %5946  ;;  %1475 = vmatprep.mubr.bf16.mxu0 %v6366_v2  ;;  %2228 = vmatprep.mubr.bf16.mxu1 %v6366_v2 }
 0x1b7   : > { %v4832_v60 = vmul.f32 -1.442695, %v2936_v54  ;;  %v2786_v61 = vmax.f32 %v2498_v55, %v2642_v56  ;;  %v3508_v62 = vadd.f32 1.0, %v5947_v59  ;;  %v1229_v63 = vpop.f32.mrf.mxu0  ;;  %v5949_v3 = vpop.eup %5948 }
 0x1b8   : > { %v1982_v1 = vpop.f32.mrf.mxu1  ;;  %v2499_v5 = vmax.f32 %v1227_v57, %v1229_v63 }
 0x1b9   : > { %5962 = vpow2.f32 %v4832_v60  ;;  %v2937_v4 = vadd.f32 %v6683_v17, %v2786_v61  ;;  %v2643_v6 = vmax.f32 %v1980_v58, %v1982_v1  ;;  %v1231_v8 = vpop.f32.mrf.mxu0 }
 0x1ba   : > { %v5951_v7 = vpop.eup %5950  ;;  %v1984_v9 = vpop.f32.mrf.mxu1  ;;  %5964 = vrcp.f32 %v3508_v62  ;;  %v5758_v62 = vld [vmem:[%s6480_s17 + $0x1a0] sm:$0xff]  }
 0x1bb   : > { %v5953_v11 = vpop.eup %5952  ;;  %v5321_v12 = vpack.c.bf16 %v5951_v7, %v5949_v3  ;;  %v4833_v13 = vmul.f32 -1.442695, %v2937_v4  ;;  %v2787_v14 = vmax.f32 %v2499_v5, %v2643_v6  ;;  %v1233_v16 = vpop.f32.mrf.mxu0 }
 0x1bc   : > { %v3509_v15 = vadd.f32 1.0, %v5953_v11  ;;  %v1986_v0 = vpop.f32.mrf.mxu1  ;;  %v2500_v19 = vmax.f32 %v1231_v8, %v1233_v16 }
 0x1bd   : > { %5597 = vst [vmem:[%s6613_s11 + $0xa0] sm:$0xff] %v5321_v12   ;;  %5966 = vpow2.f32 %v4833_v13  ;;  %v2938_v18 = vadd.f32 %v6683_v17, %v2787_v14  ;;  %v2644_v20 = vmax.f32 %v1984_v9, %v1986_v0  ;;  %v1237_v21 = vpop.f32.mrf.mxu0  ;;  %1476 = vmatmul.mubr.bf16.gmra.mxu0 %v5756_v10  ;;  %2229 = vmatmul.mubr.bf16.gmra.mxu1 %v5756_v10 }
 0x1be   : > { %5968 = vrcp.f32 %v3509_v15  ;;  %v1990_v22 = vpop.f32.mrf.mxu1  ;;  %v5955_v23 = vpop.eup %5954  ;;  %1485 = vmatprep.mubr.bf16.mxu0 %v6366_v2  ;;  %2238 = vmatprep.mubr.bf16.mxu1 %v6366_v2 }
 0x1bf   : > { %v4834_v24 = vmul.f32 -1.442695, %v2938_v18  ;;  %v2788_v25 = vmax.f32 %v2500_v19, %v2644_v20  ;;  %v3510_v26 = vadd.f32 1.0, %v5955_v23  ;;  %v1239_v27 = vpop.f32.mrf.mxu0  ;;  %v5957_v29 = vpop.eup %5956 }
 0x1c0   : > { %v1992_v28 = vpop.f32.mrf.mxu1  ;;  %v2501_v31 = vmax.f32 %v1237_v21, %v1239_v27 }
 0x1c1   : > { %5970 = vpow2.f32 %v4834_v24  ;;  %v2939_v30 = vadd.f32 %v6683_v17, %v2788_v25  ;;  %v2645_v32 = vmax.f32 %v1990_v22, %v1992_v28  ;;  %v1241_v34 = vpop.f32.mrf.mxu0 }
 0x1c2   : > { %v5959_v33 = vpop.eup %5958  ;;  %v1994_v35 = vpop.f32.mrf.mxu1  ;;  %5972 = vrcp.f32 %v3510_v26  ;;  %v5759_v26 = vld [vmem:[%s6480_s17 + $0x1a8] sm:$0xff]  }
 0x1c3   : > { %v5961_v37 = vpop.eup %5960  ;;  %v5326_v38 = vpack.c.bf16 %v5959_v33, %v5957_v29  ;;  %v4835_v39 = vmul.f32 -1.442695, %v2939_v30  ;;  %v2789_v40 = vmax.f32 %v2501_v31, %v2645_v32  ;;  %v1243_v42 = vpop.f32.mrf.mxu0 }
 0x1c4   : > { %v3511_v41 = vadd.f32 1.0, %v5961_v37  ;;  %v1996_v43 = vpop.f32.mrf.mxu1  ;;  %v2502_v45 = vmax.f32 %v1241_v34, %v1243_v42 }
 0x1c5   : > { %5598 = vst [vmem:[%s6613_s11 + $0xa8] sm:$0xff] %v5326_v38   ;;  %5974 = vpow2.f32 %v4835_v39  ;;  %v2940_v44 = vadd.f32 %v6683_v17, %v2789_v40  ;;  %v2646_v46 = vmax.f32 %v1994_v35, %v1996_v43  ;;  %v1247_v48 = vpop.f32.mrf.mxu0  ;;  %1486 = vmatmul.mubr.bf16.gmra.mxu0 %v5757_v36  ;;  %2239 = vmatmul.mubr.bf16.gmra.mxu1 %v5757_v36 }
 0x1c6   : > { %v5963_v47 = vpop.eup %5962  ;;  %5976 = vrcp.f32 %v3511_v41  ;;  %v2000_v49 = vpop.f32.mrf.mxu1  ;;  %1495 = vmatprep.mubr.bf16.mxu0 %v6366_v2  ;;  %2248 = vmatprep.mubr.bf16.mxu1 %v6366_v2 }
 0x1c7   : > { %v4836_v50 = vmul.f32 -1.442695, %v2940_v44  ;;  %v2790_v51 = vmax.f32 %v2502_v45, %v2646_v46  ;;  %v3512_v52 = vadd.f32 1.0, %v5963_v47  ;;  %v1249_v53 = vpop.f32.mrf.mxu0  ;;  %v5965_v55 = vpop.eup %5964 }
 0x1c8   : > { %v2002_v54 = vpop.f32.mrf.mxu1  ;;  %v2503_v57 = vmax.f32 %v1247_v48, %v1249_v53 }
 0x1c9   : > { %v2941_v56 = vadd.f32 %v6683_v17, %v2790_v51  ;;  %v2647_v58 = vmax.f32 %v2000_v49, %v2002_v54  ;;  %5978 = vpow2.f32 %v4836_v50  ;;  %v1251_v60 = vpop.f32.mrf.mxu0 }
 0x1ca   : > { %v5967_v59 = vpop.eup %5966  ;;  %v2004_v61 = vpop.f32.mrf.mxu1  ;;  %5980 = vrcp.f32 %v3512_v52  ;;  %v5760_v52 = vld [vmem:[%s6480_s17 + $0x1b0] sm:$0xff]  }
 0x1cb   : > { %v5969_v63 = vpop.eup %5968  ;;  %v3513_v1 = vadd.f32 1.0, %v5967_v59  ;;  %v4837_v3 = vmul.f32 -1.442695, %v2941_v56  ;;  %v2791_v4 = vmax.f32 %v2503_v57, %v2647_v58  ;;  %v1253_v6 = vpop.f32.mrf.mxu0 }
 0x1cc   : > { %v5331_v5 = vpack.c.bf16 %v5969_v63, %v5965_v55  ;;  %v2006_v7 = vpop.f32.mrf.mxu1  ;;  %v2504_v9 = vmax.f32 %v1251_v60, %v1253_v6 }
 0x1cd   : > { %5982 = vrcp.f32 %v3513_v1  ;;  %v2942_v8 = vadd.f32 %v6683_v17, %v2791_v4  ;;  %v2648_v10 = vmax.f32 %v2004_v61, %v2006_v7  ;;  %v1257_v12 = vpop.f32.mrf.mxu0  ;;  %1496 = vmatmul.mubr.bf16.gmra.mxu0 %v5758_v62  ;;  %2249 = vmatmul.mubr.bf16.gmra.mxu1 %v5758_v62 }
 0x1ce   : > { %v5971_v11 = vpop.eup %5970  ;;  %5599 = vst [vmem:[%s6613_s11 + $0xb0] sm:$0xff] %v5331_v5   ;;  %5984 = vpow2.f32 %v4837_v3  ;;  %v2010_v13 = vpop.f32.mrf.mxu1  ;;  %1505 = vmatprep.mubr.bf16.mxu0 %v6366_v2  ;;  %2258 = vmatprep.mubr.bf16.mxu1 %v6366_v2 }
 0x1cf   : > { %v4838_v14 = vmul.f32 -1.442695, %v2942_v8  ;;  %v2792_v15 = vmax.f32 %v2504_v9, %v2648_v10  ;;  %v3514_v16 = vadd.f32 1.0, %v5971_v11  ;;  %v1259_v0 = vpop.f32.mrf.mxu0  ;;  %v5973_v19 = vpop.eup %5972 }
 0x1d0   : > { %v2012_v18 = vpop.f32.mrf.mxu1  ;;  %v2505_v21 = vmax.f32 %v1257_v12, %v1259_v0 }
 0x1d1   : > { %v2943_v20 = vadd.f32 %v6683_v17, %v2792_v15  ;;  %v2649_v22 = vmax.f32 %v2010_v13, %v2012_v18  ;;  %5986 = vpow2.f32 %v4838_v14  ;;  %v1261_v24 = vpop.f32.mrf.mxu0 }
 0x1d2   : > { %v5975_v23 = vpop.eup %5974  ;;  %v2014_v25 = vpop.f32.mrf.mxu1  ;;  %5988 = vrcp.f32 %v3514_v16  ;;  %v5761_v16 = vld [vmem:[%s6480_s17 + $0x1b8] sm:$0xff]  }
 0x1d3   : > { %v5977_v27 = vpop.eup %5976  ;;  %v3515_v28 = vadd.f32 1.0, %v5975_v23  ;;  %v4839_v29 = vmul.f32 -1.442695, %v2943_v20  ;;  %v2793_v30 = vmax.f32 %v2505_v21, %v2649_v22  ;;  %v1263_v32 = vpop.f32.mrf.mxu0 }
 0x1d4   : > { %v5336_v31 = vpack.c.bf16 %v5977_v27, %v5973_v19  ;;  %v2016_v33 = vpop.f32.mrf.mxu1  ;;  %v2506_v35 = vmax.f32 %v1261_v24, %v1263_v32 }
 0x1d5   : > { %5990 = vrcp.f32 %v3515_v28  ;;  %v2944_v34 = vadd.f32 %v6683_v17, %v2793_v30  ;;  %v2650_v36 = vmax.f32 %v2014_v25, %v2016_v33  ;;  %v1267_v37 = vpop.f32.mrf.mxu0  ;;  %1506 = vmatmul.mubr.bf16.gmra.mxu0 %v5759_v26  ;;  %2259 = vmatmul.mubr.bf16.gmra.mxu1 %v5759_v26 }
 0x1d6   : > { %5600 = vst [vmem:[%s6613_s11 + $0xb8] sm:$0xff] %v5336_v31   ;;  %5992 = vpow2.f32 %v4839_v29  ;;  %v2020_v38 = vpop.f32.mrf.mxu1  ;;  %v5979_v39 = vpop.eup %5978  ;;  %1515 = vmatprep.mubr.bf16.mxu0 %v6366_v2  ;;  %2268 = vmatprep.mubr.bf16.mxu1 %v6366_v2 }
 0x1d7   : > { %v4840_v40 = vmul.f32 -1.442695, %v2944_v34  ;;  %v2794_v41 = vmax.f32 %v2506_v35, %v2650_v36  ;;  %v3516_v42 = vadd.f32 1.0, %v5979_v39  ;;  %v1269_v43 = vpop.f32.mrf.mxu0  ;;  %v5981_v45 = vpop.eup %5980 }
 0x1d8   : > { %v2022_v44 = vpop.f32.mrf.mxu1  ;;  %v2507_v47 = vmax.f32 %v1267_v37, %v1269_v43 }
 0x1d9   : > { %5994 = vpow2.f32 %v4840_v40  ;;  %v2945_v46 = vadd.f32 %v6683_v17, %v2794_v41  ;;  %v2651_v48 = vmax.f32 %v2020_v38, %v2022_v44  ;;  %v1271_v50 = vpop.f32.mrf.mxu0 }
 0x1da   : > { %v5983_v49 = vpop.eup %5982  ;;  %v2024_v51 = vpop.f32.mrf.mxu1  ;;  %5996 = vrcp.f32 %v3516_v42  ;;  %v5762_v42 = vld [vmem:[%s6480_s17 + $0x1c0] sm:$0xff]  }
 0x1db   : > { %v5985_v53 = vpop.eup %5984  ;;  %v5341_v54 = vpack.c.bf16 %v5983_v49, %v5981_v45  ;;  %v4841_v55 = vmul.f32 -1.442695, %v2945_v46  ;;  %v2795_v56 = vmax.f32 %v2507_v47, %v2651_v48  ;;  %v1273_v58 = vpop.f32.mrf.mxu0 }
 0x1dc   : > { %v3517_v57 = vadd.f32 1.0, %v5985_v53  ;;  %v2026_v59 = vpop.f32.mrf.mxu1  ;;  %v2508_v61 = vmax.f32 %v1271_v50, %v1273_v58 }
 0x1dd   : > { %5601 = vst [vmem:[%s6613_s11 + $0xc0] sm:$0xff] %v5341_v54   ;;  %5998 = vpow2.f32 %v4841_v55  ;;  %v2946_v60 = vadd.f32 %v6683_v17, %v2795_v56  ;;  %v2652_v62 = vmax.f32 %v2024_v51, %v2026_v59  ;;  %v1277_v63 = vpop.f32.mrf.mxu0  ;;  %1516 = vmatmul.mubr.bf16.gmra.mxu0 %v5760_v52  ;;  %2269 = vmatmul.mubr.bf16.gmra.mxu1 %v5760_v52 }
 0x1de   : > { %6000 = vrcp.f32 %v3517_v57  ;;  %v2030_v1 = vpop.f32.mrf.mxu1  ;;  %v5987_v3 = vpop.eup %5986  ;;  %1525 = vmatprep.mubr.bf16.mxu0 %v6366_v2  ;;  %2278 = vmatprep.mubr.bf16.mxu1 %v6366_v2 }
 0x1df   : > { %v4842_v4 = vmul.f32 -1.442695, %v2946_v60  ;;  %v2796_v5 = vmax.f32 %v2508_v61, %v2652_v62  ;;  %v3518_v6 = vadd.f32 1.0, %v5987_v3  ;;  %v1279_v7 = vpop.f32.mrf.mxu0  ;;  %v5989_v9 = vpop.eup %5988 }
 0x1e0   : > { %v2032_v8 = vpop.f32.mrf.mxu1  ;;  %v2509_v11 = vmax.f32 %v1277_v63, %v1279_v7 }
 0x1e1   : > { %6002 = vpow2.f32 %v4842_v4  ;;  %v2947_v10 = vadd.f32 %v6683_v17, %v2796_v5  ;;  %v2653_v12 = vmax.f32 %v2030_v1, %v2032_v8  ;;  %v1281_v14 = vpop.f32.mrf.mxu0 }
 0x1e2   : > { %v5991_v13 = vpop.eup %5990  ;;  %v2034_v15 = vpop.f32.mrf.mxu1  ;;  %6004 = vrcp.f32 %v3518_v6  ;;  %v5763_v6 = vld [vmem:[%s6480_s17 + $0x1c8] sm:$0xff]  }
 0x1e3   : > { %v5993_v0 = vpop.eup %5992  ;;  %v5346_v18 = vpack.c.bf16 %v5991_v13, %v5989_v9  ;;  %v4843_v19 = vmul.f32 -1.442695, %v2947_v10  ;;  %v2797_v20 = vmax.f32 %v2509_v11, %v2653_v12  ;;  %v1283_v22 = vpop.f32.mrf.mxu0 }
 0x1e4   : > { %v3519_v21 = vadd.f32 1.0, %v5993_v0  ;;  %v2036_v23 = vpop.f32.mrf.mxu1  ;;  %v2510_v25 = vmax.f32 %v1281_v14, %v1283_v22 }
 0x1e5   : > { %5602 = vst [vmem:[%s6613_s11 + $0xc8] sm:$0xff] %v5346_v18   ;;  %6006 = vpow2.f32 %v4843_v19  ;;  %v2948_v24 = vadd.f32 %v6683_v17, %v2797_v20  ;;  %v2654_v26 = vmax.f32 %v2034_v15, %v2036_v23  ;;  %v1287_v28 = vpop.f32.mrf.mxu0  ;;  %1526 = vmatmul.mubr.bf16.gmra.mxu0 %v5761_v16  ;;  %2279 = vmatmul.mubr.bf16.gmra.mxu1 %v5761_v16  ;;  %v6778_v17 = vld [vmem:[%s6970_s2] ss:$0 sm:$0xff] }
 0x1e6   : > { %v5995_v27 = vpop.eup %5994  ;;  %6008 = vrcp.f32 %v3519_v21  ;;  %v2040_v29 = vpop.f32.mrf.mxu1  ;;  %1535 = vmatprep.mubr.bf16.mxu0 %v6366_v2  ;;  %2288 = vmatprep.mubr.bf16.mxu1 %v6366_v2 }
 0x1e7   : > { %v4844_v30 = vmul.f32 -1.442695, %v2948_v24  ;;  %v2798_v31 = vmax.f32 %v2510_v25, %v2654_v26  ;;  %v3520_v32 = vadd.f32 1.0, %v5995_v27  ;;  %v1289_v33 = vpop.f32.mrf.mxu0  ;;  %v5997_v35 = vpop.eup %5996 }
 0x1e8   : > { %v2042_v34 = vpop.f32.mrf.mxu1  ;;  %v2511_v37 = vmax.f32 %v1287_v28, %v1289_v33 }
 0x1e9   : > { %v2949_v36 = vadd.f32 %v6778_v17, %v2798_v31  ;;  %v2655_v38 = vmax.f32 %v2040_v29, %v2042_v34  ;;  %6010 = vpow2.f32 %v4844_v30  ;;  %v1291_v40 = vpop.f32.mrf.mxu0 }
 0x1ea   : > { %v5999_v39 = vpop.eup %5998  ;;  %v2044_v41 = vpop.f32.mrf.mxu1  ;;  %6012 = vrcp.f32 %v3520_v32  ;;  %v5764_v32 = vld [vmem:[%s6480_s17 + $0x1d0] sm:$0xff]  }
 0x1eb   : > { %v6001_v43 = vpop.eup %6000  ;;  %v3521_v44 = vadd.f32 1.0, %v5999_v39  ;;  %v4845_v45 = vmul.f32 -1.442695, %v2949_v36  ;;  %v2799_v46 = vmax.f32 %v2511_v37, %v2655_v38  ;;  %v1293_v48 = vpop.f32.mrf.mxu0 }
 0x1ec   : > { %v5351_v47 = vpack.c.bf16 %v6001_v43, %v5997_v35  ;;  %v2046_v49 = vpop.f32.mrf.mxu1  ;;  %v2512_v51 = vmax.f32 %v1291_v40, %v1293_v48 }
 0x1ed   : > { %6014 = vrcp.f32 %v3521_v44  ;;  %v2950_v50 = vadd.f32 %v6778_v17, %v2799_v46  ;;  %v2656_v52 = vmax.f32 %v2044_v41, %v2046_v49  ;;  %v1297_v54 = vpop.f32.mrf.mxu0  ;;  %1536 = vmatmul.mubr.bf16.gmra.mxu0 %v5762_v42  ;;  %2289 = vmatmul.mubr.bf16.gmra.mxu1 %v5762_v42 }
 0x1ee   : > { %v6003_v53 = vpop.eup %6002  ;;  %5603 = vst [vmem:[%s6613_s11 + $0xd0] sm:$0xff] %v5351_v47   ;;  %6016 = vpow2.f32 %v4845_v45  ;;  %v2050_v55 = vpop.f32.mrf.mxu1  ;;  %1545 = vmatprep.mubr.bf16.mxu0 %v6366_v2  ;;  %2298 = vmatprep.mubr.bf16.mxu1 %v6366_v2 }
 0x1ef   : > { %v4846_v56 = vmul.f32 -1.442695, %v2950_v50  ;;  %v2800_v57 = vmax.f32 %v2512_v51, %v2656_v52  ;;  %v3522_v58 = vadd.f32 1.0, %v6003_v53  ;;  %v1299_v59 = vpop.f32.mrf.mxu0  ;;  %v6005_v61 = vpop.eup %6004 }
 0x1f0   : > { %v2052_v60 = vpop.f32.mrf.mxu1  ;;  %v2513_v63 = vmax.f32 %v1297_v54, %v1299_v59 }
 0x1f1   : > { %v2951_v62 = vadd.f32 %v6778_v17, %v2800_v57  ;;  %v2657_v1 = vmax.f32 %v2050_v55, %v2052_v60  ;;  %6018 = vpow2.f32 %v4846_v56  ;;  %v1301_v4 = vpop.f32.mrf.mxu0 }
 0x1f2   : > { %v6007_v3 = vpop.eup %6006  ;;  %v2054_v5 = vpop.f32.mrf.mxu1  ;;  %6020 = vrcp.f32 %v3522_v58  ;;  %v5765_v58 = vld [vmem:[%s6480_s17 + $0x1d8] sm:$0xff]  }
 0x1f3   : > { %v6009_v7 = vpop.eup %6008  ;;  %v3523_v8 = vadd.f32 1.0, %v6007_v3  ;;  %v4847_v9 = vmul.f32 -1.442695, %v2951_v62  ;;  %v2801_v10 = vmax.f32 %v2513_v63, %v2657_v1  ;;  %v1303_v12 = vpop.f32.mrf.mxu0 }
 0x1f4   : > { %v5356_v11 = vpack.c.bf16 %v6009_v7, %v6005_v61  ;;  %v2056_v13 = vpop.f32.mrf.mxu1  ;;  %v2514_v15 = vmax.f32 %v1301_v4, %v1303_v12 }
 0x1f5   : > { %6022 = vrcp.f32 %v3523_v8  ;;  %v2952_v14 = vadd.f32 %v6778_v17, %v2801_v10  ;;  %v2658_v16 = vmax.f32 %v2054_v5, %v2056_v13  ;;  %v1307_v0 = vpop.f32.mrf.mxu0  ;;  %1546 = vmatmul.mubr.bf16.gmra.mxu0 %v5763_v6  ;;  %2299 = vmatmul.mubr.bf16.gmra.mxu1 %v5763_v6 }
 0x1f6   : > { %5604 = vst [vmem:[%s6613_s11 + $0xd8] sm:$0xff] %v5356_v11   ;;  %6024 = vpow2.f32 %v4847_v9  ;;  %v2060_v18 = vpop.f32.mrf.mxu1  ;;  %v6011_v19 = vpop.eup %6010  ;;  %1555 = vmatprep.mubr.bf16.mxu0 %v6366_v2  ;;  %2308 = vmatprep.mubr.bf16.mxu1 %v6366_v2 }
 0x1f7   : > { %v4848_v20 = vmul.f32 -1.442695, %v2952_v14  ;;  %v2802_v21 = vmax.f32 %v2514_v15, %v2658_v16  ;;  %v3524_v22 = vadd.f32 1.0, %v6011_v19  ;;  %v1309_v23 = vpop.f32.mrf.mxu0  ;;  %v6013_v25 = vpop.eup %6012 }
 0x1f8   : > { %v2062_v24 = vpop.f32.mrf.mxu1  ;;  %v2515_v27 = vmax.f32 %v1307_v0, %v1309_v23 }
 0x1f9   : > { %6026 = vpow2.f32 %v4848_v20  ;;  %v2953_v26 = vadd.f32 %v6778_v17, %v2802_v21  ;;  %v2659_v28 = vmax.f32 %v2060_v18, %v2062_v24  ;;  %v1311_v30 = vpop.f32.mrf.mxu0 }
 0x1fa   : > { %v6015_v29 = vpop.eup %6014  ;;  %v2064_v31 = vpop.f32.mrf.mxu1  ;;  %6028 = vrcp.f32 %v3524_v22  ;;  %v5766_v22 = vld [vmem:[%s6480_s17 + $0x1e0] sm:$0xff]  }
 0x1fb   : > { %v6017_v33 = vpop.eup %6016  ;;  %v5361_v34 = vpack.c.bf16 %v6015_v29, %v6013_v25  ;;  %v4849_v35 = vmul.f32 -1.442695, %v2953_v26  ;;  %v2803_v36 = vmax.f32 %v2515_v27, %v2659_v28  ;;  %v1313_v38 = vpop.f32.mrf.mxu0 }
 0x1fc   : > { %v3525_v37 = vadd.f32 1.0, %v6017_v33  ;;  %v2066_v39 = vpop.f32.mrf.mxu1  ;;  %v2516_v41 = vmax.f32 %v1311_v30, %v1313_v38 }
 0x1fd   : > { %5605 = vst [vmem:[%s6613_s11 + $0xe0] sm:$0xff] %v5361_v34   ;;  %6030 = vpow2.f32 %v4849_v35  ;;  %v2954_v40 = vadd.f32 %v6778_v17, %v2803_v36  ;;  %v2660_v42 = vmax.f32 %v2064_v31, %v2066_v39  ;;  %v1317_v43 = vpop.f32.mrf.mxu0  ;;  %1556 = vmatmul.mubr.bf16.gmra.mxu0 %v5764_v32  ;;  %2309 = vmatmul.mubr.bf16.gmra.mxu1 %v5764_v32 }
 0x1fe   : > { %6032 = vrcp.f32 %v3525_v37  ;;  %v2070_v44 = vpop.f32.mrf.mxu1  ;;  %v6019_v45 = vpop.eup %6018  ;;  %1565 = vmatprep.mubr.bf16.mxu0 %v6366_v2  ;;  %2318 = vmatprep.mubr.bf16.mxu1 %v6366_v2 }
 0x1ff   : > { %v4850_v46 = vmul.f32 -1.442695, %v2954_v40  ;;  %v2804_v47 = vmax.f32 %v2516_v41, %v2660_v42  ;;  %v3526_v48 = vadd.f32 1.0, %v6019_v45  ;;  %v1319_v49 = vpop.f32.mrf.mxu0  ;;  %v6021_v51 = vpop.eup %6020 }
 0x200   : > { %v2072_v50 = vpop.f32.mrf.mxu1  ;;  %v2517_v53 = vmax.f32 %v1317_v43, %v1319_v49 }
 0x201   : > { %6034 = vpow2.f32 %v4850_v46  ;;  %v2955_v52 = vadd.f32 %v6778_v17, %v2804_v47  ;;  %v2661_v54 = vmax.f32 %v2070_v44, %v2072_v50  ;;  %v1321_v56 = vpop.f32.mrf.mxu0 }
 0x202   : > { %v6023_v55 = vpop.eup %6022  ;;  %v2074_v57 = vpop.f32.mrf.mxu1  ;;  %6036 = vrcp.f32 %v3526_v48  ;;  %v5767_v48 = vld [vmem:[%s6480_s17 + $0x1e8] sm:$0xff]  }
 0x203   : > { %v6025_v59 = vpop.eup %6024  ;;  %v5366_v60 = vpack.c.bf16 %v6023_v55, %v6021_v51  ;;  %v4851_v61 = vmul.f32 -1.442695, %v2955_v52  ;;  %v2805_v62 = vmax.f32 %v2517_v53, %v2661_v54  ;;  %v1323_v1 = vpop.f32.mrf.mxu0 }
 0x204   : > { %v3527_v63 = vadd.f32 1.0, %v6025_v59  ;;  %v2076_v3 = vpop.f32.mrf.mxu1  ;;  %v2518_v5 = vmax.f32 %v1321_v56, %v1323_v1 }
 0x205   : > { %5606 = vst [vmem:[%s6613_s11 + $0xe8] sm:$0xff] %v5366_v60   ;;  %6038 = vpow2.f32 %v4851_v61  ;;  %v2956_v4 = vadd.f32 %v6778_v17, %v2805_v62  ;;  %v2662_v6 = vmax.f32 %v2074_v57, %v2076_v3  ;;  %v1327_v8 = vpop.f32.mrf.mxu0  ;;  %1566 = vmatmul.mubr.bf16.gmra.mxu0 %v5765_v58  ;;  %2319 = vmatmul.mubr.bf16.gmra.mxu1 %v5765_v58 }
 0x206   : > { %v6027_v7 = vpop.eup %6026  ;;  %6040 = vrcp.f32 %v3527_v63  ;;  %v2080_v9 = vpop.f32.mrf.mxu1  ;;  %1575 = vmatprep.mubr.bf16.mxu0 %v6366_v2  ;;  %2328 = vmatprep.mubr.bf16.mxu1 %v6366_v2 }
 0x207   : > { %v4852_v10 = vmul.f32 -1.442695, %v2956_v4  ;;  %v2806_v11 = vmax.f32 %v2518_v5, %v2662_v6  ;;  %v3528_v12 = vadd.f32 1.0, %v6027_v7  ;;  %v1329_v13 = vpop.f32.mrf.mxu0  ;;  %v6029_v15 = vpop.eup %6028 }
 0x208   : > { %v2082_v14 = vpop.f32.mrf.mxu1  ;;  %v2519_v0 = vmax.f32 %v1327_v8, %v1329_v13 }
 0x209   : > { %v2957_v16 = vadd.f32 %v6778_v17, %v2806_v11  ;;  %v2663_v18 = vmax.f32 %v2080_v9, %v2082_v14  ;;  %6042 = vpow2.f32 %v4852_v10  ;;  %v1331_v20 = vpop.f32.mrf.mxu0 }
 0x20a   : > { %v6031_v19 = vpop.eup %6030  ;;  %v2084_v21 = vpop.f32.mrf.mxu1  ;;  %6044 = vrcp.f32 %v3528_v12  ;;  %v5768_v12 = vld [vmem:[%s6480_s17 + $0x1f0] sm:$0xff]  }
 0x20b   : > { %v6033_v23 = vpop.eup %6032  ;;  %v3529_v24 = vadd.f32 1.0, %v6031_v19  ;;  %v4853_v25 = vmul.f32 -1.442695, %v2957_v16  ;;  %v2807_v26 = vmax.f32 %v2519_v0, %v2663_v18  ;;  %v1333_v28 = vpop.f32.mrf.mxu0 }
 0x20c   : > { %v5371_v27 = vpack.c.bf16 %v6033_v23, %v6029_v15  ;;  %v2086_v29 = vpop.f32.mrf.mxu1  ;;  %v2520_v31 = vmax.f32 %v1331_v20, %v1333_v28 }
 0x20d   : > { %6046 = vrcp.f32 %v3529_v24  ;;  %v2958_v30 = vadd.f32 %v6778_v17, %v2807_v26  ;;  %v2664_v32 = vmax.f32 %v2084_v21, %v2086_v29  ;;  %v1337_v34 = vpop.f32.mrf.mxu0  ;;  %1576 = vmatmul.mubr.bf16.gmra.mxu0 %v5766_v22  ;;  %2329 = vmatmul.mubr.bf16.gmra.mxu1 %v5766_v22 }
 0x20e   : > { %v6035_v33 = vpop.eup %6034  ;;  %5607 = vst [vmem:[%s6613_s11 + $0xf0] sm:$0xff] %v5371_v27   ;;  %6048 = vpow2.f32 %v4853_v25  ;;  %v2090_v35 = vpop.f32.mrf.mxu1  ;;  %1585 = vmatprep.mubr.bf16.mxu0 %v6366_v2  ;;  %2338 = vmatprep.mubr.bf16.mxu1 %v6366_v2 }
 0x20f   : > { %v4854_v36 = vmul.f32 -1.442695, %v2958_v30  ;;  %v2808_v37 = vmax.f32 %v2520_v31, %v2664_v32  ;;  %v3530_v38 = vadd.f32 1.0, %v6035_v33  ;;  %v1339_v39 = vpop.f32.mrf.mxu0  ;;  %v6037_v41 = vpop.eup %6036 }
 0x210   : > { %v2092_v40 = vpop.f32.mrf.mxu1  ;;  %v2521_v43 = vmax.f32 %v1337_v34, %v1339_v39 }
 0x211   : > { %v2959_v42 = vadd.f32 %v6778_v17, %v2808_v37  ;;  %v2665_v44 = vmax.f32 %v2090_v35, %v2092_v40  ;;  %6050 = vpow2.f32 %v4854_v36  ;;  %v1341_v46 = vpop.f32.mrf.mxu0 }
 0x212   : > { %v6039_v45 = vpop.eup %6038  ;;  %v2094_v47 = vpop.f32.mrf.mxu1  ;;  %6052 = vrcp.f32 %v3530_v38  ;;  %v5769_v38 = vld [vmem:[%s6480_s17 + $0x1f8] sm:$0xff]  }
 0x213   : > { %v6041_v49 = vpop.eup %6040  ;;  %v3531_v50 = vadd.f32 1.0, %v6039_v45  ;;  %v4855_v51 = vmul.f32 -1.442695, %v2959_v42  ;;  %v2809_v52 = vmax.f32 %v2521_v43, %v2665_v44  ;;  %v1343_v54 = vpop.f32.mrf.mxu0 }
 0x214   : > { %v5376_v53 = vpack.c.bf16 %v6041_v49, %v6037_v41  ;;  %v2096_v55 = vpop.f32.mrf.mxu1  ;;  %v2522_v57 = vmax.f32 %v1341_v46, %v1343_v54 }
 0x215   : > { %6054 = vrcp.f32 %v3531_v50  ;;  %v2960_v56 = vadd.f32 %v6778_v17, %v2809_v52  ;;  %v2666_v58 = vmax.f32 %v2094_v47, %v2096_v55  ;;  %v1347_v59 = vpop.f32.mrf.mxu0  ;;  %1586 = vmatmul.mubr.bf16.gmra.mxu0 %v5767_v48  ;;  %2339 = vmatmul.mubr.bf16.gmra.mxu1 %v5767_v48 }
 0x216   : > { %5608 = vst [vmem:[%s6613_s11 + $0xf8] sm:$0xff] %v5376_v53   ;;  %6056 = vpow2.f32 %v4855_v51  ;;  %v2100_v60 = vpop.f32.mrf.mxu1  ;;  %v6043_v61 = vpop.eup %6042  ;;  %1595 = vmatprep.mubr.bf16.mxu0 %v6366_v2  ;;  %2348 = vmatprep.mubr.bf16.mxu1 %v6366_v2 }
 0x217   : > { %v4856_v62 = vmul.f32 -1.442695, %v2960_v56  ;;  %v2810_v63 = vmax.f32 %v2522_v57, %v2666_v58  ;;  %v3532_v1 = vadd.f32 1.0, %v6043_v61  ;;  %v1349_v3 = vpop.f32.mrf.mxu0  ;;  %v6045_v5 = vpop.eup %6044 }
 0x218   : > { %v2102_v4 = vpop.f32.mrf.mxu1  ;;  %v2523_v7 = vmax.f32 %v1347_v59, %v1349_v3 }
 0x219   : > { %6058 = vpow2.f32 %v4856_v62  ;;  %v2961_v6 = vadd.f32 %v6778_v17, %v2810_v63  ;;  %v2667_v8 = vmax.f32 %v2100_v60, %v2102_v4  ;;  %v1351_v10 = vpop.f32.mrf.mxu0 }
 0x21a   : > { %v6047_v9 = vpop.eup %6046  ;;  %v2104_v11 = vpop.f32.mrf.mxu1  ;;  %6060 = vrcp.f32 %v3532_v1  ;;  %v5770_v1 = vld [vmem:[%s6480_s17 + $0x200] sm:$0xff]  }
 0x21b   : > { %v6049_v13 = vpop.eup %6048  ;;  %v5381_v14 = vpack.c.bf16 %v6047_v9, %v6045_v5  ;;  %v4857_v15 = vmul.f32 -1.442695, %v2961_v6  ;;  %v2811_v16 = vmax.f32 %v2523_v7, %v2667_v8  ;;  %v1353_v18 = vpop.f32.mrf.mxu0 }
 0x21c   : > { %v3533_v0 = vadd.f32 1.0, %v6049_v13  ;;  %v2106_v19 = vpop.f32.mrf.mxu1  ;;  %v2524_v21 = vmax.f32 %v1351_v10, %v1353_v18 }
 0x21d   : > { %5609 = vst [vmem:[%s6613_s11 + $0x100] sm:$0xff] %v5381_v14   ;;  %6062 = vpow2.f32 %v4857_v15  ;;  %v2962_v20 = vadd.f32 %v6778_v17, %v2811_v16  ;;  %v2668_v22 = vmax.f32 %v2104_v11, %v2106_v19  ;;  %v1357_v23 = vpop.f32.mrf.mxu0  ;;  %1596 = vmatmul.mubr.bf16.gmra.mxu0 %v5768_v12  ;;  %2349 = vmatmul.mubr.bf16.gmra.mxu1 %v5768_v12 }
 0x21e   : > { %6064 = vrcp.f32 %v3533_v0  ;;  %v2110_v24 = vpop.f32.mrf.mxu1  ;;  %v6051_v25 = vpop.eup %6050  ;;  %1605 = vmatprep.mubr.bf16.mxu0 %v6366_v2  ;;  %2358 = vmatprep.mubr.bf16.mxu1 %v6366_v2 }
 0x21f   : > { %v4858_v26 = vmul.f32 -1.442695, %v2962_v20  ;;  %v2812_v27 = vmax.f32 %v2524_v21, %v2668_v22  ;;  %v3534_v28 = vadd.f32 1.0, %v6051_v25  ;;  %v1359_v29 = vpop.f32.mrf.mxu0  ;;  %v6053_v31 = vpop.eup %6052 }
 0x220   : > { %v2112_v30 = vpop.f32.mrf.mxu1  ;;  %v2525_v33 = vmax.f32 %v1357_v23, %v1359_v29 }
 0x221   : > { %6066 = vpow2.f32 %v4858_v26  ;;  %v2963_v32 = vadd.f32 %v6778_v17, %v2812_v27  ;;  %v2669_v34 = vmax.f32 %v2110_v24, %v2112_v30  ;;  %v1361_v36 = vpop.f32.mrf.mxu0 }
 0x222   : > { %v6055_v35 = vpop.eup %6054  ;;  %v2114_v37 = vpop.f32.mrf.mxu1  ;;  %6068 = vrcp.f32 %v3534_v28  ;;  %v5771_v28 = vld [vmem:[%s6480_s17 + $0x208] sm:$0xff]  }
 0x223   : > { %v6057_v39 = vpop.eup %6056  ;;  %v5386_v40 = vpack.c.bf16 %v6055_v35, %v6053_v31  ;;  %v4859_v41 = vmul.f32 -1.442695, %v2963_v32  ;;  %v2813_v42 = vmax.f32 %v2525_v33, %v2669_v34  ;;  %v1363_v44 = vpop.f32.mrf.mxu0 }
 0x224   : > { %v3535_v43 = vadd.f32 1.0, %v6057_v39  ;;  %v2116_v45 = vpop.f32.mrf.mxu1  ;;  %v2526_v47 = vmax.f32 %v1361_v36, %v1363_v44 }
 0x225   : > { %5610 = vst [vmem:[%s6613_s11 + $0x108] sm:$0xff] %v5386_v40   ;;  %6070 = vpow2.f32 %v4859_v41  ;;  %v2964_v46 = vadd.f32 %v6778_v17, %v2813_v42  ;;  %v2670_v48 = vmax.f32 %v2114_v37, %v2116_v45  ;;  %v1367_v50 = vpop.f32.mrf.mxu0  ;;  %1606 = vmatmul.mubr.bf16.gmra.mxu0 %v5769_v38  ;;  %2359 = vmatmul.mubr.bf16.gmra.mxu1 %v5769_v38 }
 0x226   : > { %v6059_v49 = vpop.eup %6058  ;;  %6072 = vrcp.f32 %v3535_v43  ;;  %v2120_v51 = vpop.f32.mrf.mxu1  ;;  %1615 = vmatprep.mubr.bf16.mxu0 %v6366_v2  ;;  %2368 = vmatprep.mubr.bf16.mxu1 %v6366_v2 }
 0x227   : > { %v4860_v52 = vmul.f32 -1.442695, %v2964_v46  ;;  %v2814_v53 = vmax.f32 %v2526_v47, %v2670_v48  ;;  %v3536_v54 = vadd.f32 1.0, %v6059_v49  ;;  %v1369_v55 = vpop.f32.mrf.mxu0  ;;  %v6061_v57 = vpop.eup %6060 }
 0x228   : > { %v2122_v56 = vpop.f32.mrf.mxu1  ;;  %v2527_v59 = vmax.f32 %v1367_v50, %v1369_v55 }
 0x229   : > { %v2965_v58 = vadd.f32 %v6778_v17, %v2814_v53  ;;  %v2671_v60 = vmax.f32 %v2120_v51, %v2122_v56  ;;  %6074 = vpow2.f32 %v4860_v52  ;;  %v1371_v62 = vpop.f32.mrf.mxu0 }
 0x22a   : > { %v6063_v61 = vpop.eup %6062  ;;  %v2124_v63 = vpop.f32.mrf.mxu1  ;;  %6076 = vrcp.f32 %v3536_v54  ;;  %v5772_v54 = vld [vmem:[%s6480_s17 + $0x210] sm:$0xff]  }
 0x22b   : > { %v6065_v3 = vpop.eup %6064  ;;  %v3537_v4 = vadd.f32 1.0, %v6063_v61  ;;  %v4861_v5 = vmul.f32 -1.442695, %v2965_v58  ;;  %v2815_v6 = vmax.f32 %v2527_v59, %v2671_v60  ;;  %v1373_v8 = vpop.f32.mrf.mxu0 }
 0x22c   : > { %v5391_v7 = vpack.c.bf16 %v6065_v3, %v6061_v57  ;;  %v2126_v9 = vpop.f32.mrf.mxu1  ;;  %v2528_v11 = vmax.f32 %v1371_v62, %v1373_v8 }
 0x22d   : > { %6078 = vrcp.f32 %v3537_v4  ;;  %v2966_v10 = vadd.f32 %v6778_v17, %v2815_v6  ;;  %v2672_v12 = vmax.f32 %v2124_v63, %v2126_v9  ;;  %v1377_v14 = vpop.f32.mrf.mxu0  ;;  %1616 = vmatmul.mubr.bf16.gmra.mxu0 %v5770_v1  ;;  %2369 = vmatmul.mubr.bf16.gmra.mxu1 %v5770_v1 }
 0x22e   : > { %v6067_v13 = vpop.eup %6066  ;;  %5611 = vst [vmem:[%s6613_s11 + $0x110] sm:$0xff] %v5391_v7   ;;  %6080 = vpow2.f32 %v4861_v5  ;;  %v2130_v15 = vpop.f32.mrf.mxu1  ;;  %1625 = vmatprep.mubr.bf16.mxu0 %v6366_v2  ;;  %2378 = vmatprep.mubr.bf16.mxu1 %v6366_v2 }
 0x22f   : > { %v4862_v16 = vmul.f32 -1.442695, %v2966_v10  ;;  %v2816_v0 = vmax.f32 %v2528_v11, %v2672_v12  ;;  %v3538_v18 = vadd.f32 1.0, %v6067_v13  ;;  %v1379_v19 = vpop.f32.mrf.mxu0  ;;  %v6069_v21 = vpop.eup %6068 }
 0x230   : > { %v2132_v20 = vpop.f32.mrf.mxu1  ;;  %v2529_v23 = vmax.f32 %v1377_v14, %v1379_v19 }
 0x231   : > { %v2967_v22 = vadd.f32 %v6778_v17, %v2816_v0  ;;  %v2673_v24 = vmax.f32 %v2130_v15, %v2132_v20  ;;  %6082 = vpow2.f32 %v4862_v16  ;;  %v1381_v26 = vpop.f32.mrf.mxu0 }
 0x232   : > { %v6071_v25 = vpop.eup %6070  ;;  %v2134_v27 = vpop.f32.mrf.mxu1  ;;  %6084 = vrcp.f32 %v3538_v18  ;;  %v5773_v18 = vld [vmem:[%s6480_s17 + $0x218] sm:$0xff]  }
 0x233   : > { %v6073_v29 = vpop.eup %6072  ;;  %v3539_v30 = vadd.f32 1.0, %v6071_v25  ;;  %v4863_v31 = vmul.f32 -1.442695, %v2967_v22  ;;  %v2817_v32 = vmax.f32 %v2529_v23, %v2673_v24  ;;  %v1383_v34 = vpop.f32.mrf.mxu0 }
 0x234   : > { %v5396_v33 = vpack.c.bf16 %v6073_v29, %v6069_v21  ;;  %v2136_v35 = vpop.f32.mrf.mxu1  ;;  %v2530_v37 = vmax.f32 %v1381_v26, %v1383_v34 }
 0x235   : > { %6086 = vrcp.f32 %v3539_v30  ;;  %v2968_v36 = vadd.f32 %v6778_v17, %v2817_v32  ;;  %v2674_v38 = vmax.f32 %v2134_v27, %v2136_v35  ;;  %v1387_v39 = vpop.f32.mrf.mxu0  ;;  %1626 = vmatmul.mubr.bf16.gmra.mxu0 %v5771_v28  ;;  %2379 = vmatmul.mubr.bf16.gmra.mxu1 %v5771_v28 }
 0x236   : > { %5612 = vst [vmem:[%s6613_s11 + $0x118] sm:$0xff] %v5396_v33   ;;  %6088 = vpow2.f32 %v4863_v31  ;;  %v2140_v40 = vpop.f32.mrf.mxu1  ;;  %v6075_v41 = vpop.eup %6074  ;;  %1635 = vmatprep.mubr.bf16.mxu0 %v6366_v2  ;;  %2388 = vmatprep.mubr.bf16.mxu1 %v6366_v2 }
 0x237   : > { %v4864_v42 = vmul.f32 -1.442695, %v2968_v36  ;;  %v2818_v43 = vmax.f32 %v2530_v37, %v2674_v38  ;;  %v3540_v44 = vadd.f32 1.0, %v6075_v41  ;;  %v1389_v45 = vpop.f32.mrf.mxu0  ;;  %v6077_v47 = vpop.eup %6076 }
 0x238   : > { %v2142_v46 = vpop.f32.mrf.mxu1  ;;  %v2531_v49 = vmax.f32 %v1387_v39, %v1389_v45 }
 0x239   : > { %6090 = vpow2.f32 %v4864_v42  ;;  %v2969_v48 = vadd.f32 %v6778_v17, %v2818_v43  ;;  %v2675_v50 = vmax.f32 %v2140_v40, %v2142_v46  ;;  %v1391_v52 = vpop.f32.mrf.mxu0 }
 0x23a   : > { %v6079_v51 = vpop.eup %6078  ;;  %v2144_v53 = vpop.f32.mrf.mxu1  ;;  %6092 = vrcp.f32 %v3540_v44  ;;  %v5774_v44 = vld [vmem:[%s6480_s17 + $0x220] sm:$0xff]  }
 0x23b   : > { %v6081_v55 = vpop.eup %6080  ;;  %v5401_v56 = vpack.c.bf16 %v6079_v51, %v6077_v47  ;;  %v4865_v57 = vmul.f32 -1.442695, %v2969_v48  ;;  %v2819_v58 = vmax.f32 %v2531_v49, %v2675_v50  ;;  %v1393_v60 = vpop.f32.mrf.mxu0 }
 0x23c   : > { %v3541_v59 = vadd.f32 1.0, %v6081_v55  ;;  %v2146_v61 = vpop.f32.mrf.mxu1  ;;  %v2532_v63 = vmax.f32 %v1391_v52, %v1393_v60 }
 0x23d   : > { %5613 = vst [vmem:[%s6613_s11 + $0x120] sm:$0xff] %v5401_v56   ;;  %6094 = vpow2.f32 %v4865_v57  ;;  %v2970_v62 = vadd.f32 %v6778_v17, %v2819_v58  ;;  %v2676_v1 = vmax.f32 %v2144_v53, %v2146_v61  ;;  %v1397_v3 = vpop.f32.mrf.mxu0  ;;  %1636 = vmatmul.mubr.bf16.gmra.mxu0 %v5772_v54  ;;  %2389 = vmatmul.mubr.bf16.gmra.mxu1 %v5772_v54 }
 0x23e   : > { %6096 = vrcp.f32 %v3541_v59  ;;  %v2150_v4 = vpop.f32.mrf.mxu1  ;;  %v6083_v5 = vpop.eup %6082  ;;  %1645 = vmatprep.mubr.bf16.mxu0 %v6366_v2  ;;  %2398 = vmatprep.mubr.bf16.mxu1 %v6366_v2 }
 0x23f   : > { %v4866_v6 = vmul.f32 -1.442695, %v2970_v62  ;;  %v2820_v7 = vmax.f32 %v2532_v63, %v2676_v1  ;;  %v3542_v8 = vadd.f32 1.0, %v6083_v5  ;;  %v1399_v9 = vpop.f32.mrf.mxu0  ;;  %v6085_v11 = vpop.eup %6084 }
 0x240   : > { %v2152_v10 = vpop.f32.mrf.mxu1  ;;  %v2533_v13 = vmax.f32 %v1397_v3, %v1399_v9 }
 0x241   : > { %6098 = vpow2.f32 %v4866_v6  ;;  %v2971_v12 = vadd.f32 %v6778_v17, %v2820_v7  ;;  %v2677_v14 = vmax.f32 %v2150_v4, %v2152_v10  ;;  %v1401_v16 = vpop.f32.mrf.mxu0 }
 0x242   : > { %v6087_v15 = vpop.eup %6086  ;;  %v2154_v0 = vpop.f32.mrf.mxu1  ;;  %6100 = vrcp.f32 %v3542_v8  ;;  %v5775_v8 = vld [vmem:[%s6480_s17 + $0x228] sm:$0xff]  }
 0x243   : > { %v6089_v19 = vpop.eup %6088  ;;  %v5406_v20 = vpack.c.bf16 %v6087_v15, %v6085_v11  ;;  %v4867_v21 = vmul.f32 -1.442695, %v2971_v12  ;;  %v2821_v22 = vmax.f32 %v2533_v13, %v2677_v14  ;;  %v1403_v24 = vpop.f32.mrf.mxu0 }
 0x244   : > { %v3543_v23 = vadd.f32 1.0, %v6089_v19  ;;  %v2156_v25 = vpop.f32.mrf.mxu1  ;;  %v2534_v27 = vmax.f32 %v1401_v16, %v1403_v24 }
 0x245   : > { %5614 = vst [vmem:[%s6613_s11 + $0x128] sm:$0xff] %v5406_v20   ;;  %6102 = vpow2.f32 %v4867_v21  ;;  %v2972_v26 = vadd.f32 %v6778_v17, %v2821_v22  ;;  %v2678_v28 = vmax.f32 %v2154_v0, %v2156_v25  ;;  %v1407_v30 = vpop.f32.mrf.mxu0  ;;  %1646 = vmatmul.mubr.bf16.gmra.mxu0 %v5773_v18  ;;  %2399 = vmatmul.mubr.bf16.gmra.mxu1 %v5773_v18 }
 0x246   : > { %v6091_v29 = vpop.eup %6090  ;;  %6104 = vrcp.f32 %v3543_v23  ;;  %v2160_v31 = vpop.f32.mrf.mxu1  ;;  %1655 = vmatprep.mubr.bf16.mxu0 %v6366_v2  ;;  %2408 = vmatprep.mubr.bf16.mxu1 %v6366_v2 }
 0x247   : > { %v4868_v32 = vmul.f32 -1.442695, %v2972_v26  ;;  %v2822_v33 = vmax.f32 %v2534_v27, %v2678_v28  ;;  %v3544_v34 = vadd.f32 1.0, %v6091_v29  ;;  %v1409_v35 = vpop.f32.mrf.mxu0  ;;  %v6093_v37 = vpop.eup %6092 }
 0x248   : > { %v2162_v36 = vpop.f32.mrf.mxu1  ;;  %v2535_v39 = vmax.f32 %v1407_v30, %v1409_v35 }
 0x249   : > { %v2973_v38 = vadd.f32 %v6778_v17, %v2822_v33  ;;  %v2679_v40 = vmax.f32 %v2160_v31, %v2162_v36  ;;  %6106 = vpow2.f32 %v4868_v32  ;;  %v1411_v42 = vpop.f32.mrf.mxu0 }
 0x24a   : > { %v6095_v41 = vpop.eup %6094  ;;  %v2164_v43 = vpop.f32.mrf.mxu1  ;;  %6108 = vrcp.f32 %v3544_v34  ;;  %v5776_v34 = vld [vmem:[%s6480_s17 + $0x230] sm:$0xff]  }
 0x24b   : > { %v6097_v45 = vpop.eup %6096  ;;  %v3545_v46 = vadd.f32 1.0, %v6095_v41  ;;  %v4869_v47 = vmul.f32 -1.442695, %v2973_v38  ;;  %v2823_v48 = vmax.f32 %v2535_v39, %v2679_v40  ;;  %v1413_v50 = vpop.f32.mrf.mxu0 }
 0x24c   : > { %v5411_v49 = vpack.c.bf16 %v6097_v45, %v6093_v37  ;;  %v2166_v51 = vpop.f32.mrf.mxu1  ;;  %v2536_v53 = vmax.f32 %v1411_v42, %v1413_v50 }
 0x24d   : > { %6110 = vrcp.f32 %v3545_v46  ;;  %v2974_v52 = vadd.f32 %v6778_v17, %v2823_v48  ;;  %v2680_v54 = vmax.f32 %v2164_v43, %v2166_v51  ;;  %v1417_v56 = vpop.f32.mrf.mxu0  ;;  %1656 = vmatmul.mubr.bf16.gmra.mxu0 %v5774_v44  ;;  %2409 = vmatmul.mubr.bf16.gmra.mxu1 %v5774_v44 }
 0x24e   : > { %v6099_v55 = vpop.eup %6098  ;;  %5615 = vst [vmem:[%s6613_s11 + $0x130] sm:$0xff] %v5411_v49   ;;  %6112 = vpow2.f32 %v4869_v47  ;;  %v2170_v57 = vpop.f32.mrf.mxu1  ;;  %1665 = vmatprep.mubr.bf16.mxu0 %v6366_v2  ;;  %2418 = vmatprep.mubr.bf16.mxu1 %v6366_v2 }
 0x24f   : > { %v4870_v58 = vmul.f32 -1.442695, %v2974_v52  ;;  %v2824_v59 = vmax.f32 %v2536_v53, %v2680_v54  ;;  %v3546_v60 = vadd.f32 1.0, %v6099_v55  ;;  %v1419_v61 = vpop.f32.mrf.mxu0  ;;  %v6101_v63 = vpop.eup %6100 }
 0x250   : > { %v2172_v62 = vpop.f32.mrf.mxu1  ;;  %v2537_v3 = vmax.f32 %v1417_v56, %v1419_v61 }
 0x251   : > { %v2975_v1 = vadd.f32 %v6778_v17, %v2824_v59  ;;  %v2681_v4 = vmax.f32 %v2170_v57, %v2172_v62  ;;  %6114 = vpow2.f32 %v4870_v58  ;;  %v1421_v6 = vpop.f32.mrf.mxu0 }
 0x252   : > { %v6103_v5 = vpop.eup %6102  ;;  %v2174_v7 = vpop.f32.mrf.mxu1  ;;  %6116 = vrcp.f32 %v3546_v60  ;;  %v5777_v60 = vld [vmem:[%s6480_s17 + $0x238] sm:$0xff]  }
 0x253   : > { %v6105_v9 = vpop.eup %6104  ;;  %v3547_v10 = vadd.f32 1.0, %v6103_v5  ;;  %v4871_v11 = vmul.f32 -1.442695, %v2975_v1  ;;  %v2825_v12 = vmax.f32 %v2537_v3, %v2681_v4  ;;  %v1423_v14 = vpop.f32.mrf.mxu0 }
 0x254   : > { %v5416_v13 = vpack.c.bf16 %v6105_v9, %v6101_v63  ;;  %v2176_v15 = vpop.f32.mrf.mxu1  ;;  %v2538_v0 = vmax.f32 %v1421_v6, %v1423_v14 }
 0x255   : > { %6118 = vrcp.f32 %v3547_v10  ;;  %v2976_v16 = vadd.f32 %v6778_v17, %v2825_v12  ;;  %v2682_v18 = vmax.f32 %v2174_v7, %v2176_v15  ;;  %v1427_v19 = vpop.f32.mrf.mxu0  ;;  %1666 = vmatmul.mubr.bf16.gmra.mxu0 %v5775_v8  ;;  %2419 = vmatmul.mubr.bf16.gmra.mxu1 %v5775_v8 }
 0x256   : > { %5616 = vst [vmem:[%s6613_s11 + $0x138] sm:$0xff] %v5416_v13   ;;  %6120 = vpow2.f32 %v4871_v11  ;;  %v2180_v20 = vpop.f32.mrf.mxu1  ;;  %v6107_v21 = vpop.eup %6106  ;;  %1675 = vmatprep.mubr.bf16.mxu0 %v6366_v2  ;;  %2428 = vmatprep.mubr.bf16.mxu1 %v6366_v2 }
 0x257   : > { %v4872_v22 = vmul.f32 -1.442695, %v2976_v16  ;;  %v2826_v23 = vmax.f32 %v2538_v0, %v2682_v18  ;;  %v3548_v24 = vadd.f32 1.0, %v6107_v21  ;;  %v1429_v25 = vpop.f32.mrf.mxu0  ;;  %v6109_v27 = vpop.eup %6108 }
 0x258   : > { %v2182_v26 = vpop.f32.mrf.mxu1  ;;  %v2539_v29 = vmax.f32 %v1427_v19, %v1429_v25 }
 0x259   : > { %6122 = vpow2.f32 %v4872_v22  ;;  %v2977_v28 = vadd.f32 %v6778_v17, %v2826_v23  ;;  %v2683_v30 = vmax.f32 %v2180_v20, %v2182_v26  ;;  %v1431_v32 = vpop.f32.mrf.mxu0 }
 0x25a   : > { %v6111_v31 = vpop.eup %6110  ;;  %v2184_v33 = vpop.f32.mrf.mxu1  ;;  %6124 = vrcp.f32 %v3548_v24 }
 0x25b   : > { %v6113_v35 = vpop.eup %6112  ;;  %v5421_v36 = vpack.c.bf16 %v6111_v31, %v6109_v27  ;;  %v4873_v37 = vmul.f32 -1.442695, %v2977_v28  ;;  %v2827_v38 = vmax.f32 %v2539_v29, %v2683_v30  ;;  %v1433_v40 = vpop.f32.mrf.mxu0 }
 0x25c   : > { %v3549_v39 = vadd.f32 1.0, %v6113_v35  ;;  %v2186_v41 = vpop.f32.mrf.mxu1  ;;  %v2540_v43 = vmax.f32 %v1431_v32, %v1433_v40 }
 0x25d   : > { %5617 = vst [vmem:[%s6613_s11 + $0x140] sm:$0xff] %v5421_v36   ;;  %6126 = vpow2.f32 %v4873_v37  ;;  %v2978_v42 = vadd.f32 %v6778_v17, %v2827_v38  ;;  %v2684_v44 = vmax.f32 %v2184_v33, %v2186_v41  ;;  %v1437_v45 = vpop.f32.mrf.mxu0  ;;  %1676 = vmatmul.mubr.bf16.gmra.mxu0 %v5776_v34  ;;  %2429 = vmatmul.mubr.bf16.gmra.mxu1 %v5776_v34  ;;  %v6873_v17 = vld [vmem:[%s6970_s2] ss:$0 sm:$0xff] }
 0x25e   : > { %6128 = vrcp.f32 %v3549_v39  ;;  %v2190_v46 = vpop.f32.mrf.mxu1  ;;  %v6115_v47 = vpop.eup %6114  ;;  %1685 = vmatprep.mubr.bf16.mxu0 %v6366_v2  ;;  %2438 = vmatprep.mubr.bf16.mxu1 %v6366_v2 }
 0x25f   : > { %v4874_v48 = vmul.f32 -1.442695, %v2978_v42  ;;  %v2828_v49 = vmax.f32 %v2540_v43, %v2684_v44  ;;  %v3550_v50 = vadd.f32 1.0, %v6115_v47  ;;  %v1439_v51 = vpop.f32.mrf.mxu0  ;;  %v6117_v53 = vpop.eup %6116 }
 0x260   : > { %v2192_v52 = vpop.f32.mrf.mxu1  ;;  %v2541_v55 = vmax.f32 %v1437_v45, %v1439_v51 }
 0x261   : > { %6130 = vpow2.f32 %v4874_v48  ;;  %v2979_v54 = vadd.f32 %v6873_v17, %v2828_v49  ;;  %v2685_v56 = vmax.f32 %v2190_v46, %v2192_v52  ;;  %v1441_v58 = vpop.f32.mrf.mxu0 }
 0x262   : > { %v6119_v57 = vpop.eup %6118  ;;  %v2194_v59 = vpop.f32.mrf.mxu1  ;;  %6132 = vrcp.f32 %v3550_v50 }
 0x263   : > { %v6121_v2 = vpop.eup %6120  ;;  %v5426_v61 = vpack.c.bf16 %v6119_v57, %v6117_v53  ;;  %v4875_v62 = vmul.f32 -1.442695, %v2979_v54  ;;  %v2829_v63 = vmax.f32 %v2541_v55, %v2685_v56  ;;  %v1443_v3 = vpop.f32.mrf.mxu0 }
 0x264   : > { %v3551_v1 = vadd.f32 1.0, %v6121_v2  ;;  %v2196_v4 = vpop.f32.mrf.mxu1  ;;  %v2542_v6 = vmax.f32 %v1441_v58, %v1443_v3 }
 0x265   : > { %5618 = vst [vmem:[%s6613_s11 + $0x148] sm:$0xff] %v5426_v61   ;;  %6134 = vpow2.f32 %v4875_v62  ;;  %v2980_v5 = vadd.f32 %v6873_v17, %v2829_v63  ;;  %v2686_v7 = vmax.f32 %v2194_v59, %v2196_v4  ;;  %v1447_v9 = vpop.f32.mrf.mxu0  ;;  %1686 = vmatmul.mubr.bf16.gmra.mxu0 %v5777_v60  ;;  %2439 = vmatmul.mubr.bf16.gmra.mxu1 %v5777_v60 }
 0x266   : > { %v6123_v8 = vpop.eup %6122  ;;  %6136 = vrcp.f32 %v3551_v1  ;;  %v2200_v10 = vpop.f32.mrf.mxu1 }
 0x267   : > { %v4876_v11 = vmul.f32 -1.442695, %v2980_v5  ;;  %v2830_v12 = vmax.f32 %v2542_v6, %v2686_v7  ;;  %v3552_v13 = vadd.f32 1.0, %v6123_v8  ;;  %v1449_v14 = vpop.f32.mrf.mxu0  ;;  %v6125_v16 = vpop.eup %6124 }
 0x268   : > { %v2202_v15 = vpop.f32.mrf.mxu1  ;;  %v2543_v18 = vmax.f32 %v1447_v9, %v1449_v14 }
 0x269   : > { %v2981_v0 = vadd.f32 %v6873_v17, %v2830_v12  ;;  %v2687_v19 = vmax.f32 %v2200_v10, %v2202_v15  ;;  %6138 = vpow2.f32 %v4876_v11  ;;  %v1451_v21 = vpop.f32.mrf.mxu0 }
 0x26a   : > { %v6127_v20 = vpop.eup %6126  ;;  %v2204_v22 = vpop.f32.mrf.mxu1  ;;  %6140 = vrcp.f32 %v3552_v13 }
 0x26b   : > { %v6129_v23 = vpop.eup %6128  ;;  %v3553_v24 = vadd.f32 1.0, %v6127_v20  ;;  %v4877_v25 = vmul.f32 -1.442695, %v2981_v0  ;;  %v2831_v26 = vmax.f32 %v2543_v18, %v2687_v19  ;;  %v1453_v28 = vpop.f32.mrf.mxu0 }
 0x26c   : > { %v5431_v27 = vpack.c.bf16 %v6129_v23, %v6125_v16  ;;  %v2206_v29 = vpop.f32.mrf.mxu1  ;;  %v2544_v31 = vmax.f32 %v1451_v21, %v1453_v28 }
 0x26d   : > { %6142 = vrcp.f32 %v3553_v24  ;;  %v2982_v30 = vadd.f32 %v6873_v17, %v2831_v26  ;;  %v2688_v32 = vmax.f32 %v2204_v22, %v2206_v29  ;;  %v1457_v34 = vpop.f32.mrf.mxu0 }
 0x26e   : > { %v6131_v33 = vpop.eup %6130  ;;  %5619 = vst [vmem:[%s6613_s11 + $0x150] sm:$0xff] %v5431_v27   ;;  %6144 = vpow2.f32 %v4877_v25  ;;  %v2210_v35 = vpop.f32.mrf.mxu1 }
 0x26f   : > { %v4878_v36 = vmul.f32 -1.442695, %v2982_v30  ;;  %v2832_v37 = vmax.f32 %v2544_v31, %v2688_v32  ;;  %v3554_v38 = vadd.f32 1.0, %v6131_v33  ;;  %v1459_v39 = vpop.f32.mrf.mxu0  ;;  %v6133_v41 = vpop.eup %6132 }
 0x270   : > { %v2212_v40 = vpop.f32.mrf.mxu1  ;;  %v2545_v43 = vmax.f32 %v1457_v34, %v1459_v39 }
 0x271   : > { %v2983_v42 = vadd.f32 %v6873_v17, %v2832_v37  ;;  %v2689_v44 = vmax.f32 %v2210_v35, %v2212_v40  ;;  %6146 = vpow2.f32 %v4878_v36  ;;  %v1461_v46 = vpop.f32.mrf.mxu0 }
 0x272   : > { %v6135_v45 = vpop.eup %6134  ;;  %v2214_v47 = vpop.f32.mrf.mxu1  ;;  %6148 = vrcp.f32 %v3554_v38 }
 0x273   : > { %v6137_v48 = vpop.eup %6136  ;;  %v3555_v49 = vadd.f32 1.0, %v6135_v45  ;;  %v4879_v50 = vmul.f32 -1.442695, %v2983_v42  ;;  %v2833_v51 = vmax.f32 %v2545_v43, %v2689_v44  ;;  %v1463_v53 = vpop.f32.mrf.mxu0 }
 0x274   : > { %v5436_v52 = vpack.c.bf16 %v6137_v48, %v6133_v41  ;;  %v2216_v54 = vpop.f32.mrf.mxu1  ;;  %v2546_v56 = vmax.f32 %v1461_v46, %v1463_v53 }
 0x275   : > { %6150 = vrcp.f32 %v3555_v49  ;;  %v2984_v55 = vadd.f32 %v6873_v17, %v2833_v51  ;;  %v2690_v57 = vmax.f32 %v2214_v47, %v2216_v54  ;;  %v1467_v58 = vpop.f32.mrf.mxu0 }
 0x276   : > { %5620 = vst [vmem:[%s6613_s11 + $0x158] sm:$0xff] %v5436_v52   ;;  %6152 = vpow2.f32 %v4879_v50  ;;  %v2220_v59 = vpop.f32.mrf.mxu1  ;;  %v6139_v60 = vpop.eup %6138 }
 0x277   : > { %v4880_v2 = vmul.f32 -1.442695, %v2984_v55  ;;  %v2834_v61 = vmax.f32 %v2546_v56, %v2690_v57  ;;  %v3556_v62 = vadd.f32 1.0, %v6139_v60  ;;  %v1469_v63 = vpop.f32.mrf.mxu0  ;;  %v6141_v3 = vpop.eup %6140 }
 0x278   : > { %v2222_v1 = vpop.f32.mrf.mxu1  ;;  %v2547_v5 = vmax.f32 %v1467_v58, %v1469_v63 }
 0x279   : > { %6154 = vpow2.f32 %v4880_v2  ;;  %v2985_v4 = vadd.f32 %v6873_v17, %v2834_v61  ;;  %v2691_v6 = vmax.f32 %v2220_v59, %v2222_v1  ;;  %v1471_v8 = vpop.f32.mrf.mxu0 }
 0x27a   : > { %v6143_v7 = vpop.eup %6142  ;;  %v2224_v9 = vpop.f32.mrf.mxu1  ;;  %6156 = vrcp.f32 %v3556_v62 }
 0x27b   : > { %v6145_v10 = vpop.eup %6144  ;;  %v5441_v11 = vpack.c.bf16 %v6143_v7, %v6141_v3  ;;  %v4881_v12 = vmul.f32 -1.442695, %v2985_v4  ;;  %v2835_v13 = vmax.f32 %v2547_v5, %v2691_v6  ;;  %v1473_v15 = vpop.f32.mrf.mxu0 }
 0x27c   : > { %v3557_v14 = vadd.f32 1.0, %v6145_v10  ;;  %v2226_v16 = vpop.f32.mrf.mxu1  ;;  %v2548_v18 = vmax.f32 %v1471_v8, %v1473_v15 }
 0x27d   : > { %5621 = vst [vmem:[%s6613_s11 + $0x160] sm:$0xff] %v5441_v11   ;;  %6158 = vpow2.f32 %v4881_v12  ;;  %v2986_v0 = vadd.f32 %v6873_v17, %v2835_v13  ;;  %v2692_v19 = vmax.f32 %v2224_v9, %v2226_v16  ;;  %v1477_v20 = vpop.f32.mrf.mxu0 }
 0x27e   : > { %6160 = vrcp.f32 %v3557_v14  ;;  %v2230_v21 = vpop.f32.mrf.mxu1  ;;  %v6147_v22 = vpop.eup %6146 }
 0x27f   : > { %v4882_v23 = vmul.f32 -1.442695, %v2986_v0  ;;  %v2836_v24 = vmax.f32 %v2548_v18, %v2692_v19  ;;  %v3558_v25 = vadd.f32 1.0, %v6147_v22  ;;  %v1479_v26 = vpop.f32.mrf.mxu0  ;;  %v6149_v28 = vpop.eup %6148 }
 0x280   : > { %v2232_v27 = vpop.f32.mrf.mxu1  ;;  %v2549_v30 = vmax.f32 %v1477_v20, %v1479_v26 }
 0x281   : > { %6162 = vpow2.f32 %v4882_v23  ;;  %v2987_v29 = vadd.f32 %v6873_v17, %v2836_v24  ;;  %v2693_v31 = vmax.f32 %v2230_v21, %v2232_v27  ;;  %v1481_v33 = vpop.f32.mrf.mxu0 }
 0x282   : > { %v6151_v32 = vpop.eup %6150  ;;  %v2234_v34 = vpop.f32.mrf.mxu1  ;;  %6164 = vrcp.f32 %v3558_v25 }
 0x283   : > { %v6153_v35 = vpop.eup %6152  ;;  %v5446_v36 = vpack.c.bf16 %v6151_v32, %v6149_v28  ;;  %v4883_v37 = vmul.f32 -1.442695, %v2987_v29  ;;  %v2837_v38 = vmax.f32 %v2549_v30, %v2693_v31  ;;  %v1483_v40 = vpop.f32.mrf.mxu0 }
 0x284   : > { %v3559_v39 = vadd.f32 1.0, %v6153_v35  ;;  %v2236_v41 = vpop.f32.mrf.mxu1  ;;  %v2550_v43 = vmax.f32 %v1481_v33, %v1483_v40 }
 0x285   : > { %5622 = vst [vmem:[%s6613_s11 + $0x168] sm:$0xff] %v5446_v36   ;;  %6166 = vpow2.f32 %v4883_v37  ;;  %v2988_v42 = vadd.f32 %v6873_v17, %v2837_v38  ;;  %v2694_v44 = vmax.f32 %v2234_v34, %v2236_v41  ;;  %v1487_v46 = vpop.f32.mrf.mxu0 }
 0x286   : > { %v6155_v45 = vpop.eup %6154  ;;  %6168 = vrcp.f32 %v3559_v39  ;;  %v2240_v47 = vpop.f32.mrf.mxu1 }
 0x287   : > { %v4884_v48 = vmul.f32 -1.442695, %v2988_v42  ;;  %v2838_v49 = vmax.f32 %v2550_v43, %v2694_v44  ;;  %v3560_v50 = vadd.f32 1.0, %v6155_v45  ;;  %v1489_v51 = vpop.f32.mrf.mxu0  ;;  %v6157_v53 = vpop.eup %6156 }
 0x288   : > { %v2242_v52 = vpop.f32.mrf.mxu1  ;;  %v2551_v55 = vmax.f32 %v1487_v46, %v1489_v51 }
 0x289   : > { %v2989_v54 = vadd.f32 %v6873_v17, %v2838_v49  ;;  %v2695_v56 = vmax.f32 %v2240_v47, %v2242_v52  ;;  %6170 = vpow2.f32 %v4884_v48  ;;  %v1491_v58 = vpop.f32.mrf.mxu0 }
 0x28a   : > { %v6159_v57 = vpop.eup %6158  ;;  %v2244_v59 = vpop.f32.mrf.mxu1  ;;  %6172 = vrcp.f32 %v3560_v50 }
 0x28b   : > { %v6161_v60 = vpop.eup %6160  ;;  %v3561_v2 = vadd.f32 1.0, %v6159_v57  ;;  %v4885_v61 = vmul.f32 -1.442695, %v2989_v54  ;;  %v2839_v62 = vmax.f32 %v2551_v55, %v2695_v56  ;;  %v1493_v1 = vpop.f32.mrf.mxu0 }
 0x28c   : > { %v5451_v63 = vpack.c.bf16 %v6161_v60, %v6157_v53  ;;  %v2246_v3 = vpop.f32.mrf.mxu1  ;;  %v2552_v5 = vmax.f32 %v1491_v58, %v1493_v1 }
 0x28d   : > { %6174 = vrcp.f32 %v3561_v2  ;;  %v2990_v4 = vadd.f32 %v6873_v17, %v2839_v62  ;;  %v2696_v6 = vmax.f32 %v2244_v59, %v2246_v3  ;;  %v1497_v8 = vpop.f32.mrf.mxu0 }
 0x28e   : > { %v6163_v7 = vpop.eup %6162  ;;  %5623 = vst [vmem:[%s6613_s11 + $0x170] sm:$0xff] %v5451_v63   ;;  %6176 = vpow2.f32 %v4885_v61  ;;  %v2250_v9 = vpop.f32.mrf.mxu1 }
 0x28f   : > { %v4886_v10 = vmul.f32 -1.442695, %v2990_v4  ;;  %v2840_v11 = vmax.f32 %v2552_v5, %v2696_v6  ;;  %v3562_v12 = vadd.f32 1.0, %v6163_v7  ;;  %v1499_v13 = vpop.f32.mrf.mxu0  ;;  %v6165_v15 = vpop.eup %6164 }
 0x290   : > { %v2252_v14 = vpop.f32.mrf.mxu1  ;;  %v2553_v0 = vmax.f32 %v1497_v8, %v1499_v13 }
 0x291   : > { %v2991_v16 = vadd.f32 %v6873_v17, %v2840_v11  ;;  %v2697_v18 = vmax.f32 %v2250_v9, %v2252_v14  ;;  %6178 = vpow2.f32 %v4886_v10  ;;  %v1501_v20 = vpop.f32.mrf.mxu0 }
 0x292   : > { %v6167_v19 = vpop.eup %6166  ;;  %v2254_v21 = vpop.f32.mrf.mxu1  ;;  %6180 = vrcp.f32 %v3562_v12 }
 0x293   : > { %v6169_v22 = vpop.eup %6168  ;;  %v3563_v23 = vadd.f32 1.0, %v6167_v19  ;;  %v4887_v24 = vmul.f32 -1.442695, %v2991_v16  ;;  %v2841_v25 = vmax.f32 %v2553_v0, %v2697_v18  ;;  %v1503_v27 = vpop.f32.mrf.mxu0 }
 0x294   : > { %v5456_v26 = vpack.c.bf16 %v6169_v22, %v6165_v15  ;;  %v2256_v28 = vpop.f32.mrf.mxu1  ;;  %v2554_v30 = vmax.f32 %v1501_v20, %v1503_v27 }
 0x295   : > { %6182 = vrcp.f32 %v3563_v23  ;;  %v2992_v29 = vadd.f32 %v6873_v17, %v2841_v25  ;;  %v2698_v31 = vmax.f32 %v2254_v21, %v2256_v28  ;;  %v1507_v32 = vpop.f32.mrf.mxu0 }
 0x296   : > { %5624 = vst [vmem:[%s6613_s11 + $0x178] sm:$0xff] %v5456_v26   ;;  %6184 = vpow2.f32 %v4887_v24  ;;  %v2260_v33 = vpop.f32.mrf.mxu1  ;;  %v6171_v34 = vpop.eup %6170 }
 0x297   : > { %v4888_v35 = vmul.f32 -1.442695, %v2992_v29  ;;  %v2842_v36 = vmax.f32 %v2554_v30, %v2698_v31  ;;  %v3564_v37 = vadd.f32 1.0, %v6171_v34  ;;  %v1509_v38 = vpop.f32.mrf.mxu0  ;;  %v6173_v40 = vpop.eup %6172 }
 0x298   : > { %v2262_v39 = vpop.f32.mrf.mxu1  ;;  %v2555_v42 = vmax.f32 %v1507_v32, %v1509_v38 }
 0x299   : > { %6186 = vpow2.f32 %v4888_v35  ;;  %v2993_v41 = vadd.f32 %v6873_v17, %v2842_v36  ;;  %v2699_v43 = vmax.f32 %v2260_v33, %v2262_v39  ;;  %v1511_v45 = vpop.f32.mrf.mxu0 }
 0x29a   : > { %v6175_v44 = vpop.eup %6174  ;;  %v2264_v46 = vpop.f32.mrf.mxu1  ;;  %6188 = vrcp.f32 %v3564_v37 }
 0x29b   : > { %v6177_v47 = vpop.eup %6176  ;;  %v5461_v48 = vpack.c.bf16 %v6175_v44, %v6173_v40  ;;  %v4889_v49 = vmul.f32 -1.442695, %v2993_v41  ;;  %v2843_v50 = vmax.f32 %v2555_v42, %v2699_v43  ;;  %v1513_v52 = vpop.f32.mrf.mxu0 }
 0x29c   : > { %v3565_v51 = vadd.f32 1.0, %v6177_v47  ;;  %v2266_v53 = vpop.f32.mrf.mxu1  ;;  %v2556_v55 = vmax.f32 %v1511_v45, %v1513_v52 }
 0x29d   : > { %5625 = vst [vmem:[%s6613_s11 + $0x180] sm:$0xff] %v5461_v48   ;;  %6190 = vpow2.f32 %v4889_v49  ;;  %v2994_v54 = vadd.f32 %v6873_v17, %v2843_v50  ;;  %v2700_v56 = vmax.f32 %v2264_v46, %v2266_v53  ;;  %v1517_v57 = vpop.f32.mrf.mxu0 }
 0x29e   : > { %6192 = vrcp.f32 %v3565_v51  ;;  %v2270_v58 = vpop.f32.mrf.mxu1  ;;  %v6179_v59 = vpop.eup %6178 }
 0x29f   : > { %v4890_v60 = vmul.f32 -1.442695, %v2994_v54  ;;  %v2844_v2 = vmax.f32 %v2556_v55, %v2700_v56  ;;  %v3566_v61 = vadd.f32 1.0, %v6179_v59  ;;  %v1519_v62 = vpop.f32.mrf.mxu0  ;;  %v6181_v1 = vpop.eup %6180 }
 0x2a0   : > { %v2272_v63 = vpop.f32.mrf.mxu1  ;;  %v2557_v4 = vmax.f32 %v1517_v57, %v1519_v62 }
 0x2a1   : > { %6194 = vpow2.f32 %v4890_v60  ;;  %v2995_v3 = vadd.f32 %v6873_v17, %v2844_v2  ;;  %v2701_v5 = vmax.f32 %v2270_v58, %v2272_v63  ;;  %v1521_v7 = vpop.f32.mrf.mxu0 }
 0x2a2   : > { %v6183_v6 = vpop.eup %6182  ;;  %v2274_v8 = vpop.f32.mrf.mxu1  ;;  %6196 = vrcp.f32 %v3566_v61 }
 0x2a3   : > { %v6185_v9 = vpop.eup %6184  ;;  %v5466_v10 = vpack.c.bf16 %v6183_v6, %v6181_v1  ;;  %v4891_v11 = vmul.f32 -1.442695, %v2995_v3  ;;  %v2845_v12 = vmax.f32 %v2557_v4, %v2701_v5  ;;  %v1523_v14 = vpop.f32.mrf.mxu0 }
 0x2a4   : > { %v3567_v13 = vadd.f32 1.0, %v6185_v9  ;;  %v2276_v15 = vpop.f32.mrf.mxu1  ;;  %v2558_v0 = vmax.f32 %v1521_v7, %v1523_v14 }
 0x2a5   : > { %5626 = vst [vmem:[%s6613_s11 + $0x188] sm:$0xff] %v5466_v10   ;;  %6198 = vpow2.f32 %v4891_v11  ;;  %v2996_v16 = vadd.f32 %v6873_v17, %v2845_v12  ;;  %v2702_v18 = vmax.f32 %v2274_v8, %v2276_v15  ;;  %v1527_v20 = vpop.f32.mrf.mxu0 }
 0x2a6   : > { %v6187_v19 = vpop.eup %6186  ;;  %6200 = vrcp.f32 %v3567_v13  ;;  %v2280_v21 = vpop.f32.mrf.mxu1 }
 0x2a7   : > { %v4892_v22 = vmul.f32 -1.442695, %v2996_v16  ;;  %v2846_v23 = vmax.f32 %v2558_v0, %v2702_v18  ;;  %v3568_v24 = vadd.f32 1.0, %v6187_v19  ;;  %v1529_v25 = vpop.f32.mrf.mxu0  ;;  %v6189_v27 = vpop.eup %6188 }
 0x2a8   : > { %v2282_v26 = vpop.f32.mrf.mxu1  ;;  %v2559_v29 = vmax.f32 %v1527_v20, %v1529_v25 }
 0x2a9   : > { %v2997_v28 = vadd.f32 %v6873_v17, %v2846_v23  ;;  %v2703_v30 = vmax.f32 %v2280_v21, %v2282_v26  ;;  %6202 = vpow2.f32 %v4892_v22  ;;  %v1531_v32 = vpop.f32.mrf.mxu0 }
 0x2aa   : > { %v6191_v31 = vpop.eup %6190  ;;  %v2284_v33 = vpop.f32.mrf.mxu1  ;;  %6204 = vrcp.f32 %v3568_v24 }
 0x2ab   : > { %v6193_v34 = vpop.eup %6192  ;;  %v3569_v35 = vadd.f32 1.0, %v6191_v31  ;;  %v4893_v36 = vmul.f32 -1.442695, %v2997_v28  ;;  %v2847_v37 = vmax.f32 %v2559_v29, %v2703_v30  ;;  %v1533_v39 = vpop.f32.mrf.mxu0 }
 0x2ac   : > { %v5471_v38 = vpack.c.bf16 %v6193_v34, %v6189_v27  ;;  %v2286_v40 = vpop.f32.mrf.mxu1  ;;  %v2560_v42 = vmax.f32 %v1531_v32, %v1533_v39 }
 0x2ad   : > { %6206 = vrcp.f32 %v3569_v35  ;;  %v2998_v41 = vadd.f32 %v6873_v17, %v2847_v37  ;;  %v2704_v43 = vmax.f32 %v2284_v33, %v2286_v40  ;;  %v1537_v45 = vpop.f32.mrf.mxu0 }
 0x2ae   : > { %v6195_v44 = vpop.eup %6194  ;;  %5627 = vst [vmem:[%s6613_s11 + $0x190] sm:$0xff] %v5471_v38   ;;  %6208 = vpow2.f32 %v4893_v36  ;;  %v2290_v46 = vpop.f32.mrf.mxu1 }
 0x2af   : > { %v4894_v47 = vmul.f32 -1.442695, %v2998_v41  ;;  %v2848_v48 = vmax.f32 %v2560_v42, %v2704_v43  ;;  %v3570_v49 = vadd.f32 1.0, %v6195_v44  ;;  %v1539_v50 = vpop.f32.mrf.mxu0  ;;  %v6197_v52 = vpop.eup %6196 }
 0x2b0   : > { %v2292_v51 = vpop.f32.mrf.mxu1  ;;  %v2561_v54 = vmax.f32 %v1537_v45, %v1539_v50 }
 0x2b1   : > { %v2999_v53 = vadd.f32 %v6873_v17, %v2848_v48  ;;  %v2705_v55 = vmax.f32 %v2290_v46, %v2292_v51  ;;  %6210 = vpow2.f32 %v4894_v47  ;;  %v1541_v57 = vpop.f32.mrf.mxu0 }
 0x2b2   : > { %v6199_v56 = vpop.eup %6198  ;;  %v2294_v58 = vpop.f32.mrf.mxu1  ;;  %6212 = vrcp.f32 %v3570_v49 }
 0x2b3   : > { %v6201_v59 = vpop.eup %6200  ;;  %v3571_v60 = vadd.f32 1.0, %v6199_v56  ;;  %v4895_v2 = vmul.f32 -1.442695, %v2999_v53  ;;  %v2849_v61 = vmax.f32 %v2561_v54, %v2705_v55  ;;  %v1543_v63 = vpop.f32.mrf.mxu0 }
 0x2b4   : > { %v5476_v62 = vpack.c.bf16 %v6201_v59, %v6197_v52  ;;  %v2296_v1 = vpop.f32.mrf.mxu1  ;;  %v2562_v4 = vmax.f32 %v1541_v57, %v1543_v63 }
 0x2b5   : > { %6214 = vrcp.f32 %v3571_v60  ;;  %v3000_v3 = vadd.f32 %v6873_v17, %v2849_v61  ;;  %v2706_v5 = vmax.f32 %v2294_v58, %v2296_v1  ;;  %v1547_v6 = vpop.f32.mrf.mxu0 }
 0x2b6   : > { %5628 = vst [vmem:[%s6613_s11 + $0x198] sm:$0xff] %v5476_v62   ;;  %6216 = vpow2.f32 %v4895_v2  ;;  %v2300_v7 = vpop.f32.mrf.mxu1  ;;  %v6203_v8 = vpop.eup %6202 }
 0x2b7   : > { %v4896_v9 = vmul.f32 -1.442695, %v3000_v3  ;;  %v2850_v10 = vmax.f32 %v2562_v4, %v2706_v5  ;;  %v3572_v11 = vadd.f32 1.0, %v6203_v8  ;;  %v1549_v12 = vpop.f32.mrf.mxu0  ;;  %v6205_v14 = vpop.eup %6204 }
 0x2b8   : > { %v2302_v13 = vpop.f32.mrf.mxu1  ;;  %v2563_v16 = vmax.f32 %v1547_v6, %v1549_v12 }
 0x2b9   : > { %6218 = vpow2.f32 %v4896_v9  ;;  %v3001_v15 = vadd.f32 %v6873_v17, %v2850_v10  ;;  %v2707_v0 = vmax.f32 %v2300_v7, %v2302_v13  ;;  %v1551_v19 = vpop.f32.mrf.mxu0 }
 0x2ba   : > { %v6207_v18 = vpop.eup %6206  ;;  %v2304_v20 = vpop.f32.mrf.mxu1  ;;  %6220 = vrcp.f32 %v3572_v11 }
 0x2bb   : > { %v6209_v21 = vpop.eup %6208  ;;  %v5481_v22 = vpack.c.bf16 %v6207_v18, %v6205_v14  ;;  %v4897_v23 = vmul.f32 -1.442695, %v3001_v15  ;;  %v2851_v24 = vmax.f32 %v2563_v16, %v2707_v0  ;;  %v1553_v26 = vpop.f32.mrf.mxu0 }
 0x2bc   : > { %v3573_v25 = vadd.f32 1.0, %v6209_v21  ;;  %v2306_v27 = vpop.f32.mrf.mxu1  ;;  %v2564_v29 = vmax.f32 %v1551_v19, %v1553_v26 }
 0x2bd   : > { %5629 = vst [vmem:[%s6613_s11 + $0x1a0] sm:$0xff] %v5481_v22   ;;  %6222 = vpow2.f32 %v4897_v23  ;;  %v3002_v28 = vadd.f32 %v6873_v17, %v2851_v24  ;;  %v2708_v30 = vmax.f32 %v2304_v20, %v2306_v27  ;;  %v1557_v31 = vpop.f32.mrf.mxu0 }
 0x2be   : > { %6224 = vrcp.f32 %v3573_v25  ;;  %v2310_v32 = vpop.f32.mrf.mxu1  ;;  %v6211_v33 = vpop.eup %6210 }
 0x2bf   : > { %v4898_v34 = vmul.f32 -1.442695, %v3002_v28  ;;  %v2852_v35 = vmax.f32 %v2564_v29, %v2708_v30  ;;  %v3574_v36 = vadd.f32 1.0, %v6211_v33  ;;  %v1559_v37 = vpop.f32.mrf.mxu0  ;;  %v6213_v39 = vpop.eup %6212 }
 0x2c0   : > { %v2312_v38 = vpop.f32.mrf.mxu1  ;;  %v2565_v41 = vmax.f32 %v1557_v31, %v1559_v37 }
 0x2c1   : > { %6226 = vpow2.f32 %v4898_v34  ;;  %v3003_v40 = vadd.f32 %v6873_v17, %v2852_v35  ;;  %v2709_v42 = vmax.f32 %v2310_v32, %v2312_v38  ;;  %v1561_v44 = vpop.f32.mrf.mxu0 }
 0x2c2   : > { %v6215_v43 = vpop.eup %6214  ;;  %v2314_v45 = vpop.f32.mrf.mxu1  ;;  %6228 = vrcp.f32 %v3574_v36 }
 0x2c3   : > { %v6217_v46 = vpop.eup %6216  ;;  %v5486_v47 = vpack.c.bf16 %v6215_v43, %v6213_v39  ;;  %v4899_v48 = vmul.f32 -1.442695, %v3003_v40  ;;  %v2853_v49 = vmax.f32 %v2565_v41, %v2709_v42  ;;  %v1563_v51 = vpop.f32.mrf.mxu0 }
 0x2c4   : > { %v3575_v50 = vadd.f32 1.0, %v6217_v46  ;;  %v2316_v52 = vpop.f32.mrf.mxu1  ;;  %v2566_v54 = vmax.f32 %v1561_v44, %v1563_v51 }
 0x2c5   : > { %5630 = vst [vmem:[%s6613_s11 + $0x1a8] sm:$0xff] %v5486_v47   ;;  %6230 = vpow2.f32 %v4899_v48  ;;  %v3004_v53 = vadd.f32 %v6873_v17, %v2853_v49  ;;  %v2710_v55 = vmax.f32 %v2314_v45, %v2316_v52  ;;  %v1567_v57 = vpop.f32.mrf.mxu0 }
 0x2c6   : > { %v6219_v56 = vpop.eup %6218  ;;  %6232 = vrcp.f32 %v3575_v50  ;;  %v2320_v58 = vpop.f32.mrf.mxu1 }
 0x2c7   : > { %v4900_v59 = vmul.f32 -1.442695, %v3004_v53  ;;  %v2854_v60 = vmax.f32 %v2566_v54, %v2710_v55  ;;  %v3576_v2 = vadd.f32 1.0, %v6219_v56  ;;  %v1569_v61 = vpop.f32.mrf.mxu0  ;;  %v6221_v63 = vpop.eup %6220 }
 0x2c8   : > { %v2322_v62 = vpop.f32.mrf.mxu1  ;;  %v2567_v3 = vmax.f32 %v1567_v57, %v1569_v61 }
 0x2c9   : > { %v3005_v1 = vadd.f32 %v6873_v17, %v2854_v60  ;;  %v2711_v4 = vmax.f32 %v2320_v58, %v2322_v62  ;;  %6234 = vpow2.f32 %v4900_v59  ;;  %v1571_v6 = vpop.f32.mrf.mxu0 }
 0x2ca   : > { %v6223_v5 = vpop.eup %6222  ;;  %v2324_v7 = vpop.f32.mrf.mxu1  ;;  %6236 = vrcp.f32 %v3576_v2 }
 0x2cb   : > { %v6225_v8 = vpop.eup %6224  ;;  %v3577_v9 = vadd.f32 1.0, %v6223_v5  ;;  %v4901_v10 = vmul.f32 -1.442695, %v3005_v1  ;;  %v2855_v11 = vmax.f32 %v2567_v3, %v2711_v4  ;;  %v1573_v13 = vpop.f32.mrf.mxu0 }
 0x2cc   : > { %v5491_v12 = vpack.c.bf16 %v6225_v8, %v6221_v63  ;;  %v2326_v14 = vpop.f32.mrf.mxu1  ;;  %v2568_v16 = vmax.f32 %v1571_v6, %v1573_v13 }
 0x2cd   : > { %6238 = vrcp.f32 %v3577_v9  ;;  %v3006_v15 = vadd.f32 %v6873_v17, %v2855_v11  ;;  %v2712_v0 = vmax.f32 %v2324_v7, %v2326_v14  ;;  %v1577_v19 = vpop.f32.mrf.mxu0 }
 0x2ce   : > { %v6227_v18 = vpop.eup %6226  ;;  %5631 = vst [vmem:[%s6613_s11 + $0x1b0] sm:$0xff] %v5491_v12   ;;  %6240 = vpow2.f32 %v4901_v10  ;;  %v2330_v20 = vpop.f32.mrf.mxu1 }
 0x2cf   : > { %v4902_v21 = vmul.f32 -1.442695, %v3006_v15  ;;  %v2856_v22 = vmax.f32 %v2568_v16, %v2712_v0  ;;  %v3578_v23 = vadd.f32 1.0, %v6227_v18  ;;  %v1579_v24 = vpop.f32.mrf.mxu0  ;;  %v6229_v26 = vpop.eup %6228 }
 0x2d0   : > { %v2332_v25 = vpop.f32.mrf.mxu1  ;;  %v2569_v28 = vmax.f32 %v1577_v19, %v1579_v24 }
 0x2d1   : > { %v3007_v27 = vadd.f32 %v6873_v17, %v2856_v22  ;;  %v2713_v29 = vmax.f32 %v2330_v20, %v2332_v25  ;;  %6242 = vpow2.f32 %v4902_v21  ;;  %v1581_v31 = vpop.f32.mrf.mxu0 }
 0x2d2   : > { %v6231_v30 = vpop.eup %6230  ;;  %v2334_v32 = vpop.f32.mrf.mxu1  ;;  %6244 = vrcp.f32 %v3578_v23 }
 0x2d3   : > { %v6233_v33 = vpop.eup %6232  ;;  %v3579_v34 = vadd.f32 1.0, %v6231_v30  ;;  %v4903_v35 = vmul.f32 -1.442695, %v3007_v27  ;;  %v2857_v36 = vmax.f32 %v2569_v28, %v2713_v29  ;;  %v1583_v38 = vpop.f32.mrf.mxu0 }
 0x2d4   : > { %v5496_v37 = vpack.c.bf16 %v6233_v33, %v6229_v26  ;;  %v2336_v39 = vpop.f32.mrf.mxu1  ;;  %v2570_v41 = vmax.f32 %v1581_v31, %v1583_v38 }
 0x2d5   : > { %6246 = vrcp.f32 %v3579_v34  ;;  %v3008_v40 = vadd.f32 %v6873_v17, %v2857_v36  ;;  %v2714_v42 = vmax.f32 %v2334_v32, %v2336_v39  ;;  %v1587_v43 = vpop.f32.mrf.mxu0  ;;  %v6930_v39 = vld [vmem:[%s6970_s2] ss:$0 sm:$0xff] }
 0x2d6   : > { %5632 = vst [vmem:[%s6613_s11 + $0x1b8] sm:$0xff] %v5496_v37   ;;  %6248 = vpow2.f32 %v4903_v35  ;;  %v2340_v44 = vpop.f32.mrf.mxu1  ;;  %v6235_v45 = vpop.eup %6234 }
 0x2d7   : > { %v4904_v46 = vmul.f32 -1.442695, %v3008_v40  ;;  %v2858_v47 = vmax.f32 %v2570_v41, %v2714_v42  ;;  %v3580_v48 = vadd.f32 1.0, %v6235_v45  ;;  %v1589_v49 = vpop.f32.mrf.mxu0  ;;  %v6237_v51 = vpop.eup %6236 }
 0x2d8   : > { %v2342_v50 = vpop.f32.mrf.mxu1  ;;  %v2571_v53 = vmax.f32 %v1587_v43, %v1589_v49 }
 0x2d9   : > { %6250 = vpow2.f32 %v4904_v46  ;;  %v3009_v52 = vadd.f32 %v6873_v17, %v2858_v47  ;;  %v2715_v54 = vmax.f32 %v2340_v44, %v2342_v50  ;;  %v1591_v56 = vpop.f32.mrf.mxu0 }
 0x2da   : > { %v6239_v55 = vpop.eup %6238  ;;  %v2344_v57 = vpop.f32.mrf.mxu1  ;;  %6252 = vrcp.f32 %v3580_v48 }
 0x2db   : > { %v6241_v58 = vpop.eup %6240  ;;  %v5501_v59 = vpack.c.bf16 %v6239_v55, %v6237_v51  ;;  %v4905_v60 = vmul.f32 -1.442695, %v3009_v52  ;;  %v2859_v2 = vmax.f32 %v2571_v53, %v2715_v54  ;;  %v1593_v62 = vpop.f32.mrf.mxu0 }
 0x2dc   : > { %v3581_v61 = vadd.f32 1.0, %v6241_v58  ;;  %v2346_v63 = vpop.f32.mrf.mxu1  ;;  %v2572_v3 = vmax.f32 %v1591_v56, %v1593_v62 }
 0x2dd   : > { %5633 = vst [vmem:[%s6613_s11 + $0x1c0] sm:$0xff] %v5501_v59   ;;  %6254 = vpow2.f32 %v4905_v60  ;;  %v3010_v1 = vadd.f32 %v6873_v17, %v2859_v2  ;;  %v2716_v4 = vmax.f32 %v2344_v57, %v2346_v63  ;;  %v1597_v5 = vpop.f32.mrf.mxu0 }
 0x2de   : > { %6256 = vrcp.f32 %v3581_v61  ;;  %v2350_v6 = vpop.f32.mrf.mxu1  ;;  %v6243_v7 = vpop.eup %6242 }
 0x2df   : > { %v4906_v8 = vmul.f32 -1.442695, %v3010_v1  ;;  %v2860_v9 = vmax.f32 %v2572_v3, %v2716_v4  ;;  %v3582_v10 = vadd.f32 1.0, %v6243_v7  ;;  %v1599_v11 = vpop.f32.mrf.mxu0  ;;  %v6245_v13 = vpop.eup %6244 }
 0x2e0   : > { %v2352_v12 = vpop.f32.mrf.mxu1  ;;  %v2573_v15 = vmax.f32 %v1597_v5, %v1599_v11 }
 0x2e1   : > { %6258 = vpow2.f32 %v4906_v8  ;;  %v3011_v14 = vadd.f32 %v6873_v17, %v2860_v9  ;;  %v2717_v16 = vmax.f32 %v2350_v6, %v2352_v12  ;;  %v1601_v18 = vpop.f32.mrf.mxu0 }
 0x2e2   : > { %v6247_v0 = vpop.eup %6246  ;;  %v2354_v19 = vpop.f32.mrf.mxu1  ;;  %6260 = vrcp.f32 %v3582_v10 }
 0x2e3   : > { %v6249_v20 = vpop.eup %6248  ;;  %v5506_v21 = vpack.c.bf16 %v6247_v0, %v6245_v13  ;;  %v4907_v22 = vmul.f32 -1.442695, %v3011_v14  ;;  %v2861_v23 = vmax.f32 %v2573_v15, %v2717_v16  ;;  %v1603_v25 = vpop.f32.mrf.mxu0 }
 0x2e4   : > { %v3583_v24 = vadd.f32 1.0, %v6249_v20  ;;  %v2356_v26 = vpop.f32.mrf.mxu1  ;;  %v2574_v28 = vmax.f32 %v1601_v18, %v1603_v25 }
 0x2e5   : > { %5634 = vst [vmem:[%s6613_s11 + $0x1c8] sm:$0xff] %v5506_v21   ;;  %6262 = vpow2.f32 %v4907_v22  ;;  %v3012_v27 = vadd.f32 %v6873_v17, %v2861_v23  ;;  %v2718_v29 = vmax.f32 %v2354_v19, %v2356_v26  ;;  %v1607_v31 = vpop.f32.mrf.mxu0 }
 0x2e6   : > { %v6251_v30 = vpop.eup %6250  ;;  %6264 = vrcp.f32 %v3583_v24  ;;  %v2360_v32 = vpop.f32.mrf.mxu1 }
 0x2e7   : > { %v4908_v33 = vmul.f32 -1.442695, %v3012_v27  ;;  %v2862_v34 = vmax.f32 %v2574_v28, %v2718_v29  ;;  %v3584_v35 = vadd.f32 1.0, %v6251_v30  ;;  %v1609_v36 = vpop.f32.mrf.mxu0  ;;  %v6253_v38 = vpop.eup %6252 }
 0x2e8   : > { %v2362_v37 = vpop.f32.mrf.mxu1  ;;  %v2575_v17 = vmax.f32 %v1607_v31, %v1609_v36 }
 0x2e9   : > { %v3013_v40 = vadd.f32 %v6930_v39, %v2862_v34  ;;  %v2719_v41 = vmax.f32 %v2360_v32, %v2362_v37  ;;  %6266 = vpow2.f32 %v4908_v33  ;;  %v1611_v43 = vpop.f32.mrf.mxu0 }
 0x2ea   : > { %v6255_v42 = vpop.eup %6254  ;;  %v2364_v44 = vpop.f32.mrf.mxu1  ;;  %6268 = vrcp.f32 %v3584_v35 }
 0x2eb   : > { %v6257_v45 = vpop.eup %6256  ;;  %v3585_v46 = vadd.f32 1.0, %v6255_v42  ;;  %v4909_v47 = vmul.f32 -1.442695, %v3013_v40  ;;  %v2863_v48 = vmax.f32 %v2575_v17, %v2719_v41  ;;  %v1613_v50 = vpop.f32.mrf.mxu0 }
 0x2ec   : > { %v5511_v49 = vpack.c.bf16 %v6257_v45, %v6253_v38  ;;  %v2366_v51 = vpop.f32.mrf.mxu1  ;;  %v2576_v53 = vmax.f32 %v1611_v43, %v1613_v50 }
 0x2ed   : > { %6270 = vrcp.f32 %v3585_v46  ;;  %v3014_v52 = vadd.f32 %v6930_v39, %v2863_v48  ;;  %v2720_v54 = vmax.f32 %v2364_v44, %v2366_v51  ;;  %v1617_v56 = vpop.f32.mrf.mxu0 }
 0x2ee   : > { %v6259_v55 = vpop.eup %6258  ;;  %5635 = vst [vmem:[%s6613_s11 + $0x1d0] sm:$0xff] %v5511_v49   ;;  %6272 = vpow2.f32 %v4909_v47  ;;  %v2370_v57 = vpop.f32.mrf.mxu1 }
 0x2ef   : > { %v4910_v58 = vmul.f32 -1.442695, %v3014_v52  ;;  %v2864_v59 = vmax.f32 %v2576_v53, %v2720_v54  ;;  %v3586_v60 = vadd.f32 1.0, %v6259_v55  ;;  %v1619_v2 = vpop.f32.mrf.mxu0  ;;  %v6261_v62 = vpop.eup %6260 }
 0x2f0   : > { %v2372_v61 = vpop.f32.mrf.mxu1  ;;  %v2577_v1 = vmax.f32 %v1617_v56, %v1619_v2 }
 0x2f1   : > { %v3015_v63 = vadd.f32 %v6930_v39, %v2864_v59  ;;  %v2721_v3 = vmax.f32 %v2370_v57, %v2372_v61  ;;  %6274 = vpow2.f32 %v4910_v58  ;;  %v1621_v5 = vpop.f32.mrf.mxu0 }
 0x2f2   : > { %v6263_v4 = vpop.eup %6262  ;;  %v2374_v6 = vpop.f32.mrf.mxu1  ;;  %6276 = vrcp.f32 %v3586_v60 }
 0x2f3   : > { %v6265_v7 = vpop.eup %6264  ;;  %v3587_v8 = vadd.f32 1.0, %v6263_v4  ;;  %v4911_v9 = vmul.f32 -1.442695, %v3015_v63  ;;  %v2865_v10 = vmax.f32 %v2577_v1, %v2721_v3  ;;  %v1623_v12 = vpop.f32.mrf.mxu0 }
 0x2f4   : > { %v5516_v11 = vpack.c.bf16 %v6265_v7, %v6261_v62  ;;  %v2376_v13 = vpop.f32.mrf.mxu1  ;;  %v2578_v15 = vmax.f32 %v1621_v5, %v1623_v12 }
 0x2f5   : > { %6278 = vrcp.f32 %v3587_v8  ;;  %v3016_v14 = vadd.f32 %v6930_v39, %v2865_v10  ;;  %v2722_v16 = vmax.f32 %v2374_v6, %v2376_v13  ;;  %v1627_v0 = vpop.f32.mrf.mxu0 }
 0x2f6   : > { %5636 = vst [vmem:[%s6613_s11 + $0x1d8] sm:$0xff] %v5516_v11   ;;  %6280 = vpow2.f32 %v4911_v9  ;;  %v2380_v18 = vpop.f32.mrf.mxu1  ;;  %v6267_v19 = vpop.eup %6266 }
 0x2f7   : > { %v4912_v20 = vmul.f32 -1.442695, %v3016_v14  ;;  %v2866_v21 = vmax.f32 %v2578_v15, %v2722_v16  ;;  %v3588_v22 = vadd.f32 1.0, %v6267_v19  ;;  %v1629_v23 = vpop.f32.mrf.mxu0  ;;  %v6269_v25 = vpop.eup %6268 }
 0x2f8   : > { %v2382_v24 = vpop.f32.mrf.mxu1  ;;  %v2579_v27 = vmax.f32 %v1627_v0, %v1629_v23 }
 0x2f9   : > { %6282 = vpow2.f32 %v4912_v20  ;;  %v3017_v26 = vadd.f32 %v6930_v39, %v2866_v21  ;;  %v2723_v28 = vmax.f32 %v2380_v18, %v2382_v24  ;;  %v1631_v30 = vpop.f32.mrf.mxu0 }
 0x2fa   : > { %v6271_v29 = vpop.eup %6270  ;;  %v2384_v31 = vpop.f32.mrf.mxu1  ;;  %6284 = vrcp.f32 %v3588_v22 }
 0x2fb   : > { %v6273_v32 = vpop.eup %6272  ;;  %v5521_v33 = vpack.c.bf16 %v6271_v29, %v6269_v25  ;;  %v4913_v34 = vmul.f32 -1.442695, %v3017_v26  ;;  %v2867_v35 = vmax.f32 %v2579_v27, %v2723_v28  ;;  %v1633_v37 = vpop.f32.mrf.mxu0 }
 0x2fc   : > { %v3589_v36 = vadd.f32 1.0, %v6273_v32  ;;  %v2386_v38 = vpop.f32.mrf.mxu1  ;;  %v2580_v17 = vmax.f32 %v1631_v30, %v1633_v37 }
 0x2fd   : > { %5637 = vst [vmem:[%s6613_s11 + $0x1e0] sm:$0xff] %v5521_v33   ;;  %6286 = vpow2.f32 %v4913_v34  ;;  %v3018_v40 = vadd.f32 %v6930_v39, %v2867_v35  ;;  %v2724_v41 = vmax.f32 %v2384_v31, %v2386_v38  ;;  %v1637_v42 = vpop.f32.mrf.mxu0 }
 0x2fe   : > { %6288 = vrcp.f32 %v3589_v36  ;;  %v2390_v43 = vpop.f32.mrf.mxu1  ;;  %v6275_v44 = vpop.eup %6274 }
 0x2ff   : > { %v4914_v45 = vmul.f32 -1.442695, %v3018_v40  ;;  %v2868_v46 = vmax.f32 %v2580_v17, %v2724_v41  ;;  %v3590_v47 = vadd.f32 1.0, %v6275_v44  ;;  %v1639_v48 = vpop.f32.mrf.mxu0  ;;  %v6277_v50 = vpop.eup %6276 }
 0x300   : > { %v2392_v49 = vpop.f32.mrf.mxu1  ;;  %v2581_v52 = vmax.f32 %v1637_v42, %v1639_v48 }
 0x301   : > { %6290 = vpow2.f32 %v4914_v45  ;;  %v3019_v51 = vadd.f32 %v6930_v39, %v2868_v46  ;;  %v2725_v53 = vmax.f32 %v2390_v43, %v2392_v49  ;;  %v1641_v55 = vpop.f32.mrf.mxu0 }
 0x302   : > { %v6279_v54 = vpop.eup %6278  ;;  %v2394_v56 = vpop.f32.mrf.mxu1  ;;  %6292 = vrcp.f32 %v3590_v47 }
 0x303   : > { %v6281_v57 = vpop.eup %6280  ;;  %v5526_v58 = vpack.c.bf16 %v6279_v54, %v6277_v50  ;;  %v4915_v59 = vmul.f32 -1.442695, %v3019_v51  ;;  %v2869_v60 = vmax.f32 %v2581_v52, %v2725_v53  ;;  %v1643_v61 = vpop.f32.mrf.mxu0 }
 0x304   : > { %v3591_v2 = vadd.f32 1.0, %v6281_v57  ;;  %v2396_v62 = vpop.f32.mrf.mxu1  ;;  %v2582_v1 = vmax.f32 %v1641_v55, %v1643_v61 }
 0x305   : > { %5638 = vst [vmem:[%s6613_s11 + $0x1e8] sm:$0xff] %v5526_v58   ;;  %6294 = vpow2.f32 %v4915_v59  ;;  %v3020_v63 = vadd.f32 %v6930_v39, %v2869_v60  ;;  %v2726_v3 = vmax.f32 %v2394_v56, %v2396_v62  ;;  %v1647_v5 = vpop.f32.mrf.mxu0 }
 0x306   : > { %v6283_v4 = vpop.eup %6282  ;;  %6296 = vrcp.f32 %v3591_v2  ;;  %v2400_v6 = vpop.f32.mrf.mxu1 }
 0x307   : > { %v4916_v7 = vmul.f32 -1.442695, %v3020_v63  ;;  %v2870_v8 = vmax.f32 %v2582_v1, %v2726_v3  ;;  %v3592_v9 = vadd.f32 1.0, %v6283_v4  ;;  %v1649_v10 = vpop.f32.mrf.mxu0  ;;  %v6285_v12 = vpop.eup %6284 }
 0x308   : > { %v2402_v11 = vpop.f32.mrf.mxu1  ;;  %v2583_v14 = vmax.f32 %v1647_v5, %v1649_v10 }
 0x309   : > { %v3021_v13 = vadd.f32 %v6930_v39, %v2870_v8  ;;  %v2727_v15 = vmax.f32 %v2400_v6, %v2402_v11  ;;  %6298 = vpow2.f32 %v4916_v7  ;;  %v1651_v0 = vpop.f32.mrf.mxu0 }
 0x30a   : > { %v6287_v16 = vpop.eup %6286  ;;  %v2404_v18 = vpop.f32.mrf.mxu1  ;;  %6300 = vrcp.f32 %v3592_v9 }
 0x30b   : > { %v6289_v19 = vpop.eup %6288  ;;  %v3593_v20 = vadd.f32 1.0, %v6287_v16  ;;  %v4917_v21 = vmul.f32 -1.442695, %v3021_v13  ;;  %v2871_v22 = vmax.f32 %v2583_v14, %v2727_v15  ;;  %v1653_v24 = vpop.f32.mrf.mxu0 }
 0x30c   : > { %v5531_v23 = vpack.c.bf16 %v6289_v19, %v6285_v12  ;;  %v2406_v25 = vpop.f32.mrf.mxu1  ;;  %v2584_v27 = vmax.f32 %v1651_v0, %v1653_v24 }
 0x30d   : > { %6302 = vrcp.f32 %v3593_v20  ;;  %v3022_v26 = vadd.f32 %v6930_v39, %v2871_v22  ;;  %v2728_v28 = vmax.f32 %v2404_v18, %v2406_v25  ;;  %v1657_v30 = vpop.f32.mrf.mxu0 }
 0x30e   : > { %v6291_v29 = vpop.eup %6290  ;;  %5639 = vst [vmem:[%s6613_s11 + $0x1f0] sm:$0xff] %v5531_v23   ;;  %6304 = vpow2.f32 %v4917_v21  ;;  %v2410_v31 = vpop.f32.mrf.mxu1 }
 0x30f   : > { %v4918_v32 = vmul.f32 -1.442695, %v3022_v26  ;;  %v2872_v33 = vmax.f32 %v2584_v27, %v2728_v28  ;;  %v3594_v34 = vadd.f32 1.0, %v6291_v29  ;;  %v1659_v35 = vpop.f32.mrf.mxu0  ;;  %v6293_v37 = vpop.eup %6292 }
 0x310   : > { %v2412_v36 = vpop.f32.mrf.mxu1  ;;  %v2585_v40 = vmax.f32 %v1657_v30, %v1659_v35 }
 0x311   : > { %v3023_v38 = vadd.f32 %v6930_v39, %v2872_v33  ;;  %v2729_v17 = vmax.f32 %v2410_v31, %v2412_v36  ;;  %6306 = vpow2.f32 %v4918_v32  ;;  %v1661_v42 = vpop.f32.mrf.mxu0 }
 0x312   : > { %v6295_v41 = vpop.eup %6294  ;;  %v2414_v43 = vpop.f32.mrf.mxu1  ;;  %6308 = vrcp.f32 %v3594_v34 }
 0x313   : > { %v6297_v44 = vpop.eup %6296  ;;  %v3595_v45 = vadd.f32 1.0, %v6295_v41  ;;  %v4919_v46 = vmul.f32 -1.442695, %v3023_v38  ;;  %v2873_v47 = vmax.f32 %v2585_v40, %v2729_v17  ;;  %v1663_v49 = vpop.f32.mrf.mxu0 }
 0x314   : > { %v5536_v48 = vpack.c.bf16 %v6297_v44, %v6293_v37  ;;  %v2416_v50 = vpop.f32.mrf.mxu1  ;;  %v2586_v52 = vmax.f32 %v1661_v42, %v1663_v49 }
 0x315   : > { %6310 = vrcp.f32 %v3595_v45  ;;  %v3024_v51 = vadd.f32 %v6930_v39, %v2873_v47  ;;  %v2730_v53 = vmax.f32 %v2414_v43, %v2416_v50  ;;  %v1667_v54 = vpop.f32.mrf.mxu0 }
 0x316   : > { %5640 = vst [vmem:[%s6613_s11 + $0x1f8] sm:$0xff] %v5536_v48   ;;  %6312 = vpow2.f32 %v4919_v46  ;;  %v2420_v55 = vpop.f32.mrf.mxu1  ;;  %v6299_v56 = vpop.eup %6298 }
 0x317   : > { %v4920_v57 = vmul.f32 -1.442695, %v3024_v51  ;;  %v2874_v58 = vmax.f32 %v2586_v52, %v2730_v53  ;;  %v3596_v59 = vadd.f32 1.0, %v6299_v56  ;;  %v1669_v60 = vpop.f32.mrf.mxu0  ;;  %v6301_v61 = vpop.eup %6300 }
 0x318   : > { %v2422_v2 = vpop.f32.mrf.mxu1  ;;  %v2587_v63 = vmax.f32 %v1667_v54, %v1669_v60 }
 0x319   : > { %6314 = vpow2.f32 %v4920_v57  ;;  %v3025_v62 = vadd.f32 %v6930_v39, %v2874_v58  ;;  %v2731_v1 = vmax.f32 %v2420_v55, %v2422_v2  ;;  %v1671_v4 = vpop.f32.mrf.mxu0 }
 0x31a   : > { %v6303_v3 = vpop.eup %6302  ;;  %v2424_v5 = vpop.f32.mrf.mxu1  ;;  %6316 = vrcp.f32 %v3596_v59 }
 0x31b   : > { %v6305_v6 = vpop.eup %6304  ;;  %v5541_v7 = vpack.c.bf16 %v6303_v3, %v6301_v61  ;;  %v4921_v8 = vmul.f32 -1.442695, %v3025_v62  ;;  %v2875_v9 = vmax.f32 %v2587_v63, %v2731_v1  ;;  %v1673_v11 = vpop.f32.mrf.mxu0 }
 0x31c   : > { %v3597_v10 = vadd.f32 1.0, %v6305_v6  ;;  %v2426_v12 = vpop.f32.mrf.mxu1  ;;  %v2588_v14 = vmax.f32 %v1671_v4, %v1673_v11 }
 0x31d   : > { %5641 = vst [vmem:[%s6613_s11 + $0x200] sm:$0xff] %v5541_v7   ;;  %6318 = vpow2.f32 %v4921_v8  ;;  %v3026_v13 = vadd.f32 %v6930_v39, %v2875_v9  ;;  %v2732_v15 = vmax.f32 %v2424_v5, %v2426_v12  ;;  %v1677_v16 = vpop.f32.mrf.mxu0 }
 0x31e   : > { %6320 = vrcp.f32 %v3597_v10  ;;  %v2430_v0 = vpop.f32.mrf.mxu1  ;;  %v6307_v18 = vpop.eup %6306 }
 0x31f   : > { %v4922_v19 = vmul.f32 -1.442695, %v3026_v13  ;;  %v2876_v20 = vmax.f32 %v2588_v14, %v2732_v15  ;;  %v3598_v21 = vadd.f32 1.0, %v6307_v18  ;;  %v1679_v22 = vpop.f32.mrf.mxu0  ;;  %v6309_v24 = vpop.eup %6308 }
 0x320   : > { %v2432_v23 = vpop.f32.mrf.mxu1  ;;  %v2589_v26 = vmax.f32 %v1677_v16, %v1679_v22 }
 0x321   : > { %6322 = vpow2.f32 %v4922_v19  ;;  %v3027_v25 = vadd.f32 %v6930_v39, %v2876_v20  ;;  %v2733_v27 = vmax.f32 %v2430_v0, %v2432_v23  ;;  %v1681_v29 = vpop.f32.mrf.mxu0 }
 0x322   : > { %v6311_v28 = vpop.eup %6310  ;;  %v2434_v30 = vpop.f32.mrf.mxu1  ;;  %6324 = vrcp.f32 %v3598_v21 }
 0x323   : > { %v6313_v31 = vpop.eup %6312  ;;  %v5546_v32 = vpack.c.bf16 %v6311_v28, %v6309_v24  ;;  %v4923_v33 = vmul.f32 -1.442695, %v3027_v25  ;;  %v2877_v34 = vmax.f32 %v2589_v26, %v2733_v27  ;;  %v1683_v36 = vpop.f32.mrf.mxu0 }
 0x324   : > { %v3599_v35 = vadd.f32 1.0, %v6313_v31  ;;  %v2436_v37 = vpop.f32.mrf.mxu1  ;;  %v2590_v40 = vmax.f32 %v1681_v29, %v1683_v36 }
 0x325   : > { %5642 = vst [vmem:[%s6613_s11 + $0x208] sm:$0xff] %v5546_v32   ;;  %6326 = vpow2.f32 %v4923_v33  ;;  %v3028_v38 = vadd.f32 %v6930_v39, %v2877_v34  ;;  %v2734_v17 = vmax.f32 %v2434_v30, %v2436_v37  ;;  %v1687_v42 = vpop.f32.mrf.mxu0 }
 0x326   : > { %v6315_v41 = vpop.eup %6314  ;;  %6328 = vrcp.f32 %v3599_v35  ;;  %v2440_v43 = vpop.f32.mrf.mxu1 }
 0x327   : > { %v4924_v44 = vmul.f32 -1.442695, %v3028_v38  ;;  %v2878_v45 = vmax.f32 %v2590_v40, %v2734_v17  ;;  %v3600_v46 = vadd.f32 1.0, %v6315_v41  ;;  %v1689_v47 = vpop.f32.mrf.mxu0  ;;  %v6317_v49 = vpop.eup %6316 }
 0x328   : > { %v2442_v48 = vpop.f32.mrf.mxu1  ;;  %v2591_v51 = vmax.f32 %v1687_v42, %v1689_v47 }
 0x329   : > { %v3029_v50 = vadd.f32 %v6930_v39, %v2878_v45  ;;  %v2735_v52 = vmax.f32 %v2440_v43, %v2442_v48  ;;  %6330 = vpow2.f32 %v4924_v44  ;;  %v1691_v54 = vpop.f32.mrf.mxu0 }
 0x32a   : > { %v6319_v53 = vpop.eup %6318  ;;  %v2444_v55 = vpop.f32.mrf.mxu1  ;;  %6332 = vrcp.f32 %v3600_v46 }
 0x32b   : > { %v6321_v56 = vpop.eup %6320  ;;  %v3601_v57 = vadd.f32 1.0, %v6319_v53  ;;  %v4925_v58 = vmul.f32 -1.442695, %v3029_v50  ;;  %v2879_v59 = vmax.f32 %v2591_v51, %v2735_v52  ;;  %v1693_v2 = vpop.f32.mrf.mxu0 }
 0x32c   : > { %v5551_v60 = vpack.c.bf16 %v6321_v56, %v6317_v49  ;;  %v2446_v61 = vpop.f32.mrf.mxu1  ;;  %v2592_v63 = vmax.f32 %v1691_v54, %v1693_v2 }
 0x32d   : > { %6334 = vrcp.f32 %v3601_v57  ;;  %v3030_v62 = vadd.f32 %v6930_v39, %v2879_v59  ;;  %v2736_v1 = vmax.f32 %v2444_v55, %v2446_v61 }
 0x32e   : > { %v6323_v3 = vpop.eup %6322  ;;  %5643 = vst [vmem:[%s6613_s11 + $0x210] sm:$0xff] %v5551_v60   ;;  %6336 = vpow2.f32 %v4925_v58 }
 0x32f   : > { %v4926_v4 = vmul.f32 -1.442695, %v3030_v62  ;;  %v2880_v5 = vmax.f32 %v2592_v63, %v2736_v1  ;;  %v3602_v6 = vadd.f32 1.0, %v6323_v3  ;;  %v6325_v7 = vpop.eup %6324 }
 0x331   : > { %v3031_v8 = vadd.f32 %v6930_v39, %v2880_v5  ;;  %6338 = vpow2.f32 %v4926_v4 }
 0x332   : > { %v6327_v9 = vpop.eup %6326  ;;  %6340 = vrcp.f32 %v3602_v6 }
 0x333   : > { %v6329_v10 = vpop.eup %6328  ;;  %v3603_v11 = vadd.f32 1.0, %v6327_v9  ;;  %v4927_v12 = vmul.f32 -1.442695, %v3031_v8 }
 0x334   : > { %v5556_v13 = vpack.c.bf16 %v6329_v10, %v6325_v7 }
 0x335   : > { %6342 = vrcp.f32 %v3603_v11 }
 0x336   : > { %5644 = vst [vmem:[%s6613_s11 + $0x218] sm:$0xff] %v5556_v13   ;;  %6344 = vpow2.f32 %v4927_v12  ;;  %v6331_v14 = vpop.eup %6330 }
 0x337   : > { %v6333_v15 = vpop.eup %6332  ;;  %v3604_v16 = vadd.f32 1.0, %v6331_v14 }
 0x339   : > { %6346 = vrcp.f32 %v3604_v16 }
 0x33a   : > { %v6335_v0 = vpop.eup %6334 }
 0x33b   : > { %v6337_v18 = vpop.eup %6336  ;;  %v5561_v19 = vpack.c.bf16 %v6335_v0, %v6333_v15 }
 0x33c   : > { %v3605_v20 = vadd.f32 1.0, %v6337_v18 }
 0x33d   : > { %5645 = vst [vmem:[%s6613_s11 + $0x220] sm:$0xff] %v5561_v19  }
 0x33e   : > { %6348 = vrcp.f32 %v3605_v20  ;;  %v6339_v39 = vpop.eup %6338 }
 0x33f   : > { %v6341_v21 = vpop.eup %6340  ;;  %v3606_v22 = vadd.f32 1.0, %v6339_v39 }
 0x341   : > { %6350 = vrcp.f32 %v3606_v22 }
 0x342   : > { %v6343_v23 = vpop.eup %6342 }
 0x343   : > { %v6345_v24 = vpop.eup %6344  ;;  %v5566_v25 = vpack.c.bf16 %v6343_v23, %v6341_v21 }
 0x344   : > { %v3607_v26 = vadd.f32 1.0, %v6345_v24 }
 0x345   : > { %5646 = vst [vmem:[%s6613_s11 + $0x228] sm:$0xff] %v5566_v25  }
 0x346   : > { %6352 = vrcp.f32 %v3607_v26  ;;  %v6347_v27 = vpop.eup %6346 }
 0x34b   : > { %v6349_v28 = vpop.eup %6348 }
 0x34c   : > { %v5571_v29 = vpack.c.bf16 %v6349_v28, %v6347_v27 }
 0x34e   : > { %5647 = vst [vmem:[%s6613_s11 + $0x230] sm:$0xff] %v5571_v29   ;;  %v6351_v30 = vpop.eup %6350 }
 0x353   : > { %v6353_v31 = vpop.eup %6352 }
 0x354   : > { %v5576_v32 = vpack.c.bf16 %v6353_v31, %v6351_v30 }
 0x356   : > { %5648 = vst [vmem:[%s6613_s11 + $0x238] sm:$0xff] %v5576_v32  }
 0x357 PF: > { %s13_s12 = sadd.s32 1, %s6364_s12  }
 0x358   : > { %p10_p4 = scmp.ge.s32.totalorder %s13_s12, 4  }
 0x35a   :  { %12 = sbr.rel (!%p10_p4) target bundleno = 1 (0x1), region = 62 }

// kernel: digit_model_forward.4
= control target key start
LH: loop header
LB: loop body
LE: loop exit
PB: predicated region body
PF: predicated region fallthrough
CT: control target
= control target key end

     0   :  { %s1595_s12 = smov 0   ;;  %s1859_s0 = inlined_call_operand.vmem [shape: bf16[256,256], index: 0, kind: input, shape index: {}]   ;;  %s1860_s1 = inlined_call_operand.vmem [shape: bf16[256,512], index: 1, kind: input, shape index: {}]   ;;  %s1861_s2 = inlined_call_operand.vmem [shape: f32[1,128], index: 2, kind: input, shape index: {}]   ;;  %s1862_s3 = inlined_call_operand.vmem [shape: bf16[256,128], index: 3, kind: output, shape index: {}]  }
   0x1 LB: > { %s1186_s13 = sadd.s32 4294967295, %s1573_s12   ;;  %p1190_p0 = scmp.ge.s32.totalorder %s1573_s12, 1  ;;  %s1573_s12 = sphi %s1595_s12, %s13_s12  }
   0x2   : > { %p139_p1 = scmp.lt.s32.totalorder %s1573_s12, 3 }
   0x4   : > { %p140_p2 = pnand %p1190_p0, %p139_p1 }
   0x5   : > { %s1191_s24 = sshll.u32 (!%p140_p2), %s1186_s13, 4 }
   0x6   : > { %143 = sbr.rel (%p140_p2) target bundleno = 374 (0x176), region = 32  ;;  %p165_p3 = scmp.lt.s32.totalorder (!%p140_p2), %s1191_s24, 31 }
   0xb   : > { %v1383_v0 = vld [vmem:[%s1860_s1 + $0xe4] ss:$16 sps:$4 sm:$0xff]   ;;  %v1385_v1 = vld [vmem:[%s1860_s1 + $0xec] ss:$16 sps:$4 sm:$0xff]   ;;  %v1387_v2 = vld [vmem:[%s1860_s1 + $0xe0] ss:$16 sps:$4 sm:$0xff]  }
   0xc   : > { %657 = vmatprep.subr.bf16.mxu0 %v1383_v0  ;;  %v1388_v3 = vld [vmem:[%s1860_s1 + $0xe8] ss:$16 sps:$4 sm:$0xff]   ;;  %770 = vmatprep.subr.bf16.mxu1 %v1385_v1  ;;  %v1389_v4 = vld [vmem:[%s1860_s1 + $0xc4] ss:$16 sps:$4 sm:$0xff]   ;;  %v1391_v5 = vld [vmem:[%s1860_s1 + $0xcc] ss:$16 sps:$4 sm:$0xff]  }
   0xd   : > { %658 = vmatpush1.bf16.msra.mxu0 %v1387_v2  ;;  %771 = vmatpush1.bf16.msra.mxu1 %v1388_v3  ;;  %v1393_v6 = vld [vmem:[%s1860_s1 + $0xc0] ss:$16 sps:$4 sm:$0xff]   ;;  %v1394_v7 = vld [vmem:[%s1860_s1 + $0xc8] ss:$16 sps:$4 sm:$0xff]   ;;  %v1395_v8 = vld [vmem:[%s1860_s1 + $0xa4] ss:$16 sps:$4 sm:$0xff]  }
   0xe   : > { %659 = vmatprep.subr.bf16.mxu0 %v1389_v4  ;;  %772 = vmatprep.subr.bf16.mxu1 %v1391_v5  ;;  %v1397_v9 = vld [vmem:[%s1860_s1 + $0xac] ss:$16 sps:$4 sm:$0xff]   ;;  %v1399_v10 = vld [vmem:[%s1860_s1 + $0xa0] ss:$16 sps:$4 sm:$0xff]   ;;  %v1400_v11 = vld [vmem:[%s1860_s1 + $0xa8] ss:$16 sps:$4 sm:$0xff]  }
   0xf   : > { %v1401_v12 = vld [vmem:[%s1860_s1 + $0x84] ss:$16 sps:$4 sm:$0xff]   ;;  %v1403_v13 = vld [vmem:[%s1860_s1 + $0x8c] ss:$16 sps:$4 sm:$0xff]   ;;  %v1405_v14 = vld [vmem:[%s1860_s1 + $0x80] ss:$16 sps:$4 sm:$0xff]  }
  0x10   : > { %v1406_v15 = vld [vmem:[%s1860_s1 + $0x88] ss:$16 sps:$4 sm:$0xff]   ;;  %v1407_v16 = vld [vmem:[%s1860_s1 + $0x64] ss:$16 sps:$4 sm:$0xff]   ;;  %v1409_v17 = vld [vmem:[%s1860_s1 + $0x6c] ss:$16 sps:$4 sm:$0xff]  }
  0x11   : > { %660 = vmatpush1.bf16.msra.mxu0 %v1393_v6  ;;  %773 = vmatpush1.bf16.msra.mxu1 %v1394_v7  ;;  %v1411_v18 = vld [vmem:[%s1860_s1 + $0x60] ss:$16 sps:$4 sm:$0xff]   ;;  %v1412_v19 = vld [vmem:[%s1860_s1 + $0x68] ss:$16 sps:$4 sm:$0xff]   ;;  %v1413_v20 = vld [vmem:[%s1860_s1 + $0x44] ss:$16 sps:$4 sm:$0xff]  }
  0x12   : > { %661 = vmatprep.subr.bf16.mxu0 %v1395_v8  ;;  %774 = vmatprep.subr.bf16.mxu1 %v1397_v9  ;;  %v1415_v21 = vld [vmem:[%s1860_s1 + $0x4c] ss:$16 sps:$4 sm:$0xff]   ;;  %v1417_v22 = vld [vmem:[%s1860_s1 + $0x40] ss:$16 sps:$4 sm:$0xff]   ;;  %v1418_v23 = vld [vmem:[%s1860_s1 + $0x48] ss:$16 sps:$4 sm:$0xff]  }
  0x13   : > { %v1419_v24 = vld [vmem:[%s1860_s1 + $0x24] ss:$16 sps:$4 sm:$0xff]   ;;  %v1421_v25 = vld [vmem:[%s1860_s1 + $0x2c] ss:$16 sps:$4 sm:$0xff]   ;;  %v1423_v26 = vld [vmem:[%s1860_s1 + $0x20] ss:$16 sps:$4 sm:$0xff]  }
  0x14   : > { %v1424_v27 = vld [vmem:[%s1860_s1 + $0x28] ss:$16 sps:$4 sm:$0xff]   ;;  %v1425_v28 = vld [vmem:[%s1860_s1 + $0x4] ss:$16 sps:$4 sm:$0xff]   ;;  %v1427_v29 = vld [vmem:[%s1860_s1 + $0xc] ss:$16 sps:$4 sm:$0xff]  }
  0x15   : > { %662 = vmatpush1.bf16.msra.mxu0 %v1399_v10  ;;  %775 = vmatpush1.bf16.msra.mxu1 %v1400_v11  ;;  %v1429_v30 = vld [vmem:[%s1860_s1] ss:$16 sps:$4 sm:$0xff]   ;;  %v1430_v31 = vld [vmem:[%s1860_s1 + $0x8] ss:$16 sps:$4 sm:$0xff]   ;;  %v1431_v32 = vld [vmem:[%s1860_s1 + $0x1e4] ss:$16 sps:$4 sm:$0xff]  }
  0x16   : > { %663 = vmatprep.subr.bf16.mxu0 %v1401_v12  ;;  %776 = vmatprep.subr.bf16.mxu1 %v1403_v13  ;;  %v1433_v33 = vld [vmem:[%s1860_s1 + $0x1ec] ss:$16 sps:$4 sm:$0xff]   ;;  %v1435_v34 = vld [vmem:[%s1860_s1 + $0x1e0] ss:$16 sps:$4 sm:$0xff]   ;;  %v1436_v35 = vld [vmem:[%s1860_s1 + $0x1e8] ss:$16 sps:$4 sm:$0xff]  }
  0x17   : > { %v1437_v36 = vld [vmem:[%s1860_s1 + $0x1c4] ss:$16 sps:$4 sm:$0xff]   ;;  %v1439_v37 = vld [vmem:[%s1860_s1 + $0x1cc] ss:$16 sps:$4 sm:$0xff]   ;;  %s1864_s24 = smov (!%p165_p3, %s1191_s24), 31 }
  0x18   : > { %v1441_v38 = vld [vmem:[%s1860_s1 + $0x1c0] ss:$16 sps:$4 sm:$0xff]   ;;  %v1442_v39 = vld [vmem:[%s1860_s1 + $0x1c8] ss:$16 sps:$4 sm:$0xff]   ;;  %v1443_v40 = vld [vmem:[%s1860_s1 + $0x1a4] ss:$16 sps:$4 sm:$0xff]  }
  0x19   : > { %664 = vmatpush1.bf16.msra.mxu0 %v1405_v14  ;;  %777 = vmatpush1.bf16.msra.mxu1 %v1406_v15  ;;  %v1445_v41 = vld [vmem:[%s1860_s1 + $0x1ac] ss:$16 sps:$4 sm:$0xff]   ;;  %s1311_s23 = sshll.u32 %s1864_s24, 3  ;;  %v1447_v42 = vld [vmem:[%s1860_s1 + $0x1a0] ss:$16 sps:$4 sm:$0xff]  }
  0x1a   : > { %665 = vmatprep.subr.bf16.mxu0 %v1407_v16  ;;  %778 = vmatprep.subr.bf16.mxu1 %v1409_v17  ;;  %v1448_v43 = vld [vmem:[%s1860_s1 + $0x1a8] ss:$16 sps:$4 sm:$0xff]   ;;  %v1449_v44 = vld [vmem:[%s1860_s1 + $0x184] ss:$16 sps:$4 sm:$0xff]   ;;  %s1746_s13 = scalar_lea.vmem %s1859_s0, %s1311_s23  ;;  %v1451_v45 = vld [vmem:[%s1860_s1 + $0x18c] ss:$16 sps:$4 sm:$0xff]  }
  0x1b   : > { %v1453_v46 = vld [vmem:[%s1860_s1 + $0x180] ss:$16 sps:$4 sm:$0xff]   ;;  %v1454_v47 = vld [vmem:[%s1860_s1 + $0x188] ss:$16 sps:$4 sm:$0xff]   ;;  %v1481_v48 = vld [vmem:[%s1746_s13 + $0x4] ss:$8 sps:$4 sm:$0xff]  }
  0x1c   : > { %v1455_v49 = vld [vmem:[%s1860_s1 + $0x164] ss:$16 sps:$4 sm:$0xff]   ;;  %v1457_v50 = vld [vmem:[%s1860_s1 + $0x16c] ss:$16 sps:$4 sm:$0xff]   ;;  %689 = vmatprep.mubr.bf16.mxu0 %v1481_v48  ;;  %802 = vmatprep.mubr.bf16.mxu1 %v1481_v48  ;;  %v1459_v51 = vld [vmem:[%s1860_s1 + $0x160] ss:$16 sps:$4 sm:$0xff]  }
  0x1d   : > { %666 = vmatpush1.bf16.msra.mxu0 %v1411_v18  ;;  %779 = vmatpush1.bf16.msra.mxu1 %v1412_v19  ;;  %v1460_v52 = vld [vmem:[%s1860_s1 + $0x168] ss:$16 sps:$4 sm:$0xff]   ;;  %v1461_v53 = vld [vmem:[%s1860_s1 + $0x144] ss:$16 sps:$4 sm:$0xff]   ;;  %v1463_v54 = vld [vmem:[%s1860_s1 + $0x14c] ss:$16 sps:$4 sm:$0xff]  }
  0x1e   : > { %667 = vmatprep.subr.bf16.mxu0 %v1413_v20  ;;  %780 = vmatprep.subr.bf16.mxu1 %v1415_v21  ;;  %v1465_v55 = vld [vmem:[%s1860_s1 + $0x140] ss:$16 sps:$4 sm:$0xff]   ;;  %v1466_v56 = vld [vmem:[%s1860_s1 + $0x148] ss:$16 sps:$4 sm:$0xff]   ;;  %v1467_v57 = vld [vmem:[%s1860_s1 + $0x124] ss:$16 sps:$4 sm:$0xff]  }
  0x1f   : > { %v1469_v58 = vld [vmem:[%s1860_s1 + $0x12c] ss:$16 sps:$4 sm:$0xff]   ;;  %v1471_v59 = vld [vmem:[%s1860_s1 + $0x120] ss:$16 sps:$4 sm:$0xff]   ;;  %v1472_v60 = vld [vmem:[%s1860_s1 + $0x128] ss:$16 sps:$4 sm:$0xff]  }
  0x20   : > { %v1473_v61 = vld [vmem:[%s1860_s1 + $0x104] ss:$16 sps:$4 sm:$0xff]   ;;  %v1475_v62 = vld [vmem:[%s1860_s1 + $0x10c] ss:$16 sps:$4 sm:$0xff]   ;;  %v1477_v63 = vld [vmem:[%s1860_s1 + $0x100] ss:$16 sps:$4 sm:$0xff]  }
  0x21   : > { %668 = vmatpush1.bf16.msra.mxu0 %v1417_v22  ;;  %781 = vmatpush1.bf16.msra.mxu1 %v1418_v23  ;;  %v1478_v0 = vld [vmem:[%s1860_s1 + $0x108] ss:$16 sps:$4 sm:$0xff]   ;;  %v1482_v2 = vld [vmem:[%s1746_s13 + $0x14] ss:$8 sps:$4 sm:$0xff]   ;;  %v1485_v4 = vld [vmem:[%s1746_s13 + $0x24] ss:$8 sps:$4 sm:$0xff]  }
  0x22   : > { %669 = vmatprep.subr.bf16.mxu0 %v1419_v24  ;;  %782 = vmatprep.subr.bf16.mxu1 %v1421_v25  ;;  %v1479_v1 = vld [vmem:[%s1746_s13] ss:$8 sps:$4 sm:$0xff]   ;;  %v1484_v3 = vld [vmem:[%s1746_s13 + $0x10] ss:$8 sps:$4 sm:$0xff]   ;;  %v1488_v6 = vld [vmem:[%s1746_s13 + $0x34] ss:$8 sps:$4 sm:$0xff]  }
  0x23   : > { %v1487_v5 = vld [vmem:[%s1746_s13 + $0x20] ss:$8 sps:$4 sm:$0xff]   ;;  %v1490_v7 = vld [vmem:[%s1746_s13 + $0x30] ss:$8 sps:$4 sm:$0xff]   ;;  %v1491_v8 = vld [vmem:[%s1746_s13 + $0x44] ss:$8 sps:$4 sm:$0xff]  }
  0x24   : > { %v1493_v9 = vld [vmem:[%s1746_s13 + $0x40] ss:$8 sps:$4 sm:$0xff]   ;;  %v1494_v10 = vld [vmem:[%s1746_s13 + $0x54] ss:$8 sps:$4 sm:$0xff]   ;;  %v1496_v11 = vld [vmem:[%s1746_s13 + $0x50] ss:$8 sps:$4 sm:$0xff]  }
  0x25   : > { %670 = vmatpush1.bf16.msra.mxu0 %v1423_v26  ;;  %783 = vmatpush1.bf16.msra.mxu1 %v1424_v27  ;;  %v1497_v12 = vld [vmem:[%s1746_s13 + $0x64] ss:$8 sps:$4 sm:$0xff]   ;;  %v1499_v13 = vld [vmem:[%s1746_s13 + $0x60] ss:$8 sps:$4 sm:$0xff]   ;;  %v1500_v14 = vld [vmem:[%s1746_s13 + $0x74] ss:$8 sps:$4 sm:$0xff]  }
  0x26   : > { %671 = vmatprep.subr.bf16.mxu0 %v1425_v28  ;;  %784 = vmatprep.subr.bf16.mxu1 %v1427_v29  ;;  %v1502_v15 = vld [vmem:[%s1746_s13 + $0x70] ss:$8 sps:$4 sm:$0xff]   ;;  %v1824_v22 = vld [vmem:[%s1861_s2] ss:$0 sm:$0xff]  ;;  %s1195_s13 = sshll.u32 %s1864_s24, 2 }
  0x27   : > { %s1840_s27 = scalar_lea.vmem %s1862_s3, %s1195_s13 }
  0x29   : > { %672 = vmatpush1.bf16.msra.mxu0 %v1429_v30  ;;  %785 = vmatpush1.bf16.msra.mxu1 %v1430_v31 }
  0x2a   : > { %673 = vmatprep.subr.bf16.mxu0 %v1431_v32  ;;  %786 = vmatprep.subr.bf16.mxu1 %v1433_v33 }
  0x2d   : > { %674 = vmatpush2.bf16.msra.mxu0 %v1435_v34  ;;  %787 = vmatpush2.bf16.msra.mxu1 %v1436_v35 }
  0x2e   : > { %675 = vmatprep.subr.bf16.mxu0 %v1437_v36  ;;  %788 = vmatprep.subr.bf16.mxu1 %v1439_v37 }
  0x31   : > { %676 = vmatpush2.bf16.msra.mxu0 %v1441_v38  ;;  %789 = vmatpush2.bf16.msra.mxu1 %v1442_v39 }
  0x32   : > { %677 = vmatprep.subr.bf16.mxu0 %v1443_v40  ;;  %790 = vmatprep.subr.bf16.mxu1 %v1445_v41 }
  0x35   : > { %678 = vmatpush2.bf16.msra.mxu0 %v1447_v42  ;;  %791 = vmatpush2.bf16.msra.mxu1 %v1448_v43 }
  0x36   : > { %679 = vmatprep.subr.bf16.mxu0 %v1449_v44  ;;  %792 = vmatprep.subr.bf16.mxu1 %v1451_v45 }
  0x39   : > { %680 = vmatpush2.bf16.msra.mxu0 %v1453_v46  ;;  %793 = vmatpush2.bf16.msra.mxu1 %v1454_v47 }
  0x3a   : > { %681 = vmatprep.subr.bf16.mxu0 %v1455_v49  ;;  %794 = vmatprep.subr.bf16.mxu1 %v1457_v50 }
  0x3d   : > { %682 = vmatpush2.bf16.msra.mxu0 %v1459_v51  ;;  %795 = vmatpush2.bf16.msra.mxu1 %v1460_v52 }
  0x3e   : > { %683 = vmatprep.subr.bf16.mxu0 %v1461_v53  ;;  %796 = vmatprep.subr.bf16.mxu1 %v1463_v54 }
  0x41   : > { %684 = vmatpush2.bf16.msra.mxu0 %v1465_v55  ;;  %797 = vmatpush2.bf16.msra.mxu1 %v1466_v56 }
  0x42   : > { %685 = vmatprep.subr.bf16.mxu0 %v1467_v57  ;;  %798 = vmatprep.subr.bf16.mxu1 %v1469_v58 }
  0x45   : > { %686 = vmatpush2.bf16.msra.mxu0 %v1471_v59  ;;  %799 = vmatpush2.bf16.msra.mxu1 %v1472_v60 }
  0x46   : > { %687 = vmatprep.subr.bf16.mxu0 %v1473_v61  ;;  %800 = vmatprep.subr.bf16.mxu1 %v1475_v62 }
  0x49   : > { %688 = vmatpush2.bf16.msra.mxu0 %v1477_v63  ;;  %801 = vmatpush2.bf16.msra.mxu1 %v1478_v0 }
  0x4c   : > { %690 = vmatmul.mubr.bf16.vlgmr.msra.gmra.mxu0 %v1479_v1  ;;  %803 = vmatmul.mubr.bf16.vlgmr.msra.gmra.mxu1 %v1479_v1 }
  0x4d   : > { %699 = vmatprep.mubr.bf16.mxu0 %v1482_v2  ;;  %812 = vmatprep.mubr.bf16.mxu1 %v1482_v2 }
  0x54   : > { %700 = vmatmul.mubr.bf16.gmra.mxu0 %v1484_v3  ;;  %813 = vmatmul.mubr.bf16.gmra.mxu1 %v1484_v3 }
  0x55   : > { %709 = vmatprep.mubr.bf16.mxu0 %v1485_v4  ;;  %822 = vmatprep.mubr.bf16.mxu1 %v1485_v4 }
  0x5c   : > { %710 = vmatmul.mubr.bf16.gmra.mxu0 %v1487_v5  ;;  %823 = vmatmul.mubr.bf16.gmra.mxu1 %v1487_v5 }
  0x5d   : > { %719 = vmatprep.mubr.bf16.mxu0 %v1488_v6  ;;  %832 = vmatprep.mubr.bf16.mxu1 %v1488_v6 }
  0x64   : > { %720 = vmatmul.mubr.bf16.gmra.mxu0 %v1490_v7  ;;  %833 = vmatmul.mubr.bf16.gmra.mxu1 %v1490_v7 }
  0x65   : > { %729 = vmatprep.mubr.bf16.mxu0 %v1491_v8  ;;  %842 = vmatprep.mubr.bf16.mxu1 %v1491_v8 }
  0x6c   : > { %730 = vmatmul.mubr.bf16.gmra.mxu0 %v1493_v9  ;;  %843 = vmatmul.mubr.bf16.gmra.mxu1 %v1493_v9 }
  0x6d   : > { %739 = vmatprep.mubr.bf16.mxu0 %v1494_v10  ;;  %852 = vmatprep.mubr.bf16.mxu1 %v1494_v10 }
  0x74   : > { %740 = vmatmul.mubr.bf16.gmra.mxu0 %v1496_v11  ;;  %853 = vmatmul.mubr.bf16.gmra.mxu1 %v1496_v11 }
  0x75   : > { %749 = vmatprep.mubr.bf16.mxu0 %v1497_v12  ;;  %862 = vmatprep.mubr.bf16.mxu1 %v1497_v12 }
  0x7c   : > { %750 = vmatmul.mubr.bf16.gmra.mxu0 %v1499_v13  ;;  %863 = vmatmul.mubr.bf16.gmra.mxu1 %v1499_v13 }
  0x7d   : > { %759 = vmatprep.mubr.bf16.mxu0 %v1500_v14  ;;  %872 = vmatprep.mubr.bf16.mxu1 %v1500_v14 }
  0x84   : > { %760 = vmatmul.mubr.bf16.gmra.mxu0 %v1502_v15  ;;  %873 = vmatmul.mubr.bf16.gmra.mxu1 %v1502_v15 }
 0x10c   : > { %v691_v16 = vpop.f32.mrf.mxu0  ;;  %v804_v17 = vpop.f32.mrf.mxu1 }
 0x10e   : > { %v693_v18 = vpop.f32.mrf.mxu0  ;;  %v806_v19 = vpop.f32.mrf.mxu1 }
 0x10f   : > { %v883_v20 = vmax.f32 %v691_v16, %v693_v18  ;;  %v899_v21 = vmax.f32 %v804_v17, %v806_v19 }
 0x110   : > { %v695_v23 = vpop.f32.mrf.mxu0  ;;  %v808_v24 = vpop.f32.mrf.mxu1 }
 0x111   : > { %v915_v25 = vmax.f32 %v883_v20, %v899_v21 }
 0x112   : > { %v697_v26 = vpop.f32.mrf.mxu0  ;;  %v810_v27 = vpop.f32.mrf.mxu1 }
 0x113   : > { %v938_v28 = vadd.f32 %v1824_v22, %v915_v25  ;;  %v884_v29 = vmax.f32 %v695_v23, %v697_v26  ;;  %v900_v30 = vmax.f32 %v808_v24, %v810_v27 }
 0x114   : > { %v701_v31 = vpop.f32.mrf.mxu0  ;;  %v814_v32 = vpop.f32.mrf.mxu1 }
 0x115   : > { %v1277_v33 = vmul.f32 -1.442695, %v938_v28  ;;  %v916_v34 = vmax.f32 %v884_v29, %v900_v30 }
 0x116   : > { %v703_v35 = vpop.f32.mrf.mxu0  ;;  %v816_v36 = vpop.f32.mrf.mxu1 }
 0x117   : > { %1503 = vpow2.f32 %v1277_v33  ;;  %v939_v37 = vadd.f32 %v1824_v22, %v916_v34  ;;  %v885_v38 = vmax.f32 %v701_v31, %v703_v35  ;;  %v901_v39 = vmax.f32 %v814_v32, %v816_v36 }
 0x118   : > { %v705_v40 = vpop.f32.mrf.mxu0  ;;  %v818_v41 = vpop.f32.mrf.mxu1 }
 0x119   : > { %v1278_v42 = vmul.f32 -1.442695, %v939_v37  ;;  %v917_v43 = vmax.f32 %v885_v38, %v901_v39 }
 0x11a   : > { %v707_v44 = vpop.f32.mrf.mxu0  ;;  %v820_v45 = vpop.f32.mrf.mxu1 }
 0x11b   : > { %1505 = vpow2.f32 %v1278_v42  ;;  %v940_v46 = vadd.f32 %v1824_v22, %v917_v43  ;;  %v886_v47 = vmax.f32 %v705_v40, %v707_v44  ;;  %v902_v48 = vmax.f32 %v818_v41, %v820_v45 }
 0x11c   : > { %v711_v49 = vpop.f32.mrf.mxu0  ;;  %v824_v50 = vpop.f32.mrf.mxu1 }
 0x11d   : > { %v1279_v51 = vmul.f32 -1.442695, %v940_v46  ;;  %v918_v52 = vmax.f32 %v886_v47, %v902_v48 }
 0x11e   : > { %v713_v53 = vpop.f32.mrf.mxu0  ;;  %v826_v54 = vpop.f32.mrf.mxu1 }
 0x11f   : > { %1507 = vpow2.f32 %v1279_v51  ;;  %v941_v55 = vadd.f32 %v1824_v22, %v918_v52  ;;  %v887_v56 = vmax.f32 %v711_v49, %v713_v53  ;;  %v903_v57 = vmax.f32 %v824_v50, %v826_v54 }
 0x120   : > { %v715_v58 = vpop.f32.mrf.mxu0  ;;  %v828_v59 = vpop.f32.mrf.mxu1 }
 0x121   : > { %v1280_v60 = vmul.f32 -1.442695, %v941_v55  ;;  %v919_v61 = vmax.f32 %v887_v56, %v903_v57 }
 0x122   : > { %v717_v62 = vpop.f32.mrf.mxu0  ;;  %v830_v63 = vpop.f32.mrf.mxu1 }
 0x123   : > { %1509 = vpow2.f32 %v1280_v60  ;;  %v942_v0 = vadd.f32 %v1824_v22, %v919_v61  ;;  %v888_v1 = vmax.f32 %v715_v58, %v717_v62  ;;  %v904_v2 = vmax.f32 %v828_v59, %v830_v63 }
 0x124   : > { %v1504_v3 = vpop.eup %1503  ;;  %v721_v4 = vpop.f32.mrf.mxu0 }
 0x125   : > { %v834_v5 = vpop.f32.mrf.mxu1  ;;  %v1281_v6 = vmul.f32 -1.442695, %v942_v0  ;;  %v920_v7 = vmax.f32 %v888_v1, %v904_v2  ;;  %v1002_v8 = vadd.f32 1.0, %v1504_v3 }
 0x126   : > { %v723_v9 = vpop.f32.mrf.mxu0 }
 0x127   : > { %v836_v10 = vpop.f32.mrf.mxu1  ;;  %v943_v11 = vadd.f32 %v1824_v22, %v920_v7  ;;  %v889_v12 = vmax.f32 %v721_v4, %v723_v9  ;;  %1511 = vpow2.f32 %v1281_v6 }
 0x128   : > { %v905_v13 = vmax.f32 %v834_v5, %v836_v10  ;;  %v1506_v14 = vpop.eup %1505  ;;  %v725_v15 = vpop.f32.mrf.mxu0  ;;  %1513 = vrcp.f32 %v1002_v8 }
 0x129   : > { %v838_v16 = vpop.f32.mrf.mxu1  ;;  %v1003_v17 = vadd.f32 1.0, %v1506_v14  ;;  %v1282_v18 = vmul.f32 -1.442695, %v943_v11 }
 0x12a   : > { %v921_v19 = vmax.f32 %v889_v12, %v905_v13  ;;  %v727_v20 = vpop.f32.mrf.mxu0 }
 0x12b   : > { %v840_v21 = vpop.f32.mrf.mxu1  ;;  %1515 = vrcp.f32 %v1003_v17  ;;  %v890_v24 = vmax.f32 %v725_v15, %v727_v20 }
 0x12c   : > { %v944_v23 = vadd.f32 %v1824_v22, %v921_v19  ;;  %v906_v25 = vmax.f32 %v838_v16, %v840_v21  ;;  %v1508_v26 = vpop.eup %1507  ;;  %1517 = vpow2.f32 %v1282_v18  ;;  %v731_v27 = vpop.f32.mrf.mxu0 }
 0x12d   : > { %v844_v28 = vpop.f32.mrf.mxu1  ;;  %v1004_v31 = vadd.f32 1.0, %v1508_v26 }
 0x12e   : > { %v1283_v29 = vmul.f32 -1.442695, %v944_v23  ;;  %v922_v30 = vmax.f32 %v890_v24, %v906_v25  ;;  %v733_v32 = vpop.f32.mrf.mxu0 }
 0x12f   : > { %v846_v33 = vpop.f32.mrf.mxu1  ;;  %v891_v35 = vmax.f32 %v731_v27, %v733_v32 }
 0x130   : > { %v945_v34 = vadd.f32 %v1824_v22, %v922_v30  ;;  %v907_v36 = vmax.f32 %v844_v28, %v846_v33  ;;  %v1510_v37 = vpop.eup %1509  ;;  %1519 = vpow2.f32 %v1283_v29  ;;  %v735_v38 = vpop.f32.mrf.mxu0 }
 0x131   : > { %v848_v39 = vpop.f32.mrf.mxu1  ;;  %v1005_v40 = vadd.f32 1.0, %v1510_v37  ;;  %1521 = vrcp.f32 %v1004_v31 }
 0x132   : > { %v1284_v41 = vmul.f32 -1.442695, %v945_v34  ;;  %v923_v42 = vmax.f32 %v891_v35, %v907_v36  ;;  %v737_v43 = vpop.f32.mrf.mxu0 }
 0x133   : > { %v850_v44 = vpop.f32.mrf.mxu1  ;;  %1523 = vrcp.f32 %v1005_v40  ;;  %v892_v46 = vmax.f32 %v735_v38, %v737_v43 }
 0x134   : > { %v946_v45 = vadd.f32 %v1824_v22, %v923_v42  ;;  %v908_v47 = vmax.f32 %v848_v39, %v850_v44  ;;  %1525 = vpow2.f32 %v1284_v41  ;;  %v741_v48 = vpop.f32.mrf.mxu0  ;;  %v1512_v50 = vpop.eup %1511 }
 0x135   : > { %v854_v49 = vpop.f32.mrf.mxu1  ;;  %v1006_v53 = vadd.f32 1.0, %v1512_v50  ;;  %v1514_v56 = vpop.eup %1513 }
 0x136   : > { %v1285_v51 = vmul.f32 -1.442695, %v946_v45  ;;  %v924_v52 = vmax.f32 %v892_v46, %v908_v47  ;;  %v743_v54 = vpop.f32.mrf.mxu0 }
 0x137   : > { %v856_v55 = vpop.f32.mrf.mxu1  ;;  %v893_v58 = vmax.f32 %v741_v48, %v743_v54 }
 0x138   : > { %1527 = vpow2.f32 %v1285_v51  ;;  %v947_v57 = vadd.f32 %v1824_v22, %v924_v52  ;;  %v909_v59 = vmax.f32 %v854_v49, %v856_v55  ;;  %v1516_v60 = vpop.eup %1515  ;;  %v745_v61 = vpop.f32.mrf.mxu0 }
 0x139   : > { %v858_v62 = vpop.f32.mrf.mxu1  ;;  %v1518_v63 = vpop.eup %1517  ;;  %v1331_v0 = vpack.c.bf16 %v1516_v60, %v1514_v56  ;;  %1529 = vrcp.f32 %v1006_v53 }
 0x13a   : > { %v1286_v1 = vmul.f32 -1.442695, %v947_v57  ;;  %v925_v2 = vmax.f32 %v893_v58, %v909_v59  ;;  %v1007_v3 = vadd.f32 1.0, %v1518_v63  ;;  %v747_v4 = vpop.f32.mrf.mxu0 }
 0x13b   : > { %v860_v5 = vpop.f32.mrf.mxu1  ;;  %1332 = vst [vmem:[%s1840_s27] sm:$0xff] %v1331_v0   ;;  %v894_v7 = vmax.f32 %v745_v61, %v747_v4 }
 0x13c   : > { %1531 = vpow2.f32 %v1286_v1  ;;  %v948_v6 = vadd.f32 %v1824_v22, %v925_v2  ;;  %v910_v8 = vmax.f32 %v858_v62, %v860_v5  ;;  %v751_v9 = vpop.f32.mrf.mxu0 }
 0x13d   : > { %1533 = vrcp.f32 %v1007_v3  ;;  %v864_v10 = vpop.f32.mrf.mxu1  ;;  %v1520_v11 = vpop.eup %1519 }
 0x13e   : > { %v1287_v12 = vmul.f32 -1.442695, %v948_v6  ;;  %v926_v13 = vmax.f32 %v894_v7, %v910_v8  ;;  %v1008_v14 = vadd.f32 1.0, %v1520_v11  ;;  %v753_v15 = vpop.f32.mrf.mxu0  ;;  %v1522_v17 = vpop.eup %1521 }
 0x13f   : > { %v866_v16 = vpop.f32.mrf.mxu1  ;;  %v895_v19 = vmax.f32 %v751_v9, %v753_v15 }
 0x140   : > { %1535 = vpow2.f32 %v1287_v12  ;;  %v949_v18 = vadd.f32 %v1824_v22, %v926_v13  ;;  %v911_v20 = vmax.f32 %v864_v10, %v866_v16  ;;  %v1524_v21 = vpop.eup %1523  ;;  %v755_v23 = vpop.f32.mrf.mxu0 }
 0x141   : > { %v868_v24 = vpop.f32.mrf.mxu1  ;;  %v1526_v25 = vpop.eup %1525  ;;  %v1336_v26 = vpack.c.bf16 %v1524_v21, %v1522_v17  ;;  %1537 = vrcp.f32 %v1008_v14 }
 0x142   : > { %v1288_v27 = vmul.f32 -1.442695, %v949_v18  ;;  %v927_v28 = vmax.f32 %v895_v19, %v911_v20  ;;  %v1009_v29 = vadd.f32 1.0, %v1526_v25  ;;  %v757_v30 = vpop.f32.mrf.mxu0 }
 0x143   : > { %v870_v31 = vpop.f32.mrf.mxu1  ;;  %1368 = vst [vmem:[%s1840_s27 + $0x8] sm:$0xff] %v1336_v26   ;;  %v896_v33 = vmax.f32 %v755_v23, %v757_v30 }
 0x144   : > { %1539 = vpow2.f32 %v1288_v27  ;;  %v950_v32 = vadd.f32 %v1824_v22, %v927_v28  ;;  %v912_v34 = vmax.f32 %v868_v24, %v870_v31  ;;  %v761_v36 = vpop.f32.mrf.mxu0 }
 0x145   : > { %v1528_v35 = vpop.eup %1527  ;;  %1541 = vrcp.f32 %v1009_v29  ;;  %v874_v37 = vpop.f32.mrf.mxu1 }
 0x146   : > { %v1289_v38 = vmul.f32 -1.442695, %v950_v32  ;;  %v928_v39 = vmax.f32 %v896_v33, %v912_v34  ;;  %v1010_v40 = vadd.f32 1.0, %v1528_v35  ;;  %v763_v41 = vpop.f32.mrf.mxu0  ;;  %v1530_v43 = vpop.eup %1529 }
 0x147   : > { %v876_v42 = vpop.f32.mrf.mxu1  ;;  %v897_v45 = vmax.f32 %v761_v36, %v763_v41 }
 0x148   : > { %v951_v44 = vadd.f32 %v1824_v22, %v928_v39  ;;  %v913_v46 = vmax.f32 %v874_v37, %v876_v42  ;;  %1543 = vpow2.f32 %v1289_v38  ;;  %v765_v48 = vpop.f32.mrf.mxu0 }
 0x149   : > { %v1532_v47 = vpop.eup %1531  ;;  %v878_v49 = vpop.f32.mrf.mxu1  ;;  %1545 = vrcp.f32 %v1010_v40 }
 0x14a   : > { %v1534_v50 = vpop.eup %1533  ;;  %v1011_v51 = vadd.f32 1.0, %v1532_v47  ;;  %v1290_v52 = vmul.f32 -1.442695, %v951_v44  ;;  %v929_v53 = vmax.f32 %v897_v45, %v913_v46  ;;  %v767_v55 = vpop.f32.mrf.mxu0 }
 0x14b   : > { %v1341_v54 = vpack.c.bf16 %v1534_v50, %v1530_v43  ;;  %v880_v56 = vpop.f32.mrf.mxu1  ;;  %v898_v58 = vmax.f32 %v765_v48, %v767_v55 }
 0x14c   : > { %1547 = vrcp.f32 %v1011_v51  ;;  %v952_v57 = vadd.f32 %v1824_v22, %v929_v53  ;;  %v914_v59 = vmax.f32 %v878_v49, %v880_v56 }
 0x14d   : > { %v1536_v60 = vpop.eup %1535  ;;  %1369 = vst [vmem:[%s1840_s27 + $0x10] sm:$0xff] %v1341_v54   ;;  %1549 = vpow2.f32 %v1290_v52 }
 0x14e   : > { %v1291_v61 = vmul.f32 -1.442695, %v952_v57  ;;  %v930_v62 = vmax.f32 %v898_v58, %v914_v59  ;;  %v1012_v63 = vadd.f32 1.0, %v1536_v60  ;;  %v1538_v0 = vpop.eup %1537 }
 0x150   : > { %v953_v1 = vadd.f32 %v1824_v22, %v930_v62  ;;  %1551 = vpow2.f32 %v1291_v61 }
 0x151   : > { %v1540_v2 = vpop.eup %1539  ;;  %1553 = vrcp.f32 %v1012_v63 }
 0x152   : > { %v1542_v3 = vpop.eup %1541  ;;  %v1013_v4 = vadd.f32 1.0, %v1540_v2  ;;  %v1292_v5 = vmul.f32 -1.442695, %v953_v1 }
 0x153   : > { %v1346_v6 = vpack.c.bf16 %v1542_v3, %v1538_v0 }
 0x154   : > { %1555 = vrcp.f32 %v1013_v4 }
 0x155   : > { %1370 = vst [vmem:[%s1840_s27 + $0x18] sm:$0xff] %v1346_v6   ;;  %1557 = vpow2.f32 %v1292_v5  ;;  %v1544_v7 = vpop.eup %1543 }
 0x156   : > { %v1546_v8 = vpop.eup %1545  ;;  %v1014_v9 = vadd.f32 1.0, %v1544_v7 }
 0x158   : > { %1559 = vrcp.f32 %v1014_v9 }
 0x159   : > { %v1548_v10 = vpop.eup %1547 }
 0x15a   : > { %v1550_v11 = vpop.eup %1549  ;;  %v1351_v12 = vpack.c.bf16 %v1548_v10, %v1546_v8 }
 0x15b   : > { %v1015_v13 = vadd.f32 1.0, %v1550_v11 }
 0x15c   : > { %1371 = vst [vmem:[%s1840_s27 + $0x20] sm:$0xff] %v1351_v12  }
 0x15d   : > { %1561 = vrcp.f32 %v1015_v13  ;;  %v1552_v22 = vpop.eup %1551 }
 0x15e   : > { %v1554_v14 = vpop.eup %1553  ;;  %v1016_v15 = vadd.f32 1.0, %v1552_v22 }
 0x160   : > { %1563 = vrcp.f32 %v1016_v15 }
 0x161   : > { %v1556_v16 = vpop.eup %1555 }
 0x162   : > { %v1558_v17 = vpop.eup %1557  ;;  %v1356_v18 = vpack.c.bf16 %v1556_v16, %v1554_v14 }
 0x163   : > { %v1017_v19 = vadd.f32 1.0, %v1558_v17 }
 0x164   : > { %1372 = vst [vmem:[%s1840_s27 + $0x28] sm:$0xff] %v1356_v18  }
 0x165   : > { %1565 = vrcp.f32 %v1017_v19  ;;  %v1560_v20 = vpop.eup %1559 }
 0x16a   : > { %v1562_v21 = vpop.eup %1561 }
 0x16b   : > { %v1361_v23 = vpack.c.bf16 %v1562_v21, %v1560_v20 }
 0x16d   : > { %1373 = vst [vmem:[%s1840_s27 + $0x30] sm:$0xff] %v1361_v23   ;;  %v1564_v24 = vpop.eup %1563 }
 0x172   : > { %v1566_v25 = vpop.eup %1565 }
 0x173   : > { %v1366_v26 = vpack.c.bf16 %v1566_v25, %v1564_v24 }
 0x175   : > { %1374 = vst [vmem:[%s1840_s27 + $0x38] sm:$0xff] %v1366_v26  }
 0x176 PF: > { %s13_s12 = sadd.s32 1, %s1573_s12  }
 0x177   : > { %p10_p4 = scmp.ge.s32.totalorder %s13_s12, 4  }
 0x179   :  { %12 = sbr.rel (!%p10_p4) target bundleno = 1 (0x1), region = 62 }

// kernel: digit_model_forward.5
= control target key start
LH: loop header
LB: loop body
LE: loop exit
PB: predicated region body
PF: predicated region fallthrough
CT: control target
= control target key end

     0   :  { %12 = vsyncpa [#allocation3], 0  ;;  %s1312_s0 = inlined_call_operand.vmem [shape: bf16[16,256], index: 0, kind: input, shape index: {}]   ;;  %s1313_s1 = inlined_call_operand.vmem [shape: bf16[256,128], index: 1, kind: input, shape index: {}]   ;;  %s1314_s2 = inlined_call_operand.vmem [shape: f32[1,128], index: 2, kind: input, shape index: {}]   ;;  %s1315_s3 = inlined_call_operand.vmem [shape: bf16[128,128], index: 3, kind: input, shape index: {}]   ;;  %s1316_s4 = inlined_call_operand.vmem [shape: f32[1,128], index: 4, kind: input, shape index: {}]   ;;  %s1317_s5 = inlined_call_operand.vmem [shape: bf16[128,128], index: 5, kind: input, shape index: {}]   ;;  %s1318_s6 = inlined_call_operand.vmem [shape: f32[1,128], index: 6, kind: input, shape index: {}]   ;;  %s1319_s7 = inlined_call_operand.hbm [shape: f32[16,128], index: 7, kind: output, shape index: {}]  }
   0x1   :  { %14 = vsyncpa [#allocation3 + $0x1], 0  ;;  %s1090_s24 = smov 0   ;;  %s1092_s25 = smov 0  }
   0x2   :  { %s1094_s26 = smov 0   ;;  %s1096_s27 = smov 0  }
   0x3 LB: > { %s1111_s28 = sadd.s32 4294967295, %s1045_s27   ;;  %s771_s29 = sadd.s32 4294967294, %s1045_s27   ;;  %s1045_s27 = sphi %s1096_s27, %s1325_s27   ;;  %s1041_s26 = sphi %s1094_s26, %s1324_s26   ;;  %s1037_s25 = sphi %s1092_s25, %s1323_s25   ;;  %s1033_s24 = sphi %s1090_s24, %s1322_s24  }
   0x4   : > { %s1115_s30 = sadd.s32 1, %s1045_s27   ;;  %s179_s8 = sadd.s32 1, %s1041_s26 }
   0x5   : > { %s176_s9 = ssub.s32 %s1045_s27, %s1115_s30  ;;  %p189_p0 = scmp.ne.s32.totalorder %s1041_s26, %s1037_s25 }
   0x6   : > { %p177_p1 = scmp.eq.s32.totalorder %s176_s9, 0  ;;  %p190_p2 = scmp.eq.s32.totalorder %s1111_s28, 1 }
   0x7   : > { %p195_p3 = scmp.ne.s32.totalorder %s1037_s25, %s1033_s24  ;;  %p196_p4 = scmp.eq.s32.totalorder %s771_s29, 1 }
   0x8   : > { %s1126_s10 = scalar_select %p177_p1, %s1041_s26, %s179_s8  }
   0x9   : > { %p1128_p5 = por %p190_p2, %p189_p0  ;;  %p1132_p6 = por %p196_p4, %p195_p3 }
   0xa   : > { %p774_p7 = scmp.ge.s32.totalorder %s1045_s27, 1  ;;  %p240_p8 = scmp.lt.s32.totalorder %s1045_s27, 3 }
   0xc   : > { %p241_p9 = pnand %p774_p7, %p240_p8 }
   0xd   : > { %p272_p10 = scmp.lt.s32.totalorder (!%p241_p9), %s1111_s28, 1  ;;  %s818_s20 = sshll.u32 (!%p241_p9), %s1111_s28, 7 }
   0xe   : > { %244 = sbr.rel (%p241_p9) target bundleno = 723 (0x2d3), region = 48  ;;  %s1271_s8 = scalar_lea.hbm (!%p241_p9), %s1319_s7, %s818_s20 }
  0x13   : > { %v943_v0 = vld [vmem:[%s1313_s1 + $0x78] sm:$0xff]   ;;  %v945_v2 = vld [vmem:[%s1313_s1 + $0x70] sm:$0xff]   ;;  %v947_v4 = vld [vmem:[%s1313_s1 + $0x68] sm:$0xff]   ;;  %s273_s23 = scalar_select %p272_p10, %s1111_s28, 1  ;;  %v1047_v20 = vmov 0.0   ;;  %vm1048_vm0 = vmmov 0  }
  0x14   : > { %v944_v1 = vld [vmem:[%s1313_s1 + $0x38] sm:$0xff]   ;;  %822 = vmatprep.subr.bf16.mxu0 %v943_v0  ;;  %v946_v3 = vld [vmem:[%s1313_s1 + $0x30] sm:$0xff]   ;;  %v948_v5 = vld [vmem:[%s1313_s1 + $0x28] sm:$0xff]   ;;  %862 = vmatprep.subr.bf16.mxu1 %v1047_v20  ;;  %s1049_s28 = smov [#allocation2]  }
  0x15   : > { %823 = vmatpush3.bf16.msra.mxu0 %v944_v1  ;;  %v949_v6 = vld [vmem:[%s1313_s1 + $0x60] sm:$0xff]   ;;  %s821_s14 = sshll.u32 %s273_s23, 3  ;;  %v951_v8 = vld [vmem:[%s1313_s1 + $0x58] sm:$0xff]   ;;  %v953_v10 = vld [vmem:[%s1313_s1 + $0x50] sm:$0xff]   ;;  %878 = vmatprep.mubr.msk.bf16.mxu1 %vm1048_vm0, %v1047_v20  ;;  %s989_s15 = sshll.u32 %s1049_s28, 4  ;;  %s990_s15 = int_to_ptr.vmem [resolvable:$false] %s989_s15 }
  0x16   : > { %824 = vmatprep.subr.bf16.mxu0 %v945_v2  ;;  %v950_v7 = vld [vmem:[%s1313_s1 + $0x20] sm:$0xff]   ;;  %s276_s21 = scalar_lea.vmem %s1312_s0, %s821_s14  ;;  %v952_v9 = vld [vmem:[%s1313_s1 + $0x18] sm:$0xff]   ;;  %v954_v12 = vld [vmem:[%s1313_s1 + $0x10] sm:$0xff]   ;;  %s269_s14 = sand.u32 1, %s1037_s25  }
  0x17   : > { %v278_v11 = vld [vmem:[%s276_s21] sm:$0xff]  ;;  %v955_v14 = vld [vmem:[%s1313_s1 + $0x48] sm:$0xff]   ;;  %v961_v19 = vld [vmem:[%s1315_s3 + $0x38] sm:$0xff]   ;;  %s775_s17 = sshll.u32 %s269_s14, 3  ;;  %s699_s9 = scalar_lea.sflag [#allocation3], %s269_s14 }
  0x18   : > { %v780_v13 = vcombine.high %v278_v11, %v278_v11  ;;  %v956_v15 = vld [vmem:[%s1313_s1 + $0x8] sm:$0xff]   ;;  %v957_v16 = vld [vmem:[%s1313_s1 + $0x40] sm:$0xff]   ;;  %v779_v18 = vcombine.low %v278_v11, %v278_v11  ;;  %863 = vmatpush3.bf16.msra.mxu1 %v961_v19  ;;  %v962_v21 = vld [vmem:[%s1315_s3 + $0x30] sm:$0xff]   ;;  %s271_s21 = scalar_lea.vmem [#allocation2], %s775_s17  ;;  %s991_s16 = scalar_lea.vmem %s990_s15, 256 }
  0x19   : > { %825 = vmatpush3.bf16.msra.mxu0 %v946_v3  ;;  %v958_v17 = vld [vmem:[%s1313_s1] sm:$0xff]   ;;  %864 = vmatprep.subr.bf16.mxu1 %v1047_v20  ;;  %v963_v22 = vld [vmem:[%s1315_s3 + $0x28] sm:$0xff]   ;;  %v965_v24 = vld [vmem:[%s1315_s3 + $0x18] sm:$0xff]   ;;  %s712_s22 = sshll.u32 %s271_s21, 4  ;;  %s1273_s22 = int_to_ptr.vmem [resolvable:$true] %s712_s22 }
  0x1a   : > { %826 = vmatprep.subr.bf16.mxu0 %v947_v4  ;;  %453 = vmatprep.mubr.bf16.mxu0 %v780_v13  ;;  %v964_v23 = vld [vmem:[%s1315_s3 + $0x20] sm:$0xff]   ;;  %v966_v25 = vld [vmem:[%s1315_s3 + $0x10] sm:$0xff]   ;;  %v967_v26 = vld [vmem:[%s1315_s3 + $0x8] sm:$0xff]   ;;  %s985_s13 = scalar_lea.vmem %s1273_s22, 128  ;;  %p992_p0 = scmp.lt.s32.totalorder %s1273_s22, %s990_s15 }
  0x1b   : > { %v968_v27 = vld [vmem:[%s1315_s3] sm:$0xff]   ;;  %v969_v40 = vld [vmem:[%s1317_s5 + $0x38] sm:$0xff]   ;;  %v970_v41 = vld [vmem:[%s1317_s5 + $0x30] sm:$0xff]   ;;  %p986_p11 = scmp.ne.s32.totalorder %s1273_s22, %s985_s13  ;;  %p993_p1 = scmp.lt.s32.totalorder %s991_s16, %s985_s13 }
  0x1c   : > { %865 = vmatpush3.bf16.msra.mxu1 %v962_v21  ;;  %v778_v29 = vld [vmem:[%s1314_s2] ss:$0 sm:$0xff]  ;;  %v971_v42 = vld [vmem:[%s1317_s5 + $0x28] sm:$0xff]   ;;  %v973_v44 = vld [vmem:[%s1317_s5 + $0x18] sm:$0xff]  }
  0x1d   : > { %827 = vmatpush3.bf16.msra.mxu0 %v948_v5  ;;  %866 = vmatprep.subr.bf16.mxu1 %v1047_v20  ;;  %v972_v43 = vld [vmem:[%s1317_s5 + $0x20] sm:$0xff]   ;;  %v974_v45 = vld [vmem:[%s1317_s5 + $0x10] sm:$0xff]   ;;  %v975_v46 = vld [vmem:[%s1317_s5 + $0x8] sm:$0xff]   ;;  %p987_p12 = pnand %p986_p11, %p1128_p5  ;;  %p994_p2 = por %p993_p1, %p992_p0 }
  0x1e   : > { %828 = vmatprep.subr.bf16.mxu0 %v949_v6  ;;  %v976_v47 = vld [vmem:[%s1317_s5] sm:$0xff]  }
  0x1f   : > { %v798_v48 = vld [vmem:[%s1316_s4] ss:$0 sm:$0xff]  ;;  %p988_p13 = pneg %p987_p12 }
  0x20   : > { %867 = vmatpush3.bf16.msra.mxu1 %v963_v22  ;;  %v808_v59 = vld [vmem:[%s1318_s6] ss:$0 sm:$0xff] }
  0x21   : > { %829 = vmatpush3.bf16.msra.mxu0 %v950_v7  ;;  %868 = vmatprep.subr.bf16.mxu1 %v1047_v20  ;;  %p995_p3 = pnand %p994_p2, %p988_p13 }
  0x22   : > { %830 = vmatprep.subr.bf16.mxu0 %v951_v8 }
  0x24   : > { %869 = vmatpush3.bf16.msra.mxu1 %v964_v23 }
  0x25   : > { %831 = vmatpush3.bf16.msra.mxu0 %v952_v9  ;;  %870 = vmatprep.subr.bf16.mxu1 %v1047_v20 }
  0x26   : > { %832 = vmatprep.subr.bf16.mxu0 %v953_v10 }
  0x28   : > { %871 = vmatpush3.bf16.msra.mxu1 %v965_v24 }
  0x29   : > { %833 = vmatpush3.bf16.msra.mxu0 %v954_v12  ;;  %872 = vmatprep.subr.bf16.mxu1 %v1047_v20 }
  0x2a   : > { %834 = vmatprep.subr.bf16.mxu0 %v955_v14 }
  0x2c   : > { %873 = vmatpush3.bf16.msra.mxu1 %v966_v25 }
  0x2d   : > { %835 = vmatpush3.bf16.msra.mxu0 %v956_v15  ;;  %874 = vmatprep.subr.bf16.mxu1 %v1047_v20 }
  0x2e   : > { %836 = vmatprep.subr.bf16.mxu0 %v957_v16 }
  0x30   : > { %875 = vmatpush3.bf16.msra.mxu1 %v967_v26 }
  0x31   : > { %837 = vmatpush3.bf16.msra.mxu0 %v958_v17  ;;  %876 = vmatprep.subr.bf16.mxu1 %v1047_v20 }
  0x32   : > { %882 = vmatprep.subr.bf16.mxu0 %v1047_v20 }
  0x34   : > { %454 = vmatmul.mubr.bf16.vlgmr.msra.gmra.mxu0 %v779_v18  ;;  %877 = vmatpush3.bf16.msra.mxu1 %v968_v27 }
  0x35   : > { %898 = vmatprep.mubr.msk.bf16.mxu0 %vm1048_vm0, %v1047_v20  ;;  %883 = vmatpush3.bf16.msra.mxu0 %v969_v40 }
  0x36   : > { %884 = vmatprep.subr.bf16.mxu0 %v1047_v20 }
  0x39   : > { %885 = vmatpush3.bf16.msra.mxu0 %v970_v41 }
  0x3a   : > { %886 = vmatprep.subr.bf16.mxu0 %v1047_v20 }
  0x3d   : > { %887 = vmatpush3.bf16.msra.mxu0 %v971_v42 }
  0x3e   : > { %888 = vmatprep.subr.bf16.mxu0 %v1047_v20 }
  0x41   : > { %889 = vmatpush3.bf16.msra.mxu0 %v972_v43 }
  0x42   : > { %890 = vmatprep.subr.bf16.mxu0 %v1047_v20 }
  0x45   : > { %891 = vmatpush3.bf16.msra.mxu0 %v973_v44 }
  0x46   : > { %892 = vmatprep.subr.bf16.mxu0 %v1047_v20 }
  0x49   : > { %893 = vmatpush3.bf16.msra.mxu0 %v974_v45 }
  0x4a   : > { %894 = vmatprep.subr.bf16.mxu0 %v1047_v20 }
  0x4d   : > { %895 = vmatpush3.bf16.msra.mxu0 %v975_v46 }
  0x4e   : > { %896 = vmatprep.subr.bf16.mxu0 %v1047_v20 }
  0x51   : > { %897 = vmatpush3.bf16.msra.mxu0 %v976_v47 }
  0xf4   : > { %v838_v28 = vpop.f32.mrf.mxu0 }
  0xf6   : > { %v839_v30 = vpop.f32.mrf.mxu0 }
  0xf7   : > { %v840_v31 = vadd.f32 %v839_v30, %v838_v28 }
  0xf8   : > { %v841_v32 = vpop.f32.mrf.mxu0 }
  0xf9   : > { %v456_v33 = vadd.f32 %v840_v31, %v778_v29 }
  0xfa   : > { %v842_v34 = vpop.f32.mrf.mxu0 }
  0xfb   : > { %v797_v35 = vmul.f32 -1.442695, %v456_v33 }
  0xfd   : > { %977 = vpow2.f32 %v797_v35 }
 0x10a   : > { %v978_v36 = vpop.eup %977 }
 0x10b   : > { %v464_v37 = vadd.f32 1.0, %v978_v36 }
 0x10d   : > { %979 = vrcp.f32 %v464_v37 }
 0x11a   : > { %v980_v38 = vpop.eup %979 }
 0x11b   : > { %v467_v39 = vpack.c.bf16 %v980_v38, %v980_v38 }
 0x11d   : > { %879 = vmatmul.mubr.bf16.vlgmr.msra.gmra.mxu1 %v467_v39 }
 0x1dd   : > { %v573_v49 = vpop.f32.mrf.mxu1 }
 0x1de   : > { %v574_v50 = vadd.f32 %v798_v48, %v573_v49 }
 0x1df   : > { %v880_v51 = vpop.f32.mrf.mxu1 }
 0x1e0   : > { %v807_v52 = vmul.f32 -1.442695, %v574_v50 }
 0x1e1   : > { %v576_v53 = vpop.f32.mrf.mxu1 }
 0x1e2   : > { %981 = vpow2.f32 %v807_v52 }
 0x1e3   : > { %v881_v54 = vpop.f32.mrf.mxu1 }
 0x1ef   : > { %v982_v55 = vpop.eup %981 }
 0x1f0   : > { %v582_v56 = vadd.f32 1.0, %v982_v55 }
 0x1f2   : > { %983 = vrcp.f32 %v582_v56 }
 0x1ff   : > { %v984_v57 = vpop.eup %983 }
 0x200   : > { %v585_v58 = vpack.c.bf16 %v984_v57, %v984_v57 }
 0x202   : > { %899 = vmatmul.mubr.bf16.vlgmr.msra.gmra.mxu0 %v585_v58 }
 0x2c2   : > { %v691_v60 = vpop.f32.mrf.mxu0 }
 0x2c3   : > { %v692_v61 = vadd.f32 %v808_v59, %v691_v60 }
 0x2c4   : > { %v900_v62 = vpop.f32.mrf.mxu0 }
 0x2c5   : > { %697 = vst [vmem:[%s271_s21] sm:$0xff] %v692_v61 }
 0x2c6   : > { %v694_v63 = vpop.f32.mrf.mxu0 }
 0x2c7   : > { %998 = shalt.err (!%p995_p3)
}
 0x2c8   : > { %s999_s17 = scalar_lea.hbm %s1271_s8, 128  ;;  %s1003_s19 = scalar_lea.hbm %s1319_s7, 256 }
 0x2c9   : > { %p1000_p4 = scmp.ne.s32.totalorder %s1271_s8, %s999_s17  ;;  %p1004_p9 = scmp.lt.s32.totalorder %s1271_s8, %s1319_s7 }
 0x2ca   : > { %p1005_p10 = scmp.lt.s32.totalorder %s1003_s19, %s999_s17 }
 0x2cb   : > { %p1001_p7 = pnand %p1000_p4, %p1128_p5 }
 0x2cc   : > { %p1006_p11 = por %p1005_p10, %p1004_p9 }
 0x2cd   : > { %p1002_p8 = pneg %p1001_p7 }
 0x2cf   : > { %p1007_p12 = pnand %p1006_p11, %p1002_p8 }
 0x2d1   : > { %1010 = shalt.err (!%p1007_p12)
}
 0x2d2   : > { %902 = dma.vmem_to_hbm [thread:$0]  (%p1128_p5), %s1273_s22, 128, %s1271_s8, %s699_s9   ;;  %v901_v0 = vpop.f32.mrf.mxu0 }
 0x2d3 PF: > { %p908_p13 = scmp.ge.s32.totalorder %s1045_s27, 2  ;;  %s724_s29 = sand.u32 1, %s1033_s24  }
 0x2d4   : > { %s725_s23 = scalar_lea.sflag [#allocation3], %s724_s29 }
 0x2d5   : > { %p905_p0 = pnand %p908_p13, %p1132_p6 }
 0x2d7   : > { %p906_p1 = pneg %p905_p0 }
 0x2d9   : > { %1028 = dma.done.wait (%p906_p1), %s725_s23, 128  }
 0x2da   : > { %1030 = vsyncadd (%p906_p1), %s725_s23, 4294967168  ;;  %p17_p2 = scmp.ge.s32.totalorder %s1115_s30, 4   ;;  %s1322_s24 = smov %s1037_s25 }
 0x2db   : > { %s1323_s25 = smov %s1041_s26  ;;  %s1324_s26 = smov %s1126_s10 }
 0x2dc   : > { %s1325_s27 = smov %s1115_s30  ;;  %19 = sbr.rel (!%p17_p2) target bundleno = 3 (0x3), region = 83 }
 0x2e1   :  { %730 = vsyncpa [#allocation3], 1 }
 0x2e2   :  { %732 = vsyncpa [#allocation3 + $0x1], 1 }

</bundles_post_ra>
